<compile_context>
chip_gen: v7x
topology: tpu7x:2x2x1
jax: 0.10.0
libtpu: 0.0.40
codegen_flags: <defaults>
</compile_context>

<pallas_src>
import functools
import inspect
import math

import jax
import jax.numpy as jnp
from jax.experimental import pallas as pl
from jax.experimental.pallas import tpu as pltpu


try:
    _HAS_PIPELINE_MODE = (
        hasattr(pl, "Buffered")
        and "pipeline_mode" in inspect.signature(pl.BlockSpec).parameters
    )
except Exception:  # pragma: no cover - very old jax
    _HAS_PIPELINE_MODE = False


def _round_up(v, m):
    return ((v + m - 1) // m) * m


def _lrelu(x):
    # LeakyReLU(0.2): max(x, 0.2*x) is exact and uses a single VPU op.
    return jnp.maximum(x, 0.2 * x)


def _mlp_kernel(x_ref,
                w1_ref, b1_ref,
                w2_ref, b2_ref,
                w3_ref, b3_ref,
                w4_ref, b4_ref,
                w5_ref, b5_ref,
                out_ref, acc_ref):
    """5-layer MLP on one batch tile.

    Grid = (batch_tiles, k_tiles).  Layer 1 is accumulated over the k axis in
    a f32 VMEM scratch; the remaining layers + lane-dense output store run on
    the last k step.  Weights w2..w5 and all biases stay resident in VMEM.
    """
    k = pl.program_id(1)

    @pl.when(k == 0)
    def _init():
        acc_ref[...] = jnp.zeros_like(acc_ref)

    # Layer 1 partial product for this K tile (bf16 in, f32 accumulate).
    acc_ref[...] += jnp.dot(x_ref[...], w1_ref[...],
                            preferred_element_type=jnp.float32)

    @pl.when(k == pl.num_programs(1) - 1)
    def _finish():
        def dense(h, w_ref, b_ref):
            return jnp.dot(h.astype(w_ref.dtype), w_ref[...],
                           preferred_element_type=jnp.float32) + b_ref[...]

        h = _lrelu(acc_ref[...] + b1_ref[...])
        h = _lrelu(dense(h, w2_ref, b2_ref))
        h = _lrelu(dense(h, w3_ref, b3_ref))
        h = _lrelu(dense(h, w4_ref, b4_ref))
        # Final 128 -> 1 layer as (1,128) contracted against (tb,128) so the
        # result is produced directly in the lane-dense (1, tb) output layout
        # (batch along lanes) -> unmasked stores, contiguous writeback DMA.
        y = jax.lax.dot_general(
            w5_ref[...], h.astype(w5_ref.dtype),
            dimension_numbers=(((1,), (1,)), ((), ())),
            preferred_element_type=jnp.float32)          # (1, tb)
        out_ref[...] = (y + b5_ref[...]).astype(out_ref.dtype)


def prepare_params(params, *, inp_dim, ctx_dim, inner_dim, n_class,
                   use_bf16=True, k_block=4096):
    """One-time weight reorganization (do NOT call per forward).

    Folds the 1x1 conv into the first Linear, pre-transposes / casts all
    weights, zero-pads the layer-1 K dimension to a lane-aligned multiple of
    128 and picks the K tiling (split over a grid axis when w1 is large).

    Returns (prep_arrays, meta) where meta holds plain-python tiling ints.
    """
    C = inner_dim + ctx_dim
    wc = params["conv_w"][:, :, 0]                      # (inner, inp)
    bc = params["conv_b"]                               # (inner,)

    # First Linear weight, columns ordered position-major [z(l), ctx(l)].
    w1t = params["w1"].T.reshape(n_class, C, 512)       # (L, C, 512)
    w1z = w1t[:, :inner_dim, :]                         # (L, inner, 512)
    w1c = w1t[:, inner_dim:, :]                         # (L, ctx, 512)

    # Fold conv into the first Linear (valid: mask is a per-(b,l) scalar).
    wz_fold = jnp.einsum("oi,lon->lin", wc, w1z)        # (L, inp, 512)
    wz_flat = wz_fold.reshape(n_class * inp_dim, 512)
    wc_flat = w1c.reshape(n_class * ctx_dim, 512)
    b_fold = jnp.einsum("o,lon->ln", bc, w1z)           # (L, 512) mask-weighted bias

    # Rows = [masked z | masked ctx | mask].
    w1_full = jnp.concatenate([wz_flat, wc_flat, b_fold], axis=0)
    d1 = int(w1_full.shape[0])                          # n_class*(inp+ctx) + n_class

    # K tiling: pad to a multiple of 128; split into K tiles if w1 is large.
    d1_128 = _round_up(d1, 128)
    if d1_128 <= k_block:
        num_k, tk = 1, d1_128
    else:
        num_k = -(-d1_128 // k_block)
        tk = _round_up(-(-d1_128 // num_k), 128)
    d1_pad = num_k * tk
    if d1_pad != d1:
        w1_full = jnp.pad(w1_full, ((0, d1_pad - d1), (0, 0)))

    mm = jnp.bfloat16 if use_bf16 else jnp.float32
    prep = {
        "w1": w1_full.astype(mm),                          # (d1_pad, 512)
        "b1": params["b1"][None, :].astype(jnp.float32),   # (1, 512)
        "w2": params["w2"].T.astype(mm),                   # (512, 512)
        "b2": params["b2"][None, :].astype(jnp.float32),
        "w3": params["w3"].T.astype(mm),                   # (512, 512)
        "b3": params["b3"][None, :].astype(jnp.float32),
        "w4": params["w4"].T.astype(mm),                   # (512, 128)
        "b4": params["b4"][None, :].astype(jnp.float32),
        "w5": params["w5"].astype(mm),                     # (1, 128) row layout
        "b5": params["b5"][None, :].astype(jnp.float32),   # (1, 1)
    }
    meta = dict(d1=d1, d1_pad=d1_pad, tk=tk, num_k=num_k,
                n_class=n_class, inp_dim=inp_dim, ctx_dim=ctx_dim)
    return prep, meta


def _build_flat_input(z, ctx, mask, *, d1_pad, act_dtype):
    """Layout glue: NCL->NLC, mask multiply, flatten, append mask, zero-pad."""
    bs, inp_dim, L = z.shape
    ctx_dim = ctx.shape[1]
    if mask is None:
        m = jnp.ones((bs, L), jnp.float32)
    else:
        m = mask.astype(jnp.float32)
    zm = jnp.transpose(z, (0, 2, 1)).astype(jnp.float32) * m[:, :, None]
    cm = jnp.transpose(ctx, (0, 2, 1)).astype(jnp.float32) * m[:, :, None]
    x = jnp.concatenate([zm.reshape(bs, L * inp_dim),
                         cm.reshape(bs, L * ctx_dim),
                         m], axis=1)
    if x.shape[1] < d1_pad:
        x = jnp.pad(x, ((0, 0), (0, d1_pad - x.shape[1])))
    return x.astype(act_dtype)


def discriminator_cgan_forward(z, ctx, mask, prep, *, meta, block_batch=512,
                               single_buffer_weights=True):
    """z: (bs, inp_dim, n_class), ctx: (bs, ctx_dim, n_class), mask: (bs, n_class)|None."""
    assert z.shape[2] == meta["n_class"], "sequence length must equal n_class"
    bs = z.shape[0]
    d1_pad, tk, num_k = meta["d1_pad"], meta["tk"], meta["num_k"]

    x = _build_flat_input(z, ctx, mask, d1_pad=d1_pad, act_dtype=prep["w1"].dtype)

    # Batch tiling: large tiles to amortize per-step overhead, but keep >= 2
    # tiles at mid-size batches so both TensorCores get work on v7x.
    tb = min(block_batch, _round_up(bs, 8))
    if bs > 256 and (bs + tb - 1) // tb < 2:
        tb = _round_up((bs + 1) // 2, 8)
    bs_pad = _round_up(bs, tb)
    if bs_pad != bs:
        x = jnp.pad(x, ((0, bs_pad - bs), (0, 0)))
    nb = bs_pad // tb

    weights = (prep["w1"], prep["b1"], prep["w2"], prep["b2"],
               prep["w3"], prep["b3"], prep["w4"], prep["b4"],
               prep["w5"], prep["b5"])

    use_single = single_buffer_weights and _HAS_PIPELINE_MODE

    def _resident_spec(arr, single):
        idx = lambda i, k, _nd=arr.ndim: (0,) * _nd
        if single:
            return pl.BlockSpec(arr.shape, idx, pipeline_mode=pl.Buffered(1))
        return pl.BlockSpec(arr.shape, idx)

    if num_k == 1:
        w1_spec = _resident_spec(prep["w1"], use_single)
    else:
        w1_spec = pl.BlockSpec((tk, 512), lambda i, k: (k, 0))

    in_specs = [pl.BlockSpec((tb, tk), lambda i, k: (i, k)), w1_spec]
    in_specs += [_resident_spec(a, use_single) for a in weights[1:]]

    # VMEM budget (weights + double-buffered x tile + scratch), per-generation cap.
    itm = jnp.dtype(prep["w1"].dtype).itemsize
    need = 2 * tb * tk * itm                                           # x tiles
    need += tk * 512 * itm * ((1 if use_single else 2) if num_k == 1 else 2)
    need += sum(int(a.size) * jnp.dtype(a.dtype).itemsize
                for a in weights[1:]) * (1 if use_single else 2)
    need += tb * 512 * 4                                               # f32 acc
    need += 2 * tb * 4                                                 # out block
    need += 2 * tb * 512 * 4                                           # f32 intermediates
    need = int(need * 1.25) + (8 << 20)
    cap = 48 << 20                                                     # v7x-safe default
    try:
        kind = jax.devices()[0].device_kind.lower()
        if not any(t in kind for t in ("v7", "7x")):
            cap = 100 << 20                                            # 128 MiB chips
    except Exception:
        pass
    vmem_limit = max(32 << 20, min(cap, need))

    flops = 2 * bs_pad * (d1_pad * 512 + 512 * 512 + 512 * 512 + 512 * 128 + 128)
    bytes_accessed = (bs_pad * d1_pad * itm
                      + sum(int(a.size) * jnp.dtype(a.dtype).itemsize for a in weights)
                      + bs_pad * 4)
    cost = pl.CostEstimate(flops=int(flops), transcendentals=0,
                           bytes_accessed=int(bytes_accessed))

    out = pl.pallas_call(
        _mlp_kernel,
        out_shape=jax.ShapeDtypeStruct((nb, tb), jnp.float32),
        grid=(nb, num_k),
        in_specs=in_specs,
        out_specs=pl.BlockSpec((1, tb), lambda i, k: (i, 0)),
        scratch_shapes=[pltpu.VMEM((tb, 512), jnp.float32)],
        compiler_params=pltpu.CompilerParams(
            dimension_semantics=("parallel", "arbitrary"),
            vmem_limit_bytes=int(vmem_limit)),
        cost_estimate=cost,
    )(x, *weights)

    # (nb, tb) lane-dense result -> (bs, 1)
    return out.reshape(bs_pad, 1)[:bs]


def init_params(key, inp_dim, ctx_dim, inner_dim, n_class):
    """Deterministic synthetic parameters with the same shapes as the nn.Module."""
    D = inner_dim * n_class + ctx_dim * n_class
    dims = [(D, 512), (512, 512), (512, 512), (512, 128), (128, 1)]
    keys = jax.random.split(key, 2 + 2 * len(dims))
    params = {
        "conv_w": 0.1 * jax.random.normal(keys[0], (inner_dim, inp_dim, 1), jnp.float32),
        "conv_b": 0.1 * jax.random.normal(keys[1], (inner_dim,), jnp.float32),
    }
    for i, (fi, fo) in enumerate(dims, start=1):
        kw, kb = keys[2 * i], keys[2 * i + 1]
        params[f"w{i}"] = jax.random.normal(kw, (fo, fi), jnp.float32) / math.sqrt(fi)
        params[f"b{i}"] = 0.1 * jax.random.normal(kb, (fo,), jnp.float32)
    return params


def reference_forward(z, ctx, mask, params):
    """Plain-JAX f32 mirror of the PyTorch forward for verification."""
    bs = z.shape[0]
    wc = params["conv_w"][:, :, 0]
    zp = jnp.einsum("oi,bil->bol", wc, z) + params["conv_b"][None, :, None]
    if mask is not None:
        zp = zp * mask[:, None, :]
        ctx = ctx * mask[:, None, :]
    inp = jnp.concatenate([zp, ctx], axis=1)                 # (bs, inner+ctx, L)
    inp = jnp.transpose(inp, (0, 2, 1)).reshape(bs, -1)      # (bs, L*(inner+ctx))

    def lin(x, i):
        return x @ params[f"w{i}"].T + params[f"b{i}"]

    h = jax.nn.leaky_relu(lin(inp, 1), 0.2)
    h = jax.nn.leaky_relu(lin(h, 2), 0.2)
    h = jax.nn.leaky_relu(lin(h, 3), 0.2)
    h = jax.nn.leaky_relu(lin(h, 4), 0.2)
    return lin(h, 5)


def reference_forward_prepared(z, ctx, mask, prep, *, meta):
    """Plain-JAX mirror using the *prepared* (folded / padded / bf16) weights."""
    x = _build_flat_input(z, ctx, mask, d1_pad=meta["d1_pad"],
                          act_dtype=prep["w1"].dtype)

    def dense(h, w, b):
        return jnp.dot(h.astype(w.dtype), w,
                       preferred_element_type=jnp.float32) + b

    h = _lrelu(dense(x, prep["w1"], prep["b1"]))
    h = _lrelu(dense(h, prep["w2"], prep["b2"]))
    h = _lrelu(dense(h, prep["w3"], prep["b3"]))
    h = _lrelu(dense(h, prep["w4"], prep["b4"]))
    y = jnp.dot(h.astype(prep["w5"].dtype), prep["w5"].T,
                preferred_element_type=jnp.float32) + prep["b5"]
    return y


if __name__ == "__main__":
    bs, inp_dim, ctx_dim, inner_dim, n_class = 2, 4, 4, 8, 4

    key = jax.random.PRNGKey(0)
    kz, kc, km, kp = jax.random.split(key, 4)
    z = jax.random.normal(kz, (bs, inp_dim, n_class), jnp.float32)     # NCL like PyTorch
    ctx = jax.random.normal(kc, (bs, ctx_dim, n_class), jnp.float32)
    mask = (jax.random.uniform(km, (bs, n_class)) > 0.3).astype(jnp.float32)
    params = init_params(kp, inp_dim, ctx_dim, inner_dim, n_class)

    # One-time weight preparation (conv fold, transposes, K padding, bf16 cast).
    prep, meta = prepare_params(params, inp_dim=inp_dim, ctx_dim=ctx_dim,
                                inner_dim=inner_dim, n_class=n_class, use_bf16=True)

    def run(single_buffer):
        fn = jax.jit(functools.partial(discriminator_cgan_forward, meta=meta,
                                       single_buffer_weights=single_buffer))
        return jax.block_until_ready(fn(z, ctx, mask, prep))

    try:
        y = run(True)
    except Exception:
        # Fallback if this jax/libtpu rejects single-buffered (Buffered(1)) specs.
        y = run(False)

    assert y.shape == (bs, 1)

    # Tight check vs. a same-precision (bf16 weights, f32 accumulation) reference.
    y_prep_ref = reference_forward_prepared(z, ctx, mask, prep, meta=meta)
    assert jnp.allclose(y, y_prep_ref, atol=2e-2, rtol=2e-2), (y, y_prep_ref)

    # Loose check vs. the full-f32 PyTorch-equivalent reference.
    y_f32_ref = reference_forward(z, ctx, mask, params)
    assert jnp.allclose(y, y_f32_ref, atol=1e-1, rtol=1e-1), (y, y_f32_ref)

    print("KERNEL_OK")
</pallas_src>

<mosaic_0001>
module attributes {stable_mosaic.version = 11 : i64} {
  func.func @_mlp_kernel(%arg0: i32, %arg1: i32, %arg2: memref<8x128xbf16, #tpu.memory_space<vmem>>, %arg3: memref<128x512xbf16, #tpu.memory_space<vmem>>, %arg4: memref<1x512xf32, #tpu.memory_space<vmem>>, %arg5: memref<512x512xbf16, #tpu.memory_space<vmem>>, %arg6: memref<1x512xf32, #tpu.memory_space<vmem>>, %arg7: memref<512x512xbf16, #tpu.memory_space<vmem>>, %arg8: memref<1x512xf32, #tpu.memory_space<vmem>>, %arg9: memref<512x128xbf16, #tpu.memory_space<vmem>>, %arg10: memref<1x128xf32, #tpu.memory_space<vmem>>, %arg11: memref<1x128xbf16, #tpu.memory_space<vmem>>, %arg12: memref<1x1xf32, #tpu.memory_space<vmem>>, %arg13: memref<1x8xf32, #tpu.memory_space<vmem>>, %arg14: memref<8x512xf32, #tpu.memory_space<vmem>>) attributes {dimension_semantics = [#tpu.dimension_semantics<parallel>, #tpu.dimension_semantics<arbitrary>], iteration_bounds = array<i64: 1, 1>, scalar_prefetch = 0 : i64, scratch_operands = 1 : i64, tpu.core_type = #tpu.core_type<tc>, window_params = [{transform_indices = @transform_0, window_bounds = array<i64: 8, 128>}, {pipeline_mode = #tpu.pipeline_mode<synchronous>, transform_indices = @transform_1, window_bounds = array<i64: 128, 512>}, {pipeline_mode = #tpu.pipeline_mode<synchronous>, transform_indices = @transform_2, window_bounds = array<i64: 1, 512>}, {pipeline_mode = #tpu.pipeline_mode<synchronous>, transform_indices = @transform_3, window_bounds = array<i64: 512, 512>}, {pipeline_mode = #tpu.pipeline_mode<synchronous>, transform_indices = @transform_4, window_bounds = array<i64: 1, 512>}, {pipeline_mode = #tpu.pipeline_mode<synchronous>, transform_indices = @transform_5, window_bounds = array<i64: 512, 512>}, {pipeline_mode = #tpu.pipeline_mode<synchronous>, transform_indices = @transform_6, window_bounds = array<i64: 1, 512>}, {pipeline_mode = #tpu.pipeline_mode<synchronous>, transform_indices = @transform_7, window_bounds = array<i64: 512, 128>}, {pipeline_mode = #tpu.pipeline_mode<synchronous>, transform_indices = @transform_8, window_bounds = array<i64: 1, 128>}, {pipeline_mode = #tpu.pipeline_mode<synchronous>, transform_indices = @transform_9, window_bounds = array<i64: 1, 128>}, {pipeline_mode = #tpu.pipeline_mode<synchronous>, transform_indices = @transform_10, window_bounds = array<i64: 1, 1>}, {transform_indices = @transform_11, window_bounds = array<i64: 1, 8>}]} {
    %c0_i32 = arith.constant 0 : i32
    %0 = arith.cmpi eq, %arg1, %c0_i32 : i32
    %1 = arith.extui %0 : i1 to i32
    %c0_i32_0 = arith.constant 0 : i32
    %2 = arith.cmpi ne, %1, %c0_i32_0 : i32
    scf.if %2 {
      %cst_10 = arith.constant 0.000000e+00 : f32
      %12 = vector.broadcast %cst_10 : f32 to vector<8x512xf32>
      %c0_11 = arith.constant 0 : index
      %c0_12 = arith.constant 0 : index
      %13 = vector.load %arg14[%c0_11, %c0_12] : memref<8x512xf32, #tpu.memory_space<vmem>>, vector<8x512xf32>
      tpu.vector_store %arg14[%c0_11, %c0_12], %12 {strides = array<i32>} : memref<8x512xf32, #tpu.memory_space<vmem>>, vector<8x512xf32>,
    } else {
    }
    %c0 = arith.constant 0 : index
    %c0_1 = arith.constant 0 : index
    %3 = vector.load %arg14[%c0, %c0_1] : memref<8x512xf32, #tpu.memory_space<vmem>>, vector<8x512xf32>
    %c0_2 = arith.constant 0 : index
    %c0_3 = arith.constant 0 : index
    %4 = vector.load %arg2[%c0_2, %c0_3] : memref<8x128xbf16, #tpu.memory_space<vmem>>, vector<8x128xbf16>
    %c0_4 = arith.constant 0 : index
    %c0_5 = arith.constant 0 : index
    %5 = vector.load %arg3[%c0_4, %c0_5] : memref<128x512xbf16, #tpu.memory_space<vmem>>, vector<128x512xbf16>
    %cst = arith.constant dense<0.000000e+00> : vector<8x512xf32>
    %6 = tpu.matmul %4, %5, %cst {dimension_numbers = #tpu.dot_dimension_numbers<[1], [0], [0], [1], [0, 0, 1, 1], [], []>} : vector<8x128xbf16>, vector<128x512xbf16>, vector<8x512xf32> -> vector<8x512xf32>
    %7 = arith.addf %3, %6 : vector<8x512xf32>
    %c0_6 = arith.constant 0 : index
    %c0_7 = arith.constant 0 : index
    %8 = vector.load %arg14[%c0_6, %c0_7] : memref<8x512xf32, #tpu.memory_space<vmem>>, vector<8x512xf32>
    tpu.vector_store %arg14[%c0_6, %c0_7], %7 {strides = array<i32>} : memref<8x512xf32, #tpu.memory_space<vmem>>, vector<8x512xf32>,
    %c0_i32_8 = arith.constant 0 : i32
    %9 = arith.cmpi eq, %arg1, %c0_i32_8 : i32
    %10 = arith.extui %9 : i1 to i32
    %c0_i32_9 = arith.constant 0 : i32
    %11 = arith.cmpi ne, %10, %c0_i32_9 : i32
    scf.if %11 {
      %c0_10 = arith.constant 0 : index
      %c0_11 = arith.constant 0 : index
      %12 = vector.load %arg14[%c0_10, %c0_11] : memref<8x512xf32, #tpu.memory_space<vmem>>, vector<8x512xf32>
      %c0_12 = arith.constant 0 : index
      %c0_13 = arith.constant 0 : index
      %13 = vector.load %arg4[%c0_12, %c0_13] : memref<1x512xf32, #tpu.memory_space<vmem>>, vector<1x512xf32>
      %14 = vector.broadcast %13 : vector<1x512xf32> to vector<8x512xf32>
      %15 = arith.addf %12, %14 : vector<8x512xf32>
      %cst_14 = arith.constant 2.000000e-01 : f32
      %16 = vector.broadcast %cst_14 : f32 to vector<8x512xf32>
      %17 = arith.mulf %16, %15 : vector<8x512xf32>
      %18 = arith.maximumf %15, %17 : vector<8x512xf32>
      %19 = arith.truncf %18 : vector<8x512xf32> to vector<8x512xbf16>
      %c0_15 = arith.constant 0 : index
      %c0_16 = arith.constant 0 : index
      %20 = vector.load %arg5[%c0_15, %c0_16] : memref<512x512xbf16, #tpu.memory_space<vmem>>, vector<512x512xbf16>
      %cst_17 = arith.constant dense<0.000000e+00> : vector<8x512xf32>
      %21 = tpu.matmul %19, %20, %cst_17 {dimension_numbers = #tpu.dot_dimension_numbers<[1], [0], [0], [1], [0, 0, 1, 1], [], []>} : vector<8x512xbf16>, vector<512x512xbf16>, vector<8x512xf32> -> vector<8x512xf32>
      %c0_18 = arith.constant 0 : index
      %c0_19 = arith.constant 0 : index
      %22 = vector.load %arg6[%c0_18, %c0_19] : memref<1x512xf32, #tpu.memory_space<vmem>>, vector<1x512xf32>
      %23 = vector.broadcast %22 : vector<1x512xf32> to vector<8x512xf32>
      %24 = arith.addf %21, %23 : vector<8x512xf32>
      %cst_20 = arith.constant 2.000000e-01 : f32
      %25 = vector.broadcast %cst_20 : f32 to vector<8x512xf32>
      %26 = arith.mulf %25, %24 : vector<8x512xf32>
      %27 = arith.maximumf %24, %26 : vector<8x512xf32>
      %28 = arith.truncf %27 : vector<8x512xf32> to vector<8x512xbf16>
      %c0_21 = arith.constant 0 : index
      %c0_22 = arith.constant 0 : index
      %29 = vector.load %arg7[%c0_21, %c0_22] : memref<512x512xbf16, #tpu.memory_space<vmem>>, vector<512x512xbf16>
      %cst_23 = arith.constant dense<0.000000e+00> : vector<8x512xf32>
      %30 = tpu.matmul %28, %29, %cst_23 {dimension_numbers = #tpu.dot_dimension_numbers<[1], [0], [0], [1], [0, 0, 1, 1], [], []>} : vector<8x512xbf16>, vector<512x512xbf16>, vector<8x512xf32> -> vector<8x512xf32>
      %c0_24 = arith.constant 0 : index
      %c0_25 = arith.constant 0 : index
      %31 = vector.load %arg8[%c0_24, %c0_25] : memref<1x512xf32, #tpu.memory_space<vmem>>, vector<1x512xf32>
      %32 = vector.broadcast %31 : vector<1x512xf32> to vector<8x512xf32>
      %33 = arith.addf %30, %32 : vector<8x512xf32>
      %cst_26 = arith.constant 2.000000e-01 : f32
      %34 = vector.broadcast %cst_26 : f32 to vector<8x512xf32>
      %35 = arith.mulf %34, %33 : vector<8x512xf32>
      %36 = arith.maximumf %33, %35 : vector<8x512xf32>
      %37 = arith.truncf %36 : vector<8x512xf32> to vector<8x512xbf16>
      %c0_27 = arith.constant 0 : index
      %c0_28 = arith.constant 0 : index
      %38 = vector.load %arg9[%c0_27, %c0_28] : memref<512x128xbf16, #tpu.memory_space<vmem>>, vector<512x128xbf16>
      %cst_29 = arith.constant dense<0.000000e+00> : vector<8x128xf32>
      %39 = tpu.matmul %37, %38, %cst_29 {dimension_numbers = #tpu.dot_dimension_numbers<[1], [0], [0], [1], [0, 0, 1, 1], [], []>} : vector<8x512xbf16>, vector<512x128xbf16>, vector<8x128xf32> -> vector<8x128xf32>
      %c0_30 = arith.constant 0 : index
      %c0_31 = arith.constant 0 : index
      %40 = vector.load %arg10[%c0_30, %c0_31] : memref<1x128xf32, #tpu.memory_space<vmem>>, vector<1x128xf32>
      %41 = vector.broadcast %40 : vector<1x128xf32> to vector<8x128xf32>
      %42 = arith.addf %39, %41 : vector<8x128xf32>
      %cst_32 = arith.constant 2.000000e-01 : f32
      %43 = vector.broadcast %cst_32 : f32 to vector<8x128xf32>
      %44 = arith.mulf %43, %42 : vector<8x128xf32>
      %45 = arith.maximumf %42, %44 : vector<8x128xf32>
      %c0_33 = arith.constant 0 : index
      %c0_34 = arith.constant 0 : index
      %46 = vector.load %arg11[%c0_33, %c0_34] : memref<1x128xbf16, #tpu.memory_space<vmem>>, vector<1x128xbf16>
      %47 = arith.truncf %45 : vector<8x128xf32> to vector<8x128xbf16>
      %cst_35 = arith.constant dense<0.000000e+00> : vector<1x8xf32>
      %48 = tpu.matmul %46, %47, %cst_35 {dimension_numbers = #tpu.dot_dimension_numbers<[1], [1], [0], [0], [0, 0, 1, 0], [], []>} : vector<1x128xbf16>, vector<8x128xbf16>, vector<1x8xf32> -> vector<1x8xf32>
      %c0_36 = arith.constant 0 : index
      %c0_37 = arith.constant 0 : index
      %49 = vector.load %arg12[%c0_36, %c0_37] : memref<1x1xf32, #tpu.memory_space<vmem>>, vector<1x1xf32>
      %50 = vector.broadcast %49 : vector<1x1xf32> to vector<1x8xf32>
      %51 = arith.addf %48, %50 : vector<1x8xf32>
      %c0_38 = arith.constant 0 : index
      %c0_39 = arith.constant 0 : index
      %52 = vector.load %arg13[%c0_38, %c0_39] : memref<1x8xf32, #tpu.memory_space<vmem>>, vector<1x8xf32>
      tpu.vector_store %arg13[%c0_38, %c0_39], %51 {strides = array<i32>} : memref<1x8xf32, #tpu.memory_space<vmem>>, vector<1x8xf32>,
    } else {
    }
    return
  }
  func.func @transform_0(%arg0: i32, %arg1: i32) -> (i32, i32) {
    %c0_i32 = arith.constant 0 : i32
    return %arg0, %arg1 : i32, i32
  }
  func.func @transform_1(%arg0: i32, %arg1: i32) -> (i32, i32) {
    %c0_i32 = arith.constant 0 : i32
    %c0_i32_0 = arith.constant 0 : i32
    %c0_i32_1 = arith.constant 0 : i32
    return %c0_i32, %c0_i32_0 : i32, i32
  }
  func.func @transform_2(%arg0: i32, %arg1: i32) -> (i32, i32) {
    %c0_i32 = arith.constant 0 : i32
    %c0_i32_0 = arith.constant 0 : i32
    %c0_i32_1 = arith.constant 0 : i32
    return %c0_i32, %c0_i32_0 : i32, i32
  }
  func.func @transform_3(%arg0: i32, %arg1: i32) -> (i32, i32) {
    %c0_i32 = arith.constant 0 : i32
    %c0_i32_0 = arith.constant 0 : i32
    %c0_i32_1 = arith.constant 0 : i32
    return %c0_i32, %c0_i32_0 : i32, i32
  }
  func.func @transform_4(%arg0: i32, %arg1: i32) -> (i32, i32) {
    %c0_i32 = arith.constant 0 : i32
    %c0_i32_0 = arith.constant 0 : i32
    %c0_i32_1 = arith.constant 0 : i32
    return %c0_i32, %c0_i32_0 : i32, i32
  }
  func.func @transform_5(%arg0: i32, %arg1: i32) -> (i32, i32) {
    %c0_i32 = arith.constant 0 : i32
    %c0_i32_0 = arith.constant 0 : i32
    %c0_i32_1 = arith.constant 0 : i32
    return %c0_i32, %c0_i32_0 : i32, i32
  }
  func.func @transform_6(%arg0: i32, %arg1: i32) -> (i32, i32) {
    %c0_i32 = arith.constant 0 : i32
    %c0_i32_0 = arith.constant 0 : i32
    %c0_i32_1 = arith.constant 0 : i32
    return %c0_i32, %c0_i32_0 : i32, i32
  }
  func.func @transform_7(%arg0: i32, %arg1: i32) -> (i32, i32) {
    %c0_i32 = arith.constant 0 : i32
    %c0_i32_0 = arith.constant 0 : i32
    %c0_i32_1 = arith.constant 0 : i32
    return %c0_i32, %c0_i32_0 : i32, i32
  }
  func.func @transform_8(%arg0: i32, %arg1: i32) -> (i32, i32) {
    %c0_i32 = arith.constant 0 : i32
    %c0_i32_0 = arith.constant 0 : i32
    %c0_i32_1 = arith.constant 0 : i32
    return %c0_i32, %c0_i32_0 : i32, i32
  }
  func.func @transform_9(%arg0: i32, %arg1: i32) -> (i32, i32) {
    %c0_i32 = arith.constant 0 : i32
    %c0_i32_0 = arith.constant 0 : i32
    %c0_i32_1 = arith.constant 0 : i32
    return %c0_i32, %c0_i32_0 : i32, i32
  }
  func.func @transform_10(%arg0: i32, %arg1: i32) -> (i32, i32) {
    %c0_i32 = arith.constant 0 : i32
    %c0_i32_0 = arith.constant 0 : i32
    %c0_i32_1 = arith.constant 0 : i32
    return %c0_i32, %c0_i32_0 : i32, i32
  }
  func.func @transform_11(%arg0: i32, %arg1: i32) -> (i32, i32) {
    %c0_i32 = arith.constant 0 : i32
    %c0_i32_0 = arith.constant 0 : i32
    return %arg0, %c0_i32 : i32, i32
  }
}

module attributes {stable_mosaic.version = 11 : i64} {
  func.func @_mlp_kernel(%arg0: i32, %arg1: i32, %arg2: memref<8x128xbf16, #tpu.memory_space<vmem>>, %arg3: memref<128x512xbf16, #tpu.memory_space<vmem>>, %arg4: memref<1x512xf32, #tpu.memory_space<vmem>>, %arg5: memref<512x512xbf16, #tpu.memory_space<vmem>>, %arg6: memref<1x512xf32, #tpu.memory_space<vmem>>, %arg7: memref<512x512xbf16, #tpu.memory_space<vmem>>, %arg8: memref<1x512xf32, #tpu.memory_space<vmem>>, %arg9: memref<512x128xbf16, #tpu.memory_space<vmem>>, %arg10: memref<1x128xf32, #tpu.memory_space<vmem>>, %arg11: memref<1x128xbf16, #tpu.memory_space<vmem>>, %arg12: memref<1x1xf32, #tpu.memory_space<vmem>>, %arg13: memref<1x8xf32, #tpu.memory_space<vmem>>, %arg14: memref<8x512xf32, #tpu.memory_space<vmem>>) attributes {dimension_semantics = [#tpu.dimension_semantics<parallel>, #tpu.dimension_semantics<arbitrary>], iteration_bounds = array<i64: 1, 1>, scalar_prefetch = 0 : i64, scratch_operands = 1 : i64, tpu.core_type = #tpu.core_type<tc>, window_params = [{transform_indices = @transform_0, window_bounds = array<i64: 8, 128>}, {pipeline_mode = #tpu.pipeline_mode<synchronous>, transform_indices = @transform_1, window_bounds = array<i64: 128, 512>}, {pipeline_mode = #tpu.pipeline_mode<synchronous>, transform_indices = @transform_2, window_bounds = array<i64: 1, 512>}, {pipeline_mode = #tpu.pipeline_mode<synchronous>, transform_indices = @transform_3, window_bounds = array<i64: 512, 512>}, {pipeline_mode = #tpu.pipeline_mode<synchronous>, transform_indices = @transform_4, window_bounds = array<i64: 1, 512>}, {pipeline_mode = #tpu.pipeline_mode<synchronous>, transform_indices = @transform_5, window_bounds = array<i64: 512, 512>}, {pipeline_mode = #tpu.pipeline_mode<synchronous>, transform_indices = @transform_6, window_bounds = array<i64: 1, 512>}, {pipeline_mode = #tpu.pipeline_mode<synchronous>, transform_indices = @transform_7, window_bounds = array<i64: 512, 128>}, {pipeline_mode = #tpu.pipeline_mode<synchronous>, transform_indices = @transform_8, window_bounds = array<i64: 1, 128>}, {pipeline_mode = #tpu.pipeline_mode<synchronous>, transform_indices = @transform_9, window_bounds = array<i64: 1, 128>}, {pipeline_mode = #tpu.pipeline_mode<synchronous>, transform_indices = @transform_10, window_bounds = array<i64: 1, 1>}, {transform_indices = @transform_11, window_bounds = array<i64: 1, 8>}]} {
    %c0_i32 = arith.constant 0 : i32
    %0 = arith.cmpi eq, %arg1, %c0_i32 : i32
    %1 = arith.extui %0 : i1 to i32
    %c0_i32_0 = arith.constant 0 : i32
    %2 = arith.cmpi ne, %1, %c0_i32_0 : i32
    scf.if %2 {
      %cst_10 = arith.constant 0.000000e+00 : f32
      %12 = vector.broadcast %cst_10 : f32 to vector<8x512xf32>
      %c0_11 = arith.constant 0 : index
      %c0_12 = arith.constant 0 : index
      %13 = vector.load %arg14[%c0_11, %c0_12] : memref<8x512xf32, #tpu.memory_space<vmem>>, vector<8x512xf32>
      tpu.vector_store %arg14[%c0_11, %c0_12], %12 {strides = array<i32>} : memref<8x512xf32, #tpu.memory_space<vmem>>, vector<8x512xf32>,
    } else {
    }
    %c0 = arith.constant 0 : index
    %c0_1 = arith.constant 0 : index
    %3 = vector.load %arg14[%c0, %c0_1] : memref<8x512xf32, #tpu.memory_space<vmem>>, vector<8x512xf32>
    %c0_2 = arith.constant 0 : index
    %c0_3 = arith.constant 0 : index
    %4 = vector.load %arg2[%c0_2, %c0_3] : memref<8x128xbf16, #tpu.memory_space<vmem>>, vector<8x128xbf16>
    %c0_4 = arith.constant 0 : index
    %c0_5 = arith.constant 0 : index
    %5 = vector.load %arg3[%c0_4, %c0_5] : memref<128x512xbf16, #tpu.memory_space<vmem>>, vector<128x512xbf16>
    %cst = arith.constant dense<0.000000e+00> : vector<8x512xf32>
    %6 = tpu.matmul %4, %5, %cst {dimension_numbers = #tpu.dot_dimension_numbers<[1], [0], [0], [1], [0, 0, 1, 1], [], []>} : vector<8x128xbf16>, vector<128x512xbf16>, vector<8x512xf32> -> vector<8x512xf32>
    %7 = arith.addf %3, %6 : vector<8x512xf32>
    %c0_6 = arith.constant 0 : index
    %c0_7 = arith.constant 0 : index
    %8 = vector.load %arg14[%c0_6, %c0_7] : memref<8x512xf32, #tpu.memory_space<vmem>>, vector<8x512xf32>
    tpu.vector_store %arg14[%c0_6, %c0_7], %7 {strides = array<i32>} : memref<8x512xf32, #tpu.memory_space<vmem>>, vector<8x512xf32>,
    %c0_i32_8 = arith.constant 0 : i32
    %9 = arith.cmpi eq, %arg1, %c0_i32_8 : i32
    %10 = arith.extui %9 : i1 to i32
    %c0_i32_9 = arith.constant 0 : i32
    %11 = arith.cmpi ne, %10, %c0_i32_9 : i32
    scf.if %11 {
      %c0_10 = arith.constant 0 : index
      %c0_11 = arith.constant 0 : index
      %12 = vector.load %arg14[%c0_10, %c0_11] : memref<8x512xf32, #tpu.memory_space<vmem>>, vector<8x512xf32>
      %c0_12 = arith.constant 0 : index
      %c0_13 = arith.constant 0 : index
      %13 = vector.load %arg4[%c0_12, %c0_13] : memref<1x512xf32, #tpu.memory_space<vmem>>, vector<1x512xf32>
      %14 = vector.broadcast %13 : vector<1x512xf32> to vector<8x512xf32>
      %15 = arith.addf %12, %14 : vector<8x512xf32>
      %cst_14 = arith.constant 2.000000e-01 : f32
      %16 = vector.broadcast %cst_14 : f32 to vector<8x512xf32>
      %17 = arith.mulf %16, %15 : vector<8x512xf32>
      %18 = arith.maximumf %15, %17 : vector<8x512xf32>
      %19 = arith.truncf %18 : vector<8x512xf32> to vector<8x512xbf16>
      %c0_15 = arith.constant 0 : index
      %c0_16 = arith.constant 0 : index
      %20 = vector.load %arg5[%c0_15, %c0_16] : memref<512x512xbf16, #tpu.memory_space<vmem>>, vector<512x512xbf16>
      %cst_17 = arith.constant dense<0.000000e+00> : vector<8x512xf32>
      %21 = tpu.matmul %19, %20, %cst_17 {dimension_numbers = #tpu.dot_dimension_numbers<[1], [0], [0], [1], [0, 0, 1, 1], [], []>} : vector<8x512xbf16>, vector<512x512xbf16>, vector<8x512xf32> -> vector<8x512xf32>
      %c0_18 = arith.constant 0 : index
      %c0_19 = arith.constant 0 : index
      %22 = vector.load %arg6[%c0_18, %c0_19] : memref<1x512xf32, #tpu.memory_space<vmem>>, vector<1x512xf32>
      %23 = vector.broadcast %22 : vector<1x512xf32> to vector<8x512xf32>
      %24 = arith.addf %21, %23 : vector<8x512xf32>
      %cst_20 = arith.constant 2.000000e-01 : f32
      %25 = vector.broadcast %cst_20 : f32 to vector<8x512xf32>
      %26 = arith.mulf %25, %24 : vector<8x512xf32>
      %27 = arith.maximumf %24, %26 : vector<8x512xf32>
      %28 = arith.truncf %27 : vector<8x512xf32> to vector<8x512xbf16>
      %c0_21 = arith.constant 0 : index
      %c0_22 = arith.constant 0 : index
      %29 = vector.load %arg7[%c0_21, %c0_22] : memref<512x512xbf16, #tpu.memory_space<vmem>>, vector<512x512xbf16>
      %cst_23 = arith.constant dense<0.000000e+00> : vector<8x512xf32>
      %30 = tpu.matmul %28, %29, %cst_23 {dimension_numbers = #tpu.dot_dimension_numbers<[1], [0], [0], [1], [0, 0, 1, 1], [], []>} : vector<8x512xbf16>, vector<512x512xbf16>, vector<8x512xf32> -> vector<8x512xf32>
      %c0_24 = arith.constant 0 : index
      %c0_25 = arith.constant 0 : index
      %31 = vector.load %arg8[%c0_24, %c0_25] : memref<1x512xf32, #tpu.memory_space<vmem>>, vector<1x512xf32>
      %32 = vector.broadcast %31 : vector<1x512xf32> to vector<8x512xf32>
      %33 = arith.addf %30, %32 : vector<8x512xf32>
      %cst_26 = arith.constant 2.000000e-01 : f32
      %34 = vector.broadcast %cst_26 : f32 to vector<8x512xf32>
      %35 = arith.mulf %34, %33 : vector<8x512xf32>
      %36 = arith.maximumf %33, %35 : vector<8x512xf32>
      %37 = arith.truncf %36 : vector<8x512xf32> to vector<8x512xbf16>
      %c0_27 = arith.constant 0 : index
      %c0_28 = arith.constant 0 : index
      %38 = vector.load %arg9[%c0_27, %c0_28] : memref<512x128xbf16, #tpu.memory_space<vmem>>, vector<512x128xbf16>
      %cst_29 = arith.constant dense<0.000000e+00> : vector<8x128xf32>
      %39 = tpu.matmul %37, %38, %cst_29 {dimension_numbers = #tpu.dot_dimension_numbers<[1], [0], [0], [1], [0, 0, 1, 1], [], []>} : vector<8x512xbf16>, vector<512x128xbf16>, vector<8x128xf32> -> vector<8x128xf32>
      %c0_30 = arith.constant 0 : index
      %c0_31 = arith.constant 0 : index
      %40 = vector.load %arg10[%c0_30, %c0_31] : memref<1x128xf32, #tpu.memory_space<vmem>>, vector<1x128xf32>
      %41 = vector.broadcast %40 : vector<1x128xf32> to vector<8x128xf32>
      %42 = arith.addf %39, %41 : vector<8x128xf32>
      %cst_32 = arith.constant 2.000000e-01 : f32
      %43 = vector.broadcast %cst_32 : f32 to vector<8x128xf32>
      %44 = arith.mulf %43, %42 : vector<8x128xf32>
      %45 = arith.maximumf %42, %44 : vector<8x128xf32>
      %c0_33 = arith.constant 0 : index
      %c0_34 = arith.constant 0 : index
      %46 = vector.load %arg11[%c0_33, %c0_34] : memref<1x128xbf16, #tpu.memory_space<vmem>>, vector<1x128xbf16>
      %47 = arith.truncf %45 : vector<8x128xf32> to vector<8x128xbf16>
      %cst_35 = arith.constant dense<0.000000e+00> : vector<1x8xf32>
      %48 = tpu.matmul %46, %47, %cst_35 {dimension_numbers = #tpu.dot_dimension_numbers<[1], [1], [0], [0], [0, 0, 1, 0], [], []>} : vector<1x128xbf16>, vector<8x128xbf16>, vector<1x8xf32> -> vector<1x8xf32>
      %c0_36 = arith.constant 0 : index
      %c0_37 = arith.constant 0 : index
      %49 = vector.load %arg12[%c0_36, %c0_37] : memref<1x1xf32, #tpu.memory_space<vmem>>, vector<1x1xf32>
      %50 = vector.broadcast %49 : vector<1x1xf32> to vector<1x8xf32>
      %51 = arith.addf %48, %50 : vector<1x8xf32>
      %c0_38 = arith.constant 0 : index
      %c0_39 = arith.constant 0 : index
      %52 = vector.load %arg13[%c0_38, %c0_39] : memref<1x8xf32, #tpu.memory_space<vmem>>, vector<1x8xf32>
      tpu.vector_store %arg13[%c0_38, %c0_39], %51 {strides = array<i32>} : memref<1x8xf32, #tpu.memory_space<vmem>>, vector<1x8xf32>,
    } else {
    }
    return
  }
  func.func @transform_0(%arg0: i32, %arg1: i32) -> (i32, i32) {
    %c0_i32 = arith.constant 0 : i32
    return %arg0, %arg1 : i32, i32
  }
  func.func @transform_1(%arg0: i32, %arg1: i32) -> (i32, i32) {
    %c0_i32 = arith.constant 0 : i32
    %c0_i32_0 = arith.constant 0 : i32
    %c0_i32_1 = arith.constant 0 : i32
    return %c0_i32, %c0_i32_0 : i32, i32
  }
  func.func @transform_2(%arg0: i32, %arg1: i32) -> (i32, i32) {
    %c0_i32 = arith.constant 0 : i32
    %c0_i32_0 = arith.constant 0 : i32
    %c0_i32_1 = arith.constant 0 : i32
    return %c0_i32, %c0_i32_0 : i32, i32
  }
  func.func @transform_3(%arg0: i32, %arg1: i32) -> (i32, i32) {
    %c0_i32 = arith.constant 0 : i32
    %c0_i32_0 = arith.constant 0 : i32
    %c0_i32_1 = arith.constant 0 : i32
    return %c0_i32, %c0_i32_0 : i32, i32
  }
  func.func @transform_4(%arg0: i32, %arg1: i32) -> (i32, i32) {
    %c0_i32 = arith.constant 0 : i32
    %c0_i32_0 = arith.constant 0 : i32
    %c0_i32_1 = arith.constant 0 : i32
    return %c0_i32, %c0_i32_0 : i32, i32
  }
  func.func @transform_5(%arg0: i32, %arg1: i32) -> (i32, i32) {
    %c0_i32 = arith.constant 0 : i32
    %c0_i32_0 = arith.constant 0 : i32
    %c0_i32_1 = arith.constant 0 : i32
    return %c0_i32, %c0_i32_0 : i32, i32
  }
  func.func @transform_6(%arg0: i32, %arg1: i32) -> (i32, i32) {
    %c0_i32 = arith.constant 0 : i32
    %c0_i32_0 = arith.constant 0 : i32
    %c0_i32_1 = arith.constant 0 : i32
    return %c0_i32, %c0_i32_0 : i32, i32
  }
  func.func @transform_7(%arg0: i32, %arg1: i32) -> (i32, i32) {
    %c0_i32 = arith.constant 0 : i32
    %c0_i32_0 = arith.constant 0 : i32
    %c0_i32_1 = arith.constant 0 : i32
    return %c0_i32, %c0_i32_0 : i32, i32
  }
  func.func @transform_8(%arg0: i32, %arg1: i32) -> (i32, i32) {
    %c0_i32 = arith.constant 0 : i32
    %c0_i32_0 = arith.constant 0 : i32
    %c0_i32_1 = arith.constant 0 : i32
    return %c0_i32, %c0_i32_0 : i32, i32
  }
  func.func @transform_9(%arg0: i32, %arg1: i32) -> (i32, i32) {
    %c0_i32 = arith.constant 0 : i32
    %c0_i32_0 = arith.constant 0 : i32
    %c0_i32_1 = arith.constant 0 : i32
    return %c0_i32, %c0_i32_0 : i32, i32
  }
  func.func @transform_10(%arg0: i32, %arg1: i32) -> (i32, i32) {
    %c0_i32 = arith.constant 0 : i32
    %c0_i32_0 = arith.constant 0 : i32
    %c0_i32_1 = arith.constant 0 : i32
    return %c0_i32, %c0_i32_0 : i32, i32
  }
  func.func @transform_11(%arg0: i32, %arg1: i32) -> (i32, i32) {
    %c0_i32 = arith.constant 0 : i32
    %c0_i32_0 = arith.constant 0 : i32
    return %arg0, %c0_i32 : i32, i32
  }
}

</mosaic_0001>

<bundles_post_ra>
// kernel: discriminator_cgan_forward.1
= control target key start
LH: loop header
LB: loop body
LE: loop exit
PB: predicated region body
PF: predicated region fallthrough
CT: control target
= control target key end

     0   :  { %s3941_s0 = inlined_call_operand.vmem [shape: bf16[8,128], index: 0, kind: input, shape index: {}]   ;;  %s3942_s1 = inlined_call_operand.hbm [shape: bf16[128,512], index: 1, kind: input, shape index: {}]   ;;  %s3943_s2 = inlined_call_operand.vmem [shape: f32[1,512], index: 2, kind: input, shape index: {}]   ;;  %s3944_s3 = inlined_call_operand.hbm [shape: bf16[512,512], index: 3, kind: input, shape index: {}]   ;;  %s3945_s4 = inlined_call_operand.vmem [shape: f32[1,512], index: 4, kind: input, shape index: {}]   ;;  %s3946_s5 = inlined_call_operand.hbm [shape: bf16[512,512], index: 5, kind: input, shape index: {}]   ;;  %s3947_s6 = inlined_call_operand.vmem [shape: f32[1,512], index: 6, kind: input, shape index: {}]   ;;  %s3948_s7 = inlined_call_operand.hbm [shape: bf16[512,128], index: 7, kind: input, shape index: {}]   ;;  %s3949_s8 = inlined_call_operand.vmem [shape: f32[1,128], index: 8, kind: input, shape index: {}]   ;;  %s3950_s9 = inlined_call_operand.vmem [shape: bf16[1,128], index: 9, kind: input, shape index: {}]   ;;  %s3951_s10 = inlined_call_operand.<no memory space> [shape: f32[1,1], index: 10, kind: input, shape index: {}]   ;;  %s3952_s11 = inlined_call_operand.vmem [shape: f32[1,8], index: 11, kind: output, shape index: {}]  }
   0x1   :  { %v16_v0 = vstv %s3951_s10 }
   0x2   :  { %17 = vst [vmem:[#allocation3] sm:$0x1] %v16_v0 }
   0x3   :  { %18 = vsyncpa [#allocation5], 0 }
   0x4   :  { %19 = vsyncpa [#allocation7], 0 }
   0x5   :  { %20 = vsyncpa [#allocation10], 0  ;;  %s3741_s19 = smov [#allocation6]   ;;  %s3742_s21 = smov [#allocation4]  }
   0x6   :  { %s42_s20 = sshll.u32 %s3741_s19, 4  ;;  %s28_s22 = sshll.u32 %s3742_s21, 4  ;;  %s43_s20 = int_to_ptr.vmem [resolvable:$true] %s42_s20  ;;  %s3815_s22 = int_to_ptr.vmem [resolvable:$true] %s28_s22 }
   0x7   :  { %s3647_s25 = scalar_lea.hbm %s3944_s3, 16384 }
   0x8   :  { %p3648_p0 = scmp.ne.s32.totalorder %s3944_s3, %s3647_s25  ;;  %p3651_p1 = scmp.lt.u32.totalorder %s3647_s25, %s3944_s3 }
   0xa   :  { %p3653_p2 = pnand %p3651_p1, %p3648_p0 }
   0xc   :  { %3656 = shalt.err (!%p3653_p2)
}
   0xd   :  { %s3657_s29 = scalar_lea.vmem %s43_s20, 16384  ;;  %p3662_p4 = scmp.lt.s32.totalorder %s43_s20, %s43_s20 }
   0xe   :  { %p3658_p3 = scmp.ne.s32.totalorder %s43_s20, %s3657_s29  ;;  %p3663_p5 = scmp.lt.s32.totalorder %s3657_s29, %s3657_s29 }
  0x10   :  { %p3664_p6 = por %p3663_p5, %p3662_p4 }
  0x12   :  { %p3665_p7 = pnand %p3664_p6, %p3658_p3 }
  0x14   :  { %3668 = shalt.err (!%p3665_p7)
}
  0x15   :  { %s3743_s30 = smov 256   ;;  %s3744_s12 = smov 16  }
  0x16   :  { %48 = dma.hbm_to_vmem [thread:$0]  %s3944_s3, 16384, %s43_s20, [#allocation7], %s3743_s30, %s3743_s30, %s3744_s12  }
  0x17   :  { %s3669_s17 = scalar_lea.hbm %s3942_s1, 4096 }
  0x18   :  { %p3670_p8 = scmp.ne.s32.totalorder %s3942_s1, %s3669_s17  ;;  %p3673_p9 = scmp.lt.u32.totalorder %s3669_s17, %s3942_s1 }
  0x1a   :  { %p3675_p10 = pnand %p3673_p9, %p3670_p8 }
  0x1c   :  { %3678 = shalt.err (!%p3675_p10)
}
  0x1d   :  { %s3679_s24 = scalar_lea.vmem %s3815_s22, 4096  ;;  %p3684_p12 = scmp.lt.s32.totalorder %s3815_s22, %s3815_s22 }
  0x1e   :  { %p3680_p11 = scmp.ne.s32.totalorder %s3815_s22, %s3679_s24  ;;  %p3685_p13 = scmp.lt.s32.totalorder %s3679_s24, %s3679_s24 }
  0x20   :  { %p3686_p0 = por %p3685_p13, %p3684_p12 }
  0x22   :  { %p3687_p1 = pnand %p3686_p0, %p3680_p11 }
  0x24   :  { %3690 = shalt.err (!%p3687_p1)
}
  0x25   :  { %34 = dma.hbm_to_vmem [thread:$0]  %s3942_s1, 4096, %s3815_s22, [#allocation5], %s3743_s30, %s3743_s30, %s3744_s12  }
  0x26   :  { %s3745_s25 = smov [#allocation8]   ;;  %s3746_s27 = smov [#allocation9]  }
  0x27   :  { %s56_s26 = sshll.u32 %s3745_s25, 4  ;;  %s70_s10 = sshll.u32 %s3746_s27, 4  ;;  %s57_s26 = int_to_ptr.vmem [resolvable:$true] %s56_s26  ;;  %s3852_s10 = int_to_ptr.vmem [resolvable:$true] %s70_s10 }
  0x28   :  { %s3691_s13 = scalar_lea.hbm %s3946_s5, 16384 }
  0x29   :  { %p3692_p2 = scmp.ne.s32.totalorder %s3946_s5, %s3691_s13  ;;  %p3695_p3 = scmp.lt.u32.totalorder %s3691_s13, %s3946_s5 }
  0x2b   :  { %p3697_p4 = pnand %p3695_p3, %p3692_p2 }
  0x2d   :  { %3700 = shalt.err (!%p3697_p4)
}
  0x2e   :  { %s3701_s1 = scalar_lea.vmem %s57_s26, 16384  ;;  %p3706_p6 = scmp.lt.s32.totalorder %s57_s26, %s57_s26 }
  0x2f   :  { %p3702_p5 = scmp.ne.s32.totalorder %s57_s26, %s3701_s1  ;;  %p3707_p7 = scmp.lt.s32.totalorder %s3701_s1, %s3701_s1 }
  0x31   :  { %p3708_p8 = por %p3707_p7, %p3706_p6 }
  0x33   :  { %p3709_p9 = pnand %p3708_p8, %p3702_p5 }
  0x35   :  { %3712 = shalt.err (!%p3709_p9)
}
  0x36   :  { %62 = dma.hbm_to_vmem [thread:$0]  %s3946_s5, 16384, %s57_s26, [#allocation7], %s3743_s30, %s3743_s30, %s3744_s12  }
  0x37   :  { %s3713_s23 = scalar_lea.hbm %s3948_s7, 4096 }
  0x38   :  { %p3714_p10 = scmp.ne.s32.totalorder %s3948_s7, %s3713_s23  ;;  %p3717_p11 = scmp.lt.u32.totalorder %s3713_s23, %s3948_s7 }
  0x3a   :  { %p3719_p12 = pnand %p3717_p11, %p3714_p10 }
  0x3c   :  { %3722 = shalt.err (!%p3719_p12)
}
  0x3d   :  { %s3723_s27 = scalar_lea.vmem %s3852_s10, 4096  ;;  %p3728_p0 = scmp.lt.s32.totalorder %s3852_s10, %s3852_s10 }
  0x3e   :  { %p3724_p13 = scmp.ne.s32.totalorder %s3852_s10, %s3723_s27  ;;  %p3729_p1 = scmp.lt.s32.totalorder %s3723_s27, %s3723_s27 }
  0x40   :  { %p3730_p2 = por %p3729_p1, %p3728_p0 }
  0x42   :  { %p3731_p3 = pnand %p3730_p2, %p3724_p13 }
  0x44   :  { %3734 = shalt.err (!%p3731_p3)
}
  0x45   :  { %s3747_s5 = smov 64   ;;  %s3748_s30 = smov 4  }
  0x46   :  { %76 = dma.hbm_to_vmem [thread:$0]  %s3948_s7, 4096, %s3852_s10, [#allocation10], %s3747_s5, %s3747_s5, %s3748_s30  }
  0x47   :  { %3735 = dma.done.wait [#allocation5], 4096  }
  0x48   :  { %3736 = vsyncadd [#allocation5], 4294963200 }
  0x49   :  { %3737 = dma.done.wait [#allocation7], 32768  }
  0x4a   :  { %3738 = vsyncadd [#allocation7], 4294934528 }
  0x4b   :  { %3739 = dma.done.wait [#allocation10], 4096  }
  0x4c   :  { %3740 = vsyncadd [#allocation10], 4294963200  ;;  %v3749_v1 = vmov 0   ;;  %v3183_v2 = vld [vmem:[#allocation4 + $0x4] ss:$16 sps:$4 sm:$0xff]   ;;  %vm3751_vm0 = vmmov 0  }
  0x4d   :  { %333 = vmatprep.mubr.bf16.mxu0 %v3749_v1  ;;  %374 = vmatprep.mubr.bf16.mxu1 %v3749_v1  ;;  %v3185_v3 = vld [vmem:[#allocation4] ss:$16 sps:$4 sm:$0xff]   ;;  %v3186_v4 = vld [vmem:[#allocation4 + $0x24] ss:$16 sps:$4 sm:$0xff]   ;;  %v3207_v11 = vld [vmem:[#allocation4 + $0xc] ss:$16 sps:$4 sm:$0xff]  }
  0x4e   :  { %3182 = vset.pattern.permute.xlu0 %v3749_v1  ;;  %301 = vmatprep.subr.bf16.mxu0 %v3183_v2  ;;  %v3188_v5 = vld [vmem:[#allocation4 + $0x20] ss:$16 sps:$4 sm:$0xff]   ;;  %v3189_v6 = vld [vmem:[#allocation4 + $0x44] ss:$16 sps:$4 sm:$0xff]   ;;  %v3209_v12 = vld [vmem:[#allocation4 + $0x8] ss:$16 sps:$4 sm:$0xff]  }
  0x4f   :  { %302 = vmatpush1.bf16.msra.mxu0 %v3185_v3  ;;  %v3191_v7 = vld [vmem:[#allocation4 + $0x40] ss:$16 sps:$4 sm:$0xff]   ;;  %v3192_v8 = vld [vmem:[#allocation4 + $0x64] ss:$16 sps:$4 sm:$0xff]   ;;  %342 = vmatprep.subr.bf16.mxu1 %v3207_v11  ;;  %v3210_v13 = vld [vmem:[#allocation4 + $0x2c] ss:$16 sps:$4 sm:$0xff]  }
  0x50   :  { %303 = vmatprep.subr.bf16.mxu0 %v3186_v4  ;;  %v3194_v9 = vld [vmem:[#allocation4 + $0x60] ss:$16 sps:$4 sm:$0xff]   ;;  %v3195_v10 = vld [vmem:[#allocation4 + $0x84] ss:$16 sps:$4 sm:$0xff]   ;;  %343 = vmatpush1.bf16.msra.mxu1 %v3209_v12  ;;  %v3212_v15 = vld [vmem:[#allocation4 + $0x28] ss:$16 sps:$4 sm:$0xff]  }
  0x51   :  { %v3197_v14 = vld [vmem:[#allocation4 + $0x80] ss:$16 sps:$4 sm:$0xff]   ;;  %344 = vmatprep.subr.bf16.mxu1 %v3210_v13  ;;  %v3213_v16 = vld [vmem:[#allocation4 + $0x4c] ss:$16 sps:$4 sm:$0xff]   ;;  %v3198_v17 = vld [vmem:[#allocation4 + $0xa4] ss:$16 sps:$4 sm:$0xff]  }
  0x52   :  { %v3200_v18 = vld [vmem:[#allocation4 + $0xa0] ss:$16 sps:$4 sm:$0xff]   ;;  %v3215_v19 = vld [vmem:[#allocation4 + $0x48] ss:$16 sps:$4 sm:$0xff]   ;;  %v3216_v20 = vld [vmem:[#allocation4 + $0x6c] ss:$16 sps:$4 sm:$0xff]  }
  0x53   :  { %304 = vmatpush1.bf16.msra.mxu0 %v3188_v5  ;;  %v3201_v21 = vld [vmem:[#allocation4 + $0xc4] ss:$16 sps:$4 sm:$0xff]   ;;  %v3203_v22 = vld [vmem:[#allocation4 + $0xc0] ss:$16 sps:$4 sm:$0xff]   ;;  %v3218_v23 = vld [vmem:[#allocation4 + $0x68] ss:$16 sps:$4 sm:$0xff]  }
  0x54   :  { %305 = vmatprep.subr.bf16.mxu0 %v3189_v6  ;;  %345 = vmatpush1.bf16.msra.mxu1 %v3212_v15  ;;  %v3219_v24 = vld [vmem:[#allocation4 + $0x8c] ss:$16 sps:$4 sm:$0xff]   ;;  %v3204_v25 = vld [vmem:[#allocation4 + $0xe4] ss:$16 sps:$4 sm:$0xff]   ;;  %v3206_v26 = vld [vmem:[#allocation4 + $0xe0] ss:$16 sps:$4 sm:$0xff]  }
  0x55   :  { %346 = vmatprep.subr.bf16.mxu1 %v3213_v16  ;;  %v3221_v27 = vld [vmem:[#allocation4 + $0x88] ss:$16 sps:$4 sm:$0xff]   ;;  %v3222_v28 = vld [vmem:[#allocation4 + $0xac] ss:$16 sps:$4 sm:$0xff]   ;;  %v3233_v29 = vld [vmem:[#allocation6 + $0x4] ss:$16 sps:$4 sm:$0xff]  }
  0x56   :  { %v108_v30 = vld [vmem:[%s3941_s0] sm:$0xf]  ;;  %v3224_v31 = vld [vmem:[#allocation4 + $0xa8] ss:$16 sps:$4 sm:$0xff]   ;;  %v3239_v34 = vld [vmem:[#allocation6 + $0x24] ss:$16 sps:$4 sm:$0xff]  }
  0x57   :  { %306 = vmatpush1.bf16.msra.mxu0 %v3191_v7  ;;  %v3225_v32 = vld [vmem:[#allocation4 + $0xcc] ss:$16 sps:$4 sm:$0xff]   ;;  %v3231_v33 = vld [vmem:[#allocation6] ss:$16 sps:$4 sm:$0xff]   ;;  %v3227_v35 = vld [vmem:[#allocation4 + $0xc8] ss:$16 sps:$4 sm:$0xff]  }
  0x58   :  { %307 = vmatprep.subr.bf16.mxu0 %v3192_v8  ;;  %347 = vmatpush1.bf16.msra.mxu1 %v3215_v19  ;;  %v3228_v36 = vld [vmem:[#allocation4 + $0xec] ss:$16 sps:$4 sm:$0xff]   ;;  %v3237_v37 = vld [vmem:[#allocation6 + $0x20] ss:$16 sps:$4 sm:$0xff]   ;;  %v3245_v38 = vld [vmem:[#allocation6 + $0x44] ss:$16 sps:$4 sm:$0xff]  }
  0x59   :  { %348 = vmatprep.subr.bf16.mxu1 %v3216_v20  ;;  %v3230_v39 = vld [vmem:[#allocation4 + $0xe8] ss:$16 sps:$4 sm:$0xff]   ;;  %v3236_v40 = vld [vmem:[#allocation6 + $0xc] ss:$16 sps:$4 sm:$0xff]   ;;  %v3243_v41 = vld [vmem:[#allocation6 + $0x40] ss:$16 sps:$4 sm:$0xff]  }
  0x5a   :  { %v3251_v42 = vld [vmem:[#allocation6 + $0x64] ss:$16 sps:$4 sm:$0xff]   ;;  %v3234_v43 = vld [vmem:[#allocation6 + $0x8] ss:$16 sps:$4 sm:$0xff]   ;;  %v3242_v44 = vld [vmem:[#allocation6 + $0x2c] ss:$16 sps:$4 sm:$0xff]  }
  0x5b   :  { %308 = vmatpush1.bf16.msra.mxu0 %v3194_v9  ;;  %v3249_v45 = vld [vmem:[#allocation6 + $0x60] ss:$16 sps:$4 sm:$0xff]   ;;  %v3257_v46 = vld [vmem:[#allocation6 + $0x84] ss:$16 sps:$4 sm:$0xff]   ;;  %v3240_v47 = vld [vmem:[#allocation6 + $0x28] ss:$16 sps:$4 sm:$0xff]  }
  0x5c   :  { %309 = vmatprep.subr.bf16.mxu0 %v3195_v10  ;;  %349 = vmatpush1.bf16.msra.mxu1 %v3218_v23  ;;  %v3248_v48 = vld [vmem:[#allocation6 + $0x4c] ss:$16 sps:$4 sm:$0xff]   ;;  %v3255_v49 = vld [vmem:[#allocation6 + $0x80] ss:$16 sps:$4 sm:$0xff]   ;;  %v3263_v50 = vld [vmem:[#allocation6 + $0xa4] ss:$16 sps:$4 sm:$0xff]  }
  0x5d   :  { %350 = vmatprep.subr.bf16.mxu1 %v3219_v24  ;;  %v3246_v51 = vld [vmem:[#allocation6 + $0x48] ss:$16 sps:$4 sm:$0xff]   ;;  %v3254_v52 = vld [vmem:[#allocation6 + $0x6c] ss:$16 sps:$4 sm:$0xff]   ;;  %v3261_v53 = vld [vmem:[#allocation6 + $0xa0] ss:$16 sps:$4 sm:$0xff]  }
  0x5e   :  { %v3269_v54 = vld [vmem:[#allocation6 + $0xc4] ss:$16 sps:$4 sm:$0xff]   ;;  %v3252_v55 = vld [vmem:[#allocation6 + $0x68] ss:$16 sps:$4 sm:$0xff]   ;;  %v3260_v56 = vld [vmem:[#allocation6 + $0x8c] ss:$16 sps:$4 sm:$0xff]  }
  0x5f   :  { %310 = vmatpush1.bf16.msra.mxu0 %v3197_v14  ;;  %v3267_v57 = vld [vmem:[#allocation6 + $0xc0] ss:$16 sps:$4 sm:$0xff]   ;;  %v3275_v58 = vld [vmem:[#allocation6 + $0xe4] ss:$16 sps:$4 sm:$0xff]   ;;  %v3258_v59 = vld [vmem:[#allocation6 + $0x88] ss:$16 sps:$4 sm:$0xff]  }
  0x60   :  { %311 = vmatprep.subr.bf16.mxu0 %v3198_v17  ;;  %351 = vmatpush1.bf16.msra.mxu1 %v3221_v27  ;;  %v3266_v60 = vld [vmem:[#allocation6 + $0xac] ss:$16 sps:$4 sm:$0xff]   ;;  %v3273_v61 = vld [vmem:[#allocation6 + $0xe0] ss:$16 sps:$4 sm:$0xff]   ;;  %v3281_v62 = vld [vmem:[#allocation6 + $0x104] ss:$16 sps:$4 sm:$0xff]  }
  0x61   :  { %352 = vmatprep.subr.bf16.mxu1 %v3222_v28  ;;  %v3264_v63 = vld [vmem:[#allocation6 + $0xa8] ss:$16 sps:$4 sm:$0xff]   ;;  %v3272_v0 = vld [vmem:[#allocation6 + $0xcc] ss:$16 sps:$4 sm:$0xff]   ;;  %v3279_v1 = vld [vmem:[#allocation6 + $0x100] ss:$16 sps:$4 sm:$0xff]  }
  0x62   :  { %v3287_v2 = vld [vmem:[#allocation6 + $0x124] ss:$16 sps:$4 sm:$0xff]   ;;  %v3270_v3 = vld [vmem:[#allocation6 + $0xc8] ss:$16 sps:$4 sm:$0xff]   ;;  %v3278_v4 = vld [vmem:[#allocation6 + $0xec] ss:$16 sps:$4 sm:$0xff]  }
  0x63   :  { %312 = vmatpush1.bf16.msra.mxu0 %v3200_v18  ;;  %v3285_v5 = vld [vmem:[#allocation6 + $0x120] ss:$16 sps:$4 sm:$0xff]   ;;  %v3293_v6 = vld [vmem:[#allocation6 + $0x144] ss:$16 sps:$4 sm:$0xff]   ;;  %v3276_v7 = vld [vmem:[#allocation6 + $0xe8] ss:$16 sps:$4 sm:$0xff]  }
  0x64   :  { %313 = vmatprep.subr.bf16.mxu0 %v3201_v21  ;;  %353 = vmatpush1.bf16.msra.mxu1 %v3224_v31  ;;  %v3284_v8 = vld [vmem:[#allocation6 + $0x10c] ss:$16 sps:$4 sm:$0xff]   ;;  %v3291_v9 = vld [vmem:[#allocation6 + $0x140] ss:$16 sps:$4 sm:$0xff]   ;;  %v3299_v10 = vld [vmem:[#allocation6 + $0x164] ss:$16 sps:$4 sm:$0xff]  }
  0x65   :  { %354 = vmatprep.subr.bf16.mxu1 %v3225_v32  ;;  %v3282_v11 = vld [vmem:[#allocation6 + $0x108] ss:$16 sps:$4 sm:$0xff]   ;;  %v3290_v12 = vld [vmem:[#allocation6 + $0x12c] ss:$16 sps:$4 sm:$0xff]   ;;  %v3297_v13 = vld [vmem:[#allocation6 + $0x160] ss:$16 sps:$4 sm:$0xff]  }
  0x66   :  { %v3305_v14 = vld [vmem:[#allocation6 + $0x184] ss:$16 sps:$4 sm:$0xff]   ;;  %v3288_v15 = vld [vmem:[#allocation6 + $0x128] ss:$16 sps:$4 sm:$0xff]   ;;  %v3296_v16 = vld [vmem:[#allocation6 + $0x14c] ss:$16 sps:$4 sm:$0xff]  }
  0x67   :  { %314 = vmatpush1.bf16.msra.mxu0 %v3203_v22  ;;  %v3303_v17 = vld [vmem:[#allocation6 + $0x180] ss:$16 sps:$4 sm:$0xff]   ;;  %v3311_v18 = vld [vmem:[#allocation6 + $0x1a4] ss:$16 sps:$4 sm:$0xff]   ;;  %v3294_v19 = vld [vmem:[#allocation6 + $0x148] ss:$16 sps:$4 sm:$0xff]  }
  0x68   :  { %315 = vmatprep.subr.bf16.mxu0 %v3204_v25  ;;  %355 = vmatpush1.bf16.msra.mxu1 %v3227_v35  ;;  %v3302_v20 = vld [vmem:[#allocation6 + $0x16c] ss:$16 sps:$4 sm:$0xff]   ;;  %v3309_v21 = vld [vmem:[#allocation6 + $0x1a0] ss:$16 sps:$4 sm:$0xff]   ;;  %v3300_v22 = vld [vmem:[#allocation6 + $0x168] ss:$16 sps:$4 sm:$0xff]  }
  0x69   :  { %356 = vmatprep.subr.bf16.mxu1 %v3228_v36  ;;  %v3308_v23 = vld [vmem:[#allocation6 + $0x18c] ss:$16 sps:$4 sm:$0xff]   ;;  %v3306_v24 = vld [vmem:[#allocation6 + $0x188] ss:$16 sps:$4 sm:$0xff]   ;;  %v3317_v27 = vld [vmem:[#allocation6 + $0x1c4] ss:$16 sps:$4 sm:$0xff]  }
  0x6a   :  { %v3314_v25 = vld [vmem:[#allocation6 + $0x1ac] ss:$16 sps:$4 sm:$0xff]   ;;  %v3323_v31 = vld [vmem:[#allocation6 + $0x1e4] ss:$16 sps:$4 sm:$0xff]   ;;  %vm2765_vm1 = vcmask 57344  }
  0x6b   :  { %316 = vmatpush1.bf16.msra.mxu0 %v3206_v26  ;;  %v3312_v26 = vld [vmem:[#allocation6 + $0x1a8] ss:$16 sps:$4 sm:$0xff]   ;;  %v3320_v28 = vld [vmem:[#allocation6 + $0x1cc] ss:$16 sps:$4 sm:$0xff]   ;;  %v3329_v35 = vld [vmem:[#allocation6 + $0x204] ss:$16 sps:$4 sm:$0xff]  }
  0x6c   :  { %1226 = vmatprep.subr.bf16.mxu0 %v3233_v29  ;;  %357 = vmatpush1.bf16.msra.mxu1 %v3230_v39  ;;  %v3315_v29 = vld [vmem:[#allocation6 + $0x1c0] ss:$16 sps:$4 sm:$0xff]   ;;  %v3326_v32 = vld [vmem:[#allocation6 + $0x1ec] ss:$16 sps:$4 sm:$0xff]  }
  0x6d   :  { %1308 = vmatprep.subr.bf16.mxu1 %v3236_v40  ;;  %v3332_v36 = vld [vmem:[#allocation6 + $0x20c] ss:$16 sps:$4 sm:$0xff]  }
  0x6e   :  { %334 = vmatmul.mubr.bf16.vlgmr.msra.gmra.mrb[0].mxu0 %v108_v30  ;;  %v398_v40 = vld [vmem:[%s3943_s2] sm:$0xf] }
  0x6f   :  { %1227 = vmatpush1.bf16.msra.mxu0 %v3231_v33  ;;  %375 = vmatmul.mubr.bf16.vlgmr.msra.gmra.mrb[0].mxu1 %v108_v30  ;;  %v3318_v30 = vld [vmem:[#allocation6 + $0x1c8] ss:$16 sps:$4 sm:$0xff]   ;;  %v3321_v33 = vld [vmem:[#allocation6 + $0x1e0] ss:$16 sps:$4 sm:$0xff]  }
  0x70   :  { %1228 = vmatprep.subr.bf16.mxu0 %v3239_v34  ;;  %1309 = vmatpush1.bf16.msra.mxu1 %v3234_v43  ;;  %v3324_v34 = vld [vmem:[#allocation6 + $0x1e8] ss:$16 sps:$4 sm:$0xff]  }
  0x71   :  { %1310 = vmatprep.subr.bf16.mxu1 %v3242_v44 }
  0x73   :  { %1229 = vmatpush1.bf16.msra.mxu0 %v3237_v37  ;;  %v400_v37 = vlaneseq }
  0x74   :  { %1230 = vmatprep.subr.bf16.mxu0 %v3245_v38  ;;  %1311 = vmatpush1.bf16.msra.mxu1 %v3240_v47 }
  0x75   :  { %1312 = vmatprep.subr.bf16.mxu1 %v3248_v48  ;;  %v401_v38 = vshrl.u32 %v400_v37, 7  ;;  %v3375_v37 = vld [vmem:[#allocation6 + $0x300] ss:$16 sps:$4 sm:$0xff]  }
  0x77   :  { %1231 = vmatpush1.bf16.msra.mxu0 %v3243_v41  ;;  %v3889_v39 = vsub.s32 0, %v401_v38  ;;  %v3894_v41 = vsub.s32 1, %v401_v38 }
  0x78   :  { %1232 = vmatprep.subr.bf16.mxu0 %v3251_v42  ;;  %1313 = vmatpush1.bf16.msra.mxu1 %v3246_v51 }
  0x79   :  { %1314 = vmatprep.subr.bf16.mxu1 %v3254_v52  ;;  %v403_v42 = vrot.slane %v398_v40, %v3889_v39  ;;  %v407_v43 = vrot.slane %v398_v40, %v3894_v41  ;;  %v3898_v52 = vsub.s32 2, %v401_v38 }
  0x7b   :  { %1233 = vmatpush1.bf16.msra.mxu0 %v3249_v45 }
  0x7c   :  { %1234 = vmatprep.subr.bf16.mxu0 %v3257_v46  ;;  %1315 = vmatpush1.bf16.msra.mxu1 %v3252_v55 }
  0x7d   :  { %1316 = vmatprep.subr.bf16.mxu1 %v3260_v56 }
  0x7f   :  { %1235 = vmatpush1.bf16.msra.mxu0 %v3255_v49 }
  0x80   :  { %1236 = vmatprep.subr.bf16.mxu0 %v3263_v50  ;;  %1317 = vmatpush1.bf16.msra.mxu1 %v3258_v59  ;;  %v411_v59 = vrot.slane %v398_v40, %v3898_v52 }
  0x81   :  { %1318 = vmatprep.subr.bf16.mxu1 %v3266_v60 }
  0x83   :  { %1237 = vmatpush1.bf16.msra.mxu0 %v3261_v53 }
  0x84   :  { %1238 = vmatprep.subr.bf16.mxu0 %v3269_v54  ;;  %1319 = vmatpush1.bf16.msra.mxu1 %v3264_v63  ;;  %v3900_v54 = vsub.s32 3, %v401_v38  ;;  %v3378_v38 = vld [vmem:[#allocation6 + $0x308] ss:$16 sps:$4 sm:$0xff]  }
  0x85   :  { %1320 = vmatprep.subr.bf16.mxu1 %v3272_v0 }
  0x86   :  { %v415_v63 = vrot.slane %v398_v40, %v3900_v54  ;;  %v3383_v40 = vld [vmem:[#allocation6 + $0x324] ss:$16 sps:$4 sm:$0xff]  }
  0x87   :  { %1239 = vmatpush1.bf16.msra.mxu0 %v3267_v57  ;;  %v3327_v57 = vld [vmem:[#allocation6 + $0x200] ss:$16 sps:$4 sm:$0xff]  }
  0x88   :  { %1240 = vmatprep.subr.bf16.mxu0 %v3275_v58  ;;  %1321 = vmatpush1.bf16.msra.mxu1 %v3270_v3  ;;  %v3330_v58 = vld [vmem:[#allocation6 + $0x208] ss:$16 sps:$4 sm:$0xff]  }
  0x89   :  { %1322 = vmatprep.subr.bf16.mxu1 %v3278_v4 }
  0x8b   :  { %1241 = vmatpush1.bf16.msra.mxu0 %v3273_v61  ;;  %v3335_v61 = vld [vmem:[#allocation6 + $0x224] ss:$16 sps:$4 sm:$0xff]  }
  0x8c   :  { %1242 = vmatprep.subr.bf16.mxu0 %v3281_v62  ;;  %1323 = vmatpush1.bf16.msra.mxu1 %v3276_v7  ;;  %v3338_v62 = vld [vmem:[#allocation6 + $0x22c] ss:$16 sps:$4 sm:$0xff]  }
  0x8d   :  { %1324 = vmatprep.subr.bf16.mxu1 %v3284_v8 }
  0x8f   :  { %1243 = vmatpush1.bf16.msra.mxu0 %v3279_v1  ;;  %v3333_v1 = vld [vmem:[#allocation6 + $0x220] ss:$16 sps:$4 sm:$0xff]  }
  0x90   :  { %1244 = vmatprep.subr.bf16.mxu0 %v3287_v2  ;;  %1325 = vmatpush1.bf16.msra.mxu1 %v3282_v11  ;;  %v3336_v2 = vld [vmem:[#allocation6 + $0x228] ss:$16 sps:$4 sm:$0xff]   ;;  %v3339_v11 = vld [vmem:[#allocation6 + $0x240] ss:$16 sps:$4 sm:$0xff]  }
  0x91   :  { %1326 = vmatprep.subr.bf16.mxu1 %v3290_v12  ;;  %v3342_v12 = vld [vmem:[#allocation6 + $0x248] ss:$16 sps:$4 sm:$0xff]  }
  0x93   :  { %1245 = vmatpush1.bf16.msra.mxu0 %v3285_v5  ;;  %v3341_v5 = vld [vmem:[#allocation6 + $0x244] ss:$16 sps:$4 sm:$0xff]  }
  0x94   :  { %1246 = vmatprep.subr.bf16.mxu0 %v3293_v6  ;;  %1327 = vmatpush1.bf16.msra.mxu1 %v3288_v15  ;;  %v3344_v6 = vld [vmem:[#allocation6 + $0x24c] ss:$16 sps:$4 sm:$0xff]  }
  0x95   :  { %1328 = vmatprep.subr.bf16.mxu1 %v3296_v16 }
  0x97   :  { %1247 = vmatpush1.bf16.msra.mxu0 %v3291_v9 }
  0x98   :  { %1248 = vmatprep.subr.bf16.mxu0 %v3299_v10  ;;  %1329 = vmatpush1.bf16.msra.mxu1 %v3294_v19  ;;  %v3353_v19 = vld [vmem:[#allocation6 + $0x284] ss:$16 sps:$4 sm:$0xff]  }
  0x99   :  { %1330 = vmatprep.subr.bf16.mxu1 %v3302_v20  ;;  %v3356_v20 = vld [vmem:[#allocation6 + $0x28c] ss:$16 sps:$4 sm:$0xff]  }
  0x9b   :  { %1249 = vmatpush1.bf16.msra.mxu0 %v3297_v13  ;;  %v3347_v13 = vld [vmem:[#allocation6 + $0x264] ss:$16 sps:$4 sm:$0xff]  }
  0x9c   :  { %1250 = vmatprep.subr.bf16.mxu0 %v3305_v14  ;;  %1331 = vmatpush1.bf16.msra.mxu1 %v3300_v22  ;;  %v3350_v14 = vld [vmem:[#allocation6 + $0x26c] ss:$16 sps:$4 sm:$0xff]   ;;  %v3354_v22 = vld [vmem:[#allocation6 + $0x288] ss:$16 sps:$4 sm:$0xff]  }
  0x9d   :  { %1332 = vmatprep.subr.bf16.mxu1 %v3308_v23  ;;  %v3359_v23 = vld [vmem:[#allocation6 + $0x2a4] ss:$16 sps:$4 sm:$0xff]  }
  0x9f   :  { %1251 = vmatpush1.bf16.msra.mxu0 %v3303_v17  ;;  %v3345_v17 = vld [vmem:[#allocation6 + $0x260] ss:$16 sps:$4 sm:$0xff]  }
  0xa0   :  { %1252 = vmatprep.subr.bf16.mxu0 %v3311_v18  ;;  %1333 = vmatpush1.bf16.msra.mxu1 %v3306_v24  ;;  %v3348_v18 = vld [vmem:[#allocation6 + $0x268] ss:$16 sps:$4 sm:$0xff]   ;;  %v3362_v24 = vld [vmem:[#allocation6 + $0x2ac] ss:$16 sps:$4 sm:$0xff]  }
  0xa1   :  { %1334 = vmatprep.subr.bf16.mxu1 %v3314_v25  ;;  %v3357_v25 = vld [vmem:[#allocation6 + $0x2a0] ss:$16 sps:$4 sm:$0xff]  }
  0xa3   :  { %1253 = vmatpush1.bf16.msra.mxu0 %v3309_v21  ;;  %v3351_v21 = vld [vmem:[#allocation6 + $0x280] ss:$16 sps:$4 sm:$0xff]  }
  0xa4   :  { %1335 = vmatpush1.bf16.msra.mxu1 %v3312_v26  ;;  %1254 = vmatprep.subr.bf16.mxu0 %v3317_v27  ;;  %v3360_v26 = vld [vmem:[#allocation6 + $0x2a8] ss:$16 sps:$4 sm:$0xff]   ;;  %v3365_v27 = vld [vmem:[#allocation6 + $0x2c4] ss:$16 sps:$4 sm:$0xff]  }
  0xa5   :  { %1336 = vmatprep.subr.bf16.mxu1 %v3320_v28  ;;  %v3368_v28 = vld [vmem:[#allocation6 + $0x2cc] ss:$16 sps:$4 sm:$0xff]  }
  0xa7   :  { %1255 = vmatpush1.bf16.msra.mxu0 %v3315_v29  ;;  %v3363_v29 = vld [vmem:[#allocation6 + $0x2c0] ss:$16 sps:$4 sm:$0xff]  }
  0xa8   :  { %1337 = vmatpush1.bf16.msra.mxu1 %v3318_v30  ;;  %1256 = vmatprep.subr.bf16.mxu0 %v3323_v31  ;;  %v3366_v30 = vld [vmem:[#allocation6 + $0x2c8] ss:$16 sps:$4 sm:$0xff]   ;;  %v3371_v31 = vld [vmem:[#allocation6 + $0x2e4] ss:$16 sps:$4 sm:$0xff]  }
  0xa9   :  { %1338 = vmatprep.subr.bf16.mxu1 %v3326_v32  ;;  %v3374_v32 = vld [vmem:[#allocation6 + $0x2ec] ss:$16 sps:$4 sm:$0xff]  }
  0xab   :  { %1257 = vmatpush1.bf16.msra.mxu0 %v3321_v33  ;;  %v3369_v33 = vld [vmem:[#allocation6 + $0x2e0] ss:$16 sps:$4 sm:$0xff]  }
  0xac   :  { %1339 = vmatpush1.bf16.msra.mxu1 %v3324_v34  ;;  %1267 = vmatprep.subr.bf16.mxu0 %v3329_v35  ;;  %v3372_v34 = vld [vmem:[#allocation6 + $0x2e8] ss:$16 sps:$4 sm:$0xff]   ;;  %v3377_v35 = vld [vmem:[#allocation6 + $0x304] ss:$16 sps:$4 sm:$0xff]  }
  0xad   :  { %1349 = vmatprep.subr.bf16.mxu1 %v3332_v36  ;;  %v3380_v36 = vld [vmem:[#allocation6 + $0x30c] ss:$16 sps:$4 sm:$0xff]  }
 0x141   :  { %v335_v44 = vpop.f32.mrb[0].mxu0 }
 0x142   :  { %v420_v45 = vadd.f32 %v403_v42, %v335_v44  ;;  %v337_v46 = vpop.f32.mrb[1].mxu0  ;;  %v376_v0 = vpop.f32.mrb[0].mxu1  ;;  %v3386_v42 = vld [vmem:[#allocation6 + $0x32c] ss:$16 sps:$4 sm:$0xff]   ;;  %v3384_v44 = vld [vmem:[#allocation6 + $0x328] ss:$16 sps:$4 sm:$0xff]  }
 0x143   :  { %v421_v47 = vadd.f32 %v407_v43, %v337_v46  ;;  %v339_v48 = vpop.f32.mrb[2].mxu0  ;;  %v3904_v3 = vadd.f32 %v411_v59, %v376_v0  ;;  %v378_v4 = vpop.f32.mrb[1].mxu1  ;;  %v3381_v43 = vld [vmem:[#allocation6 + $0x320] ss:$16 sps:$4 sm:$0xff]   ;;  %v3392_v46 = vld [vmem:[#allocation6 + $0x34c] ss:$16 sps:$4 sm:$0xff]  }
 0x144   :  { %v424_v49 = vmul.f32 0.2, %v420_v45  ;;  %v340_v50 = vpop.f32.mrb[3].mxu0  ;;  %v423_v7 = vadd.f32 %v415_v63, %v378_v4  ;;  %v380_v8 = vpop.f32.mrb[2].mxu1  ;;  %v3390_v48 = vld [vmem:[#allocation6 + $0x348] ss:$16 sps:$4 sm:$0xff]  }
 0x145   :  { %v425_v51 = vmul.f32 0.2, %v421_v47  ;;  %v381_v9 = vpop.f32.mrb[3].mxu1  ;;  %v3398_v50 = vld [vmem:[#allocation6 + $0x36c] ss:$16 sps:$4 sm:$0xff]  }
 0x146   :  { %v428_v53 = vmax.f32 %v420_v45, %v424_v49  ;;  %v427_v10 = vmul.f32 0.2, %v423_v7  ;;  %v3389_v45 = vld [vmem:[#allocation6 + $0x344] ss:$16 sps:$4 sm:$0xff]   ;;  %v3416_v0 = vld [vmem:[#allocation6 + $0x3cc] ss:$16 sps:$4 sm:$0xff]  }
 0x147   :  { %v429_v55 = vmax.f32 %v421_v47, %v425_v51  ;;  %v3387_v47 = vld [vmem:[#allocation6 + $0x340] ss:$16 sps:$4 sm:$0xff]   ;;  %v3395_v49 = vld [vmem:[#allocation6 + $0x364] ss:$16 sps:$4 sm:$0xff]   ;;  %v426_v4 = vmul.f32 0.2, %v3904_v3 }
 0x148   :  { %v432_v60 = vpack.c.bf16 %v428_v53, %v428_v53  ;;  %v431_v15 = vmax.f32 %v423_v7, %v427_v10  ;;  %v3393_v51 = vld [vmem:[#allocation6 + $0x360] ss:$16 sps:$4 sm:$0xff]   ;;  %v3396_v53 = vld [vmem:[#allocation6 + $0x368] ss:$16 sps:$4 sm:$0xff]   ;;  %v3407_v59 = vld [vmem:[#allocation6 + $0x3a4] ss:$16 sps:$4 sm:$0xff]  }
 0x149   :  { %v433_v56 = vpack.c.bf16 %v429_v55, %v429_v55  ;;  %v3401_v55 = vld [vmem:[#allocation6 + $0x384] ss:$16 sps:$4 sm:$0xff]   ;;  %v3417_v7 = vld [vmem:[#allocation6 + $0x3e0] ss:$16 sps:$4 sm:$0xff]   ;;  %v3420_v8 = vld [vmem:[#allocation6 + $0x3e8] ss:$16 sps:$4 sm:$0xff]   ;;  %v430_v9 = vmax.f32 %v3904_v3, %v426_v4 }
 0x14a   :  { %v435_v16 = vpack.c.bf16 %v431_v15, %v431_v15  ;;  %v3413_v63 = vld [vmem:[#allocation6 + $0x3c4] ss:$16 sps:$4 sm:$0xff]   ;;  %v3506_v4 = vld [vmem:[#allocation8 + $0x1ac] ss:$16 sps:$4 sm:$0xff]  }
 0x14b   :  { %1258 = vmatprep.mubr.bf16.mxu0 %v433_v56  ;;  %1340 = vmatprep.mubr.bf16.mxu1 %v433_v56  ;;  %v3404_v56 = vld [vmem:[#allocation6 + $0x38c] ss:$16 sps:$4 sm:$0xff]   ;;  %v3425_v10 = vld [vmem:[#allocation8 + $0x4] ss:$16 sps:$4 sm:$0xff]  }
 0x14c   :  { %1259 = vmatmul.mubr.bf16.vlgmr.msra.gmra.mrb[4].mxu0 %v432_v60  ;;  %1341 = vmatmul.mubr.bf16.vlgmr.msra.gmra.mrb[4].mxu1 %v432_v60  ;;  %v3410_v60 = vld [vmem:[#allocation6 + $0x3ac] ss:$16 sps:$4 sm:$0xff]   ;;  %v3431_v15 = vld [vmem:[#allocation8 + $0x24] ss:$16 sps:$4 sm:$0xff]  }
 0x14d   :  { %1268 = vmatpush1.bf16.msra.mxu0 %v3327_v57  ;;  %1350 = vmatpush1.bf16.msra.mxu1 %v3330_v58  ;;  %v3399_v57 = vld [vmem:[#allocation6 + $0x380] ss:$16 sps:$4 sm:$0xff]   ;;  %v3402_v58 = vld [vmem:[#allocation6 + $0x388] ss:$16 sps:$4 sm:$0xff]   ;;  %v3437_v3 = vld [vmem:[#allocation8 + $0x44] ss:$16 sps:$4 sm:$0xff]  }
 0x14e   :  { %1269 = vmatprep.subr.bf16.mxu0 %v3335_v61  ;;  %1351 = vmatprep.subr.bf16.mxu1 %v3338_v62  ;;  %v3405_v61 = vld [vmem:[#allocation6 + $0x3a0] ss:$16 sps:$4 sm:$0xff]   ;;  %v3408_v62 = vld [vmem:[#allocation6 + $0x3a8] ss:$16 sps:$4 sm:$0xff]  }
 0x14f   :  { %1299 = vmatprep.mubr.bf16.mxu0 %v435_v16  ;;  %1381 = vmatprep.mubr.bf16.mxu1 %v435_v16  ;;  %v3434_v16 = vld [vmem:[#allocation8 + $0x2c] ss:$16 sps:$4 sm:$0xff]  }
 0x151   :  { %1270 = vmatpush1.bf16.msra.mxu0 %v3333_v1  ;;  %1352 = vmatpush1.bf16.msra.mxu1 %v3336_v2  ;;  %v3411_v1 = vld [vmem:[#allocation6 + $0x3c0] ss:$16 sps:$4 sm:$0xff]   ;;  %v3414_v2 = vld [vmem:[#allocation6 + $0x3c8] ss:$16 sps:$4 sm:$0xff]  }
 0x152   :  { %1271 = vmatprep.subr.bf16.mxu0 %v3341_v5  ;;  %1353 = vmatprep.subr.bf16.mxu1 %v3344_v6  ;;  %v3419_v5 = vld [vmem:[#allocation6 + $0x3e4] ss:$16 sps:$4 sm:$0xff]   ;;  %v3422_v6 = vld [vmem:[#allocation6 + $0x3ec] ss:$16 sps:$4 sm:$0xff]  }
 0x155   :  { %1272 = vmatpush1.bf16.msra.mxu0 %v3339_v11  ;;  %1354 = vmatpush1.bf16.msra.mxu1 %v3342_v12  ;;  %v3428_v11 = vld [vmem:[#allocation8 + $0xc] ss:$16 sps:$4 sm:$0xff]   ;;  %v3423_v12 = vld [vmem:[#allocation8] ss:$16 sps:$4 sm:$0xff]  }
 0x156   :  { %1273 = vmatprep.subr.bf16.mxu0 %v3347_v13  ;;  %1355 = vmatprep.subr.bf16.mxu1 %v3350_v14  ;;  %v3426_v13 = vld [vmem:[#allocation8 + $0x8] ss:$16 sps:$4 sm:$0xff]   ;;  %v434_v14 = vpack.c.bf16 %v430_v9, %v430_v9  ;;  %v3507_v9 = vld [vmem:[#allocation8 + $0x1c0] ss:$16 sps:$4 sm:$0xff]  }
 0x159   :  { %1274 = vmatpush1.bf16.msra.mxu0 %v3345_v17  ;;  %1356 = vmatpush1.bf16.msra.mxu1 %v3348_v18  ;;  %v3429_v17 = vld [vmem:[#allocation8 + $0x20] ss:$16 sps:$4 sm:$0xff]   ;;  %v3432_v18 = vld [vmem:[#allocation8 + $0x28] ss:$16 sps:$4 sm:$0xff]  }
 0x15a   :  { %1275 = vmatprep.subr.bf16.mxu0 %v3353_v19  ;;  %1357 = vmatprep.subr.bf16.mxu1 %v3356_v20  ;;  %v3440_v19 = vld [vmem:[#allocation8 + $0x4c] ss:$16 sps:$4 sm:$0xff]   ;;  %v3435_v20 = vld [vmem:[#allocation8 + $0x40] ss:$16 sps:$4 sm:$0xff]  }
 0x15d   :  { %1276 = vmatpush1.bf16.msra.mxu0 %v3351_v21  ;;  %1358 = vmatpush1.bf16.msra.mxu1 %v3354_v22  ;;  %v3438_v21 = vld [vmem:[#allocation8 + $0x48] ss:$16 sps:$4 sm:$0xff]   ;;  %v3443_v22 = vld [vmem:[#allocation8 + $0x64] ss:$16 sps:$4 sm:$0xff]  }
 0x15e   :  { %1277 = vmatprep.subr.bf16.mxu0 %v3359_v23  ;;  %1359 = vmatprep.subr.bf16.mxu1 %v3362_v24  ;;  %v3446_v23 = vld [vmem:[#allocation8 + $0x6c] ss:$16 sps:$4 sm:$0xff]   ;;  %v3441_v24 = vld [vmem:[#allocation8 + $0x60] ss:$16 sps:$4 sm:$0xff]  }
 0x161   :  { %1278 = vmatpush1.bf16.msra.mxu0 %v3357_v25  ;;  %1360 = vmatpush1.bf16.msra.mxu1 %v3360_v26  ;;  %v3444_v25 = vld [vmem:[#allocation8 + $0x68] ss:$16 sps:$4 sm:$0xff]   ;;  %v3449_v26 = vld [vmem:[#allocation8 + $0x84] ss:$16 sps:$4 sm:$0xff]  }
 0x162   :  { %1279 = vmatprep.subr.bf16.mxu0 %v3365_v27  ;;  %1361 = vmatprep.subr.bf16.mxu1 %v3368_v28  ;;  %v3452_v27 = vld [vmem:[#allocation8 + $0x8c] ss:$16 sps:$4 sm:$0xff]   ;;  %v3447_v28 = vld [vmem:[#allocation8 + $0x80] ss:$16 sps:$4 sm:$0xff]  }
 0x165   :  { %1280 = vmatpush1.bf16.msra.mxu0 %v3363_v29  ;;  %1362 = vmatpush1.bf16.msra.mxu1 %v3366_v30  ;;  %v3450_v29 = vld [vmem:[#allocation8 + $0x88] ss:$16 sps:$4 sm:$0xff]   ;;  %v3455_v30 = vld [vmem:[#allocation8 + $0xa4] ss:$16 sps:$4 sm:$0xff]  }
 0x166   :  { %1281 = vmatprep.subr.bf16.mxu0 %v3371_v31  ;;  %1363 = vmatprep.subr.bf16.mxu1 %v3374_v32  ;;  %v3458_v31 = vld [vmem:[#allocation8 + $0xac] ss:$16 sps:$4 sm:$0xff]   ;;  %v3453_v32 = vld [vmem:[#allocation8 + $0xa0] ss:$16 sps:$4 sm:$0xff]  }
 0x169   :  { %1282 = vmatpush1.bf16.msra.mxu0 %v3369_v33  ;;  %1364 = vmatpush1.bf16.msra.mxu1 %v3372_v34  ;;  %v3456_v33 = vld [vmem:[#allocation8 + $0xa8] ss:$16 sps:$4 sm:$0xff]   ;;  %v3461_v34 = vld [vmem:[#allocation8 + $0xc4] ss:$16 sps:$4 sm:$0xff]  }
 0x16a   :  { %1283 = vmatprep.subr.bf16.mxu0 %v3377_v35  ;;  %1365 = vmatprep.subr.bf16.mxu1 %v3380_v36  ;;  %v3464_v35 = vld [vmem:[#allocation8 + $0xcc] ss:$16 sps:$4 sm:$0xff]   ;;  %v3459_v36 = vld [vmem:[#allocation8 + $0xc0] ss:$16 sps:$4 sm:$0xff]  }
 0x16d   :  { %1284 = vmatpush1.bf16.msra.mxu0 %v3375_v37  ;;  %1366 = vmatpush1.bf16.msra.mxu1 %v3378_v38  ;;  %v3462_v37 = vld [vmem:[#allocation8 + $0xc8] ss:$16 sps:$4 sm:$0xff]   ;;  %v3467_v38 = vld [vmem:[#allocation8 + $0xe4] ss:$16 sps:$4 sm:$0xff]  }
 0x16e   :  { %1285 = vmatprep.subr.bf16.mxu0 %v3383_v40  ;;  %1367 = vmatprep.subr.bf16.mxu1 %v3386_v42  ;;  %v3470_v40 = vld [vmem:[#allocation8 + $0xec] ss:$16 sps:$4 sm:$0xff]   ;;  %v3465_v42 = vld [vmem:[#allocation8 + $0xe0] ss:$16 sps:$4 sm:$0xff]  }
 0x171   :  { %1286 = vmatpush1.bf16.msra.mxu0 %v3381_v43  ;;  %1368 = vmatpush1.bf16.msra.mxu1 %v3384_v44  ;;  %v3468_v43 = vld [vmem:[#allocation8 + $0xe8] ss:$16 sps:$4 sm:$0xff]   ;;  %v3473_v44 = vld [vmem:[#allocation8 + $0x104] ss:$16 sps:$4 sm:$0xff]  }
 0x172   :  { %1287 = vmatprep.subr.bf16.mxu0 %v3389_v45  ;;  %1369 = vmatprep.subr.bf16.mxu1 %v3392_v46  ;;  %v3476_v45 = vld [vmem:[#allocation8 + $0x10c] ss:$16 sps:$4 sm:$0xff]   ;;  %v3471_v46 = vld [vmem:[#allocation8 + $0x100] ss:$16 sps:$4 sm:$0xff]  }
 0x175   :  { %1288 = vmatpush1.bf16.msra.mxu0 %v3387_v47  ;;  %1370 = vmatpush1.bf16.msra.mxu1 %v3390_v48  ;;  %v3474_v47 = vld [vmem:[#allocation8 + $0x108] ss:$16 sps:$4 sm:$0xff]   ;;  %v3479_v48 = vld [vmem:[#allocation8 + $0x124] ss:$16 sps:$4 sm:$0xff]  }
 0x176   :  { %1289 = vmatprep.subr.bf16.mxu0 %v3395_v49  ;;  %1371 = vmatprep.subr.bf16.mxu1 %v3398_v50  ;;  %v3482_v49 = vld [vmem:[#allocation8 + $0x12c] ss:$16 sps:$4 sm:$0xff]   ;;  %v3477_v50 = vld [vmem:[#allocation8 + $0x120] ss:$16 sps:$4 sm:$0xff]  }
 0x179   :  { %1290 = vmatpush1.bf16.msra.mxu0 %v3393_v51  ;;  %1372 = vmatpush1.bf16.msra.mxu1 %v3396_v53  ;;  %v3480_v51 = vld [vmem:[#allocation8 + $0x128] ss:$16 sps:$4 sm:$0xff]   ;;  %v3485_v53 = vld [vmem:[#allocation8 + $0x144] ss:$16 sps:$4 sm:$0xff]  }
 0x17a   :  { %1291 = vmatprep.subr.bf16.mxu0 %v3401_v55  ;;  %1373 = vmatprep.subr.bf16.mxu1 %v3404_v56  ;;  %v3488_v55 = vld [vmem:[#allocation8 + $0x14c] ss:$16 sps:$4 sm:$0xff]   ;;  %v3483_v56 = vld [vmem:[#allocation8 + $0x140] ss:$16 sps:$4 sm:$0xff]  }
 0x17d   :  { %1292 = vmatpush1.bf16.msra.mxu0 %v3399_v57  ;;  %1374 = vmatpush1.bf16.msra.mxu1 %v3402_v58  ;;  %v3486_v57 = vld [vmem:[#allocation8 + $0x148] ss:$16 sps:$4 sm:$0xff]   ;;  %v3491_v58 = vld [vmem:[#allocation8 + $0x164] ss:$16 sps:$4 sm:$0xff]  }
 0x17e   :  { %1293 = vmatprep.subr.bf16.mxu0 %v3407_v59  ;;  %1375 = vmatprep.subr.bf16.mxu1 %v3410_v60  ;;  %v3494_v59 = vld [vmem:[#allocation8 + $0x16c] ss:$16 sps:$4 sm:$0xff]   ;;  %v3489_v60 = vld [vmem:[#allocation8 + $0x160] ss:$16 sps:$4 sm:$0xff]  }
 0x181   :  { %1294 = vmatpush1.bf16.msra.mxu0 %v3405_v61  ;;  %1376 = vmatpush1.bf16.msra.mxu1 %v3408_v62  ;;  %v3492_v61 = vld [vmem:[#allocation8 + $0x168] ss:$16 sps:$4 sm:$0xff]   ;;  %v3497_v62 = vld [vmem:[#allocation8 + $0x184] ss:$16 sps:$4 sm:$0xff]  }
 0x182   :  { %1295 = vmatprep.subr.bf16.mxu0 %v3413_v63  ;;  %1377 = vmatprep.subr.bf16.mxu1 %v3416_v0  ;;  %v3500_v63 = vld [vmem:[#allocation8 + $0x18c] ss:$16 sps:$4 sm:$0xff]   ;;  %v3495_v0 = vld [vmem:[#allocation8 + $0x180] ss:$16 sps:$4 sm:$0xff]  }
 0x185   :  { %1296 = vmatpush1.bf16.msra.mxu0 %v3411_v1  ;;  %1378 = vmatpush1.bf16.msra.mxu1 %v3414_v2  ;;  %v3498_v1 = vld [vmem:[#allocation8 + $0x188] ss:$16 sps:$4 sm:$0xff]   ;;  %v3503_v2 = vld [vmem:[#allocation8 + $0x1a4] ss:$16 sps:$4 sm:$0xff]  }
 0x186   :  { %1297 = vmatprep.subr.bf16.mxu0 %v3419_v5  ;;  %1379 = vmatprep.subr.bf16.mxu1 %v3422_v6  ;;  %v3501_v5 = vld [vmem:[#allocation8 + $0x1a0] ss:$16 sps:$4 sm:$0xff]   ;;  %v3504_v6 = vld [vmem:[#allocation8 + $0x1a8] ss:$16 sps:$4 sm:$0xff]  }
 0x189   :  { %1298 = vmatpush1.bf16.msra.mxu0 %v3417_v7  ;;  %1380 = vmatpush1.bf16.msra.mxu1 %v3420_v8  ;;  %v3509_v7 = vld [vmem:[#allocation8 + $0x1c4] ss:$16 sps:$4 sm:$0xff]   ;;  %v3512_v8 = vld [vmem:[#allocation8 + $0x1cc] ss:$16 sps:$4 sm:$0xff]  }
 0x18a   :  { %2192 = vmatprep.subr.bf16.mxu0 %v3425_v10  ;;  %2274 = vmatprep.subr.bf16.mxu1 %v3428_v11  ;;  %v3510_v10 = vld [vmem:[#allocation8 + $0x1c8] ss:$16 sps:$4 sm:$0xff]   ;;  %v3515_v11 = vld [vmem:[#allocation8 + $0x1e4] ss:$16 sps:$4 sm:$0xff]  }
 0x18c   :  { %1300 = vmatmul.mubr.bf16.vlgmr.msra.gmra.mrb[4].mxu0 %v434_v14  ;;  %1382 = vmatmul.mubr.bf16.vlgmr.msra.gmra.mrb[4].mxu1 %v434_v14  ;;  %v3516_v14 = vld [vmem:[#allocation8 + $0x1e8] ss:$16 sps:$4 sm:$0xff]  }
 0x18d   :  { %2193 = vmatpush1.bf16.msra.mxu0 %v3423_v12  ;;  %2275 = vmatpush1.bf16.msra.mxu1 %v3426_v13  ;;  %v3518_v12 = vld [vmem:[#allocation8 + $0x1ec] ss:$16 sps:$4 sm:$0xff]   ;;  %v3513_v13 = vld [vmem:[#allocation8 + $0x1e0] ss:$16 sps:$4 sm:$0xff]  }
 0x18e   :  { %2194 = vmatprep.subr.bf16.mxu0 %v3431_v15  ;;  %2276 = vmatprep.subr.bf16.mxu1 %v3434_v16  ;;  %v3521_v15 = vld [vmem:[#allocation8 + $0x204] ss:$16 sps:$4 sm:$0xff]   ;;  %v3524_v16 = vld [vmem:[#allocation8 + $0x20c] ss:$16 sps:$4 sm:$0xff]  }
 0x191   :  { %2195 = vmatpush1.bf16.msra.mxu0 %v3429_v17  ;;  %2277 = vmatpush1.bf16.msra.mxu1 %v3432_v18  ;;  %v3911_v17 = vld [vmem:[%s3945_s4] sm:$0xf] }
 0x192   :  { %2196 = vmatprep.subr.bf16.mxu0 %v3437_v3  ;;  %2278 = vmatprep.subr.bf16.mxu1 %v3440_v19  ;;  %v569_v18 = vrot.slane %v3911_v17, %v3889_v39  ;;  %v573_v3 = vrot.slane %v3911_v17, %v3894_v41  ;;  %v581_v19 = vrot.slane %v3911_v17, %v3900_v54 }
 0x195   :  { %2197 = vmatpush1.bf16.msra.mxu0 %v3435_v20  ;;  %2279 = vmatpush1.bf16.msra.mxu1 %v3438_v21 }
 0x196   :  { %2198 = vmatprep.subr.bf16.mxu0 %v3443_v22  ;;  %2280 = vmatprep.subr.bf16.mxu1 %v3446_v23 }
 0x199   :  { %2199 = vmatpush1.bf16.msra.mxu0 %v3441_v24  ;;  %2281 = vmatpush1.bf16.msra.mxu1 %v3444_v25 }
 0x19a   :  { %2200 = vmatprep.subr.bf16.mxu0 %v3449_v26  ;;  %2282 = vmatprep.subr.bf16.mxu1 %v3452_v27 }
 0x19d   :  { %2201 = vmatpush1.bf16.msra.mxu0 %v3447_v28  ;;  %2283 = vmatpush1.bf16.msra.mxu1 %v3450_v29 }
 0x19e   :  { %2202 = vmatprep.subr.bf16.mxu0 %v3455_v30  ;;  %2284 = vmatprep.subr.bf16.mxu1 %v3458_v31 }
 0x1a1   :  { %2203 = vmatpush1.bf16.msra.mxu0 %v3453_v32  ;;  %2285 = vmatpush1.bf16.msra.mxu1 %v3456_v33 }
 0x1a2   :  { %2204 = vmatprep.subr.bf16.mxu0 %v3461_v34  ;;  %2286 = vmatprep.subr.bf16.mxu1 %v3464_v35 }
 0x1a5   :  { %2205 = vmatpush1.bf16.msra.mxu0 %v3459_v36  ;;  %2287 = vmatpush1.bf16.msra.mxu1 %v3462_v37 }
 0x1a6   :  { %2206 = vmatprep.subr.bf16.mxu0 %v3467_v38  ;;  %2288 = vmatprep.subr.bf16.mxu1 %v3470_v40  ;;  %v3519_v38 = vld [vmem:[#allocation8 + $0x200] ss:$16 sps:$4 sm:$0xff]   ;;  %v3522_v40 = vld [vmem:[#allocation8 + $0x208] ss:$16 sps:$4 sm:$0xff]  }
 0x1a9   :  { %2207 = vmatpush1.bf16.msra.mxu0 %v3465_v42  ;;  %2289 = vmatpush1.bf16.msra.mxu1 %v3468_v43  ;;  %v3527_v43 = vld [vmem:[#allocation8 + $0x224] ss:$16 sps:$4 sm:$0xff]  }
 0x1aa   :  { %2208 = vmatprep.subr.bf16.mxu0 %v3473_v44  ;;  %2290 = vmatprep.subr.bf16.mxu1 %v3476_v45  ;;  %v3530_v44 = vld [vmem:[#allocation8 + $0x22c] ss:$16 sps:$4 sm:$0xff]  }
 0x1ad   :  { %2209 = vmatpush1.bf16.msra.mxu0 %v3471_v46  ;;  %2291 = vmatpush1.bf16.msra.mxu1 %v3474_v47  ;;  %v3525_v46 = vld [vmem:[#allocation8 + $0x220] ss:$16 sps:$4 sm:$0xff]   ;;  %v3528_v47 = vld [vmem:[#allocation8 + $0x228] ss:$16 sps:$4 sm:$0xff]  }
 0x1ae   :  { %2210 = vmatprep.subr.bf16.mxu0 %v3479_v48  ;;  %2292 = vmatprep.subr.bf16.mxu1 %v3482_v49  ;;  %v3533_v48 = vld [vmem:[#allocation8 + $0x244] ss:$16 sps:$4 sm:$0xff]   ;;  %v3536_v49 = vld [vmem:[#allocation8 + $0x24c] ss:$16 sps:$4 sm:$0xff]  }
 0x1b1   :  { %2211 = vmatpush1.bf16.msra.mxu0 %v3477_v50  ;;  %2293 = vmatpush1.bf16.msra.mxu1 %v3480_v51  ;;  %v3531_v50 = vld [vmem:[#allocation8 + $0x240] ss:$16 sps:$4 sm:$0xff]   ;;  %v3534_v51 = vld [vmem:[#allocation8 + $0x248] ss:$16 sps:$4 sm:$0xff]  }
 0x1b2   :  { %2212 = vmatprep.subr.bf16.mxu0 %v3485_v53  ;;  %2294 = vmatprep.subr.bf16.mxu1 %v3488_v55  ;;  %v3539_v53 = vld [vmem:[#allocation8 + $0x264] ss:$16 sps:$4 sm:$0xff]   ;;  %v3542_v55 = vld [vmem:[#allocation8 + $0x26c] ss:$16 sps:$4 sm:$0xff]  }
 0x1b5   :  { %2213 = vmatpush1.bf16.msra.mxu0 %v3483_v56  ;;  %2295 = vmatpush1.bf16.msra.mxu1 %v3486_v57  ;;  %v3537_v56 = vld [vmem:[#allocation8 + $0x260] ss:$16 sps:$4 sm:$0xff]   ;;  %v3540_v57 = vld [vmem:[#allocation8 + $0x268] ss:$16 sps:$4 sm:$0xff]  }
 0x1b6   :  { %2214 = vmatprep.subr.bf16.mxu0 %v3491_v58  ;;  %2296 = vmatprep.subr.bf16.mxu1 %v3494_v59  ;;  %v3545_v58 = vld [vmem:[#allocation8 + $0x284] ss:$16 sps:$4 sm:$0xff]   ;;  %v3548_v59 = vld [vmem:[#allocation8 + $0x28c] ss:$16 sps:$4 sm:$0xff]  }
 0x1b9   :  { %2215 = vmatpush1.bf16.msra.mxu0 %v3489_v60  ;;  %2297 = vmatpush1.bf16.msra.mxu1 %v3492_v61  ;;  %v3543_v60 = vld [vmem:[#allocation8 + $0x280] ss:$16 sps:$4 sm:$0xff]   ;;  %v3546_v61 = vld [vmem:[#allocation8 + $0x288] ss:$16 sps:$4 sm:$0xff]  }
 0x1ba   :  { %2216 = vmatprep.subr.bf16.mxu0 %v3497_v62  ;;  %2298 = vmatprep.subr.bf16.mxu1 %v3500_v63  ;;  %v3551_v62 = vld [vmem:[#allocation8 + $0x2a4] ss:$16 sps:$4 sm:$0xff]   ;;  %v3554_v63 = vld [vmem:[#allocation8 + $0x2ac] ss:$16 sps:$4 sm:$0xff]  }
 0x1bd   :  { %2217 = vmatpush1.bf16.msra.mxu0 %v3495_v0  ;;  %2299 = vmatpush1.bf16.msra.mxu1 %v3498_v1  ;;  %v3549_v0 = vld [vmem:[#allocation8 + $0x2a0] ss:$16 sps:$4 sm:$0xff]   ;;  %v3552_v1 = vld [vmem:[#allocation8 + $0x2a8] ss:$16 sps:$4 sm:$0xff]  }
 0x1be   :  { %2218 = vmatprep.subr.bf16.mxu0 %v3503_v2  ;;  %2300 = vmatprep.subr.bf16.mxu1 %v3506_v4  ;;  %v3557_v2 = vld [vmem:[#allocation8 + $0x2c4] ss:$16 sps:$4 sm:$0xff]   ;;  %v3560_v4 = vld [vmem:[#allocation8 + $0x2cc] ss:$16 sps:$4 sm:$0xff]  }
 0x1c1   :  { %2219 = vmatpush1.bf16.msra.mxu0 %v3501_v5  ;;  %2301 = vmatpush1.bf16.msra.mxu1 %v3504_v6  ;;  %v3555_v5 = vld [vmem:[#allocation8 + $0x2c0] ss:$16 sps:$4 sm:$0xff]   ;;  %v3558_v6 = vld [vmem:[#allocation8 + $0x2c8] ss:$16 sps:$4 sm:$0xff]  }
 0x1c2   :  { %2220 = vmatprep.subr.bf16.mxu0 %v3509_v7  ;;  %2302 = vmatprep.subr.bf16.mxu1 %v3512_v8  ;;  %v3563_v7 = vld [vmem:[#allocation8 + $0x2e4] ss:$16 sps:$4 sm:$0xff]   ;;  %v3566_v8 = vld [vmem:[#allocation8 + $0x2ec] ss:$16 sps:$4 sm:$0xff]  }
 0x1c5   :  { %2221 = vmatpush1.bf16.msra.mxu0 %v3507_v9  ;;  %2303 = vmatpush1.bf16.msra.mxu1 %v3510_v10  ;;  %v3561_v9 = vld [vmem:[#allocation8 + $0x2e0] ss:$16 sps:$4 sm:$0xff]   ;;  %v3564_v10 = vld [vmem:[#allocation8 + $0x2e8] ss:$16 sps:$4 sm:$0xff]  }
 0x1c6   :  { %2222 = vmatprep.subr.bf16.mxu0 %v3515_v11  ;;  %2304 = vmatprep.subr.bf16.mxu1 %v3518_v12  ;;  %v3569_v11 = vld [vmem:[#allocation8 + $0x304] ss:$16 sps:$4 sm:$0xff]   ;;  %v3572_v12 = vld [vmem:[#allocation8 + $0x30c] ss:$16 sps:$4 sm:$0xff]  }
 0x1c9   :  { %2223 = vmatpush1.bf16.msra.mxu0 %v3513_v13  ;;  %2305 = vmatpush1.bf16.msra.mxu1 %v3516_v14  ;;  %v3567_v13 = vld [vmem:[#allocation8 + $0x300] ss:$16 sps:$4 sm:$0xff]   ;;  %v3570_v14 = vld [vmem:[#allocation8 + $0x308] ss:$16 sps:$4 sm:$0xff]  }
 0x1ca   :  { %2233 = vmatprep.subr.bf16.mxu0 %v3521_v15  ;;  %2315 = vmatprep.subr.bf16.mxu1 %v3524_v16  ;;  %v3575_v15 = vld [vmem:[#allocation8 + $0x324] ss:$16 sps:$4 sm:$0xff]   ;;  %v3578_v16 = vld [vmem:[#allocation8 + $0x32c] ss:$16 sps:$4 sm:$0xff]  }
 0x25f   :  { %v1301_v20 = vpop.f32.mrb[4].mxu0  ;;  %v3919_v21 = vpop.f32.mrb[4].mxu1 }
 0x260   :  { %v3147_v22 = vadd.f32 %v1301_v20, %v569_v18  ;;  %v1303_v23 = vpop.f32.mrb[5].mxu0  ;;  %v1385_v24 = vpop.f32.mrb[5].mxu1  ;;  %v3573_v18 = vld [vmem:[#allocation8 + $0x320] ss:$16 sps:$4 sm:$0xff]   ;;  %v3584_v20 = vld [vmem:[#allocation8 + $0x34c] ss:$16 sps:$4 sm:$0xff]  }
 0x261   :  { %v3148_v25 = vadd.f32 %v1303_v23, %v573_v3  ;;  %v3150_v26 = vadd.f32 %v1385_v24, %v581_v19  ;;  %v1305_v27 = vpop.f32.mrb[6].mxu0  ;;  %v1387_v28 = vpop.f32.mrb[6].mxu1  ;;  %v3576_v3 = vld [vmem:[#allocation8 + $0x328] ss:$16 sps:$4 sm:$0xff]   ;;  %v3581_v19 = vld [vmem:[#allocation8 + $0x344] ss:$16 sps:$4 sm:$0xff]  }
 0x262   :  { %v1390_v29 = vmul.f32 0.2, %v3147_v22  ;;  %v1306_v30 = vpop.f32.mrb[7].mxu0  ;;  %v1388_v31 = vpop.f32.mrb[7].mxu1  ;;  %v3582_v23 = vld [vmem:[#allocation8 + $0x348] ss:$16 sps:$4 sm:$0xff]  }
 0x263   :  { %v1391_v32 = vmul.f32 0.2, %v3148_v25  ;;  %v1393_v33 = vmul.f32 0.2, %v3150_v26  ;;  %v3587_v24 = vld [vmem:[#allocation8 + $0x364] ss:$16 sps:$4 sm:$0xff]  }
 0x264   :  { %v1394_v34 = vmax.f32 %v3147_v22, %v1390_v29  ;;  %v3579_v22 = vld [vmem:[#allocation8 + $0x340] ss:$16 sps:$4 sm:$0xff]   ;;  %v3588_v27 = vld [vmem:[#allocation8 + $0x368] ss:$16 sps:$4 sm:$0xff]   ;;  %v3593_v28 = vld [vmem:[#allocation8 + $0x384] ss:$16 sps:$4 sm:$0xff]  }
 0x265   :  { %v1395_v35 = vmax.f32 %v3148_v25, %v1391_v32  ;;  %v1397_v36 = vmax.f32 %v3150_v26, %v1393_v33  ;;  %v3590_v25 = vld [vmem:[#allocation8 + $0x36c] ss:$16 sps:$4 sm:$0xff]   ;;  %v3585_v26 = vld [vmem:[#allocation8 + $0x360] ss:$16 sps:$4 sm:$0xff]   ;;  %v3594_v31 = vld [vmem:[#allocation8 + $0x388] ss:$16 sps:$4 sm:$0xff]   ;;  %v577_v32 = vrot.slane %v3911_v17, %v3898_v52 }
 0x266   :  { %v1398_v42 = vpack.c.bf16 %v1394_v34, %v1394_v34  ;;  %v3596_v29 = vld [vmem:[#allocation8 + $0x38c] ss:$16 sps:$4 sm:$0xff]   ;;  %v3591_v30 = vld [vmem:[#allocation8 + $0x380] ss:$16 sps:$4 sm:$0xff]   ;;  %v3599_v33 = vld [vmem:[#allocation8 + $0x3a4] ss:$16 sps:$4 sm:$0xff]  }
 0x267   :  { %v1399_v37 = vpack.c.bf16 %v1395_v35, %v1395_v35  ;;  %v1401_v45 = vpack.c.bf16 %v1397_v36, %v1397_v36  ;;  %v3602_v34 = vld [vmem:[#allocation8 + $0x3ac] ss:$16 sps:$4 sm:$0xff]   ;;  %v3597_v35 = vld [vmem:[#allocation8 + $0x3a0] ss:$16 sps:$4 sm:$0xff]   ;;  %v3600_v36 = vld [vmem:[#allocation8 + $0x3a8] ss:$16 sps:$4 sm:$0xff]  }
 0x268   :  { %v3611_v17 = vld [vmem:[#allocation8 + $0x3e4] ss:$16 sps:$4 sm:$0xff]  }
 0x269   :  { %2224 = vmatprep.mubr.bf16.mxu0 %v1399_v37  ;;  %2306 = vmatprep.mubr.bf16.mxu1 %v1399_v37  ;;  %v3149_v37 = vadd.f32 %v3919_v21, %v577_v32  ;;  %v3615_v21 = vld [vmem:[#allocation9 + $0x40] sm:$0xff]  }
 0x26a   :  { %2225 = vmatmul.mubr.bf16.vlgmr.msra.gmra.mrb[8].mxu0 %v1398_v42  ;;  %2307 = vmatmul.mubr.bf16.vlgmr.msra.gmra.mrb[8].mxu1 %v1398_v42  ;;  %v3603_v42 = vld [vmem:[#allocation8 + $0x3c0] ss:$16 sps:$4 sm:$0xff]  }
 0x26b   :  { %2234 = vmatpush1.bf16.msra.mxu0 %v3519_v38  ;;  %2316 = vmatpush1.bf16.msra.mxu1 %v3522_v40  ;;  %v3605_v38 = vld [vmem:[#allocation8 + $0x3c4] ss:$16 sps:$4 sm:$0xff]   ;;  %v3608_v40 = vld [vmem:[#allocation8 + $0x3cc] ss:$16 sps:$4 sm:$0xff]  }
 0x26c   :  { %2265 = vmatprep.mubr.bf16.mxu0 %v1401_v45  ;;  %2347 = vmatprep.mubr.bf16.mxu1 %v1401_v45  ;;  %v3614_v45 = vld [vmem:[#allocation8 + $0x3ec] ss:$16 sps:$4 sm:$0xff]  }
 0x26d   :  { %2235 = vmatprep.subr.bf16.mxu0 %v3527_v43  ;;  %2317 = vmatprep.subr.bf16.mxu1 %v3530_v44  ;;  %v3606_v43 = vld [vmem:[#allocation8 + $0x3c8] ss:$16 sps:$4 sm:$0xff]   ;;  %v1392_v44 = vmul.f32 0.2, %v3149_v37 }
 0x26f   :  { %2236 = vmatpush1.bf16.msra.mxu0 %v3525_v46  ;;  %2318 = vmatpush1.bf16.msra.mxu1 %v3528_v47  ;;  %v3609_v46 = vld [vmem:[#allocation8 + $0x3e0] ss:$16 sps:$4 sm:$0xff]   ;;  %v3612_v47 = vld [vmem:[#allocation8 + $0x3e8] ss:$16 sps:$4 sm:$0xff]  }
 0x270   :  { %2237 = vmatprep.subr.bf16.mxu0 %v3533_v48  ;;  %2319 = vmatprep.subr.bf16.mxu1 %v3536_v49  ;;  %v1396_v48 = vmax.f32 %v3149_v37, %v1392_v44  ;;  %v3616_v49 = vld [vmem:[#allocation9 + $0xc0] sm:$0xff]  }
 0x273   :  { %2238 = vmatpush1.bf16.msra.mxu0 %v3531_v50  ;;  %2320 = vmatpush1.bf16.msra.mxu1 %v3534_v51  ;;  %v3617_v50 = vld [vmem:[#allocation9] sm:$0xff]  }
 0x274   :  { %2239 = vmatprep.subr.bf16.mxu0 %v3539_v53  ;;  %2321 = vmatprep.subr.bf16.mxu1 %v3542_v55  ;;  %v3618_v51 = vld [vmem:[#allocation9 + $0x80] sm:$0xff]   ;;  %v1400_v53 = vpack.c.bf16 %v1396_v48, %v1396_v48  ;;  %v3619_v55 = vld [vmem:[#allocation9 + $0x48] sm:$0xff]   ;;  %v3750_v48 = vmov 0.0  }
 0x277   :  { %2240 = vmatpush1.bf16.msra.mxu0 %v3537_v56  ;;  %2322 = vmatpush1.bf16.msra.mxu1 %v3540_v57  ;;  %v3620_v56 = vld [vmem:[#allocation9 + $0xc8] sm:$0xff]  }
 0x278   :  { %2241 = vmatprep.subr.bf16.mxu0 %v3545_v58  ;;  %2323 = vmatprep.subr.bf16.mxu1 %v3548_v59  ;;  %v3621_v57 = vld [vmem:[#allocation9 + $0x8] sm:$0xff]   ;;  %v3623_v59 = vld [vmem:[#allocation9 + $0x50] sm:$0xff]  }
 0x279   :  { %v3622_v58 = vld [vmem:[#allocation9 + $0x88] sm:$0xff]  }
 0x27b   :  { %2242 = vmatpush1.bf16.msra.mxu0 %v3543_v60  ;;  %2324 = vmatpush1.bf16.msra.mxu1 %v3546_v61  ;;  %v3624_v60 = vld [vmem:[#allocation9 + $0xd0] sm:$0xff]  }
 0x27c   :  { %2243 = vmatprep.subr.bf16.mxu0 %v3551_v62  ;;  %2325 = vmatprep.subr.bf16.mxu1 %v3554_v63  ;;  %v3625_v61 = vld [vmem:[#allocation9 + $0x10] sm:$0xff]   ;;  %v3627_v63 = vld [vmem:[#allocation9 + $0x58] sm:$0xff]  }
 0x27d   :  { %v3626_v62 = vld [vmem:[#allocation9 + $0x90] sm:$0xff]  }
 0x27f   :  { %2244 = vmatpush1.bf16.msra.mxu0 %v3549_v0  ;;  %2326 = vmatpush1.bf16.msra.mxu1 %v3552_v1  ;;  %v3628_v0 = vld [vmem:[#allocation9 + $0xd8] sm:$0xff]  }
 0x280   :  { %2245 = vmatprep.subr.bf16.mxu0 %v3557_v2  ;;  %2327 = vmatprep.subr.bf16.mxu1 %v3560_v4  ;;  %v3629_v1 = vld [vmem:[#allocation9 + $0x18] sm:$0xff]   ;;  %v3631_v4 = vld [vmem:[#allocation9 + $0x60] sm:$0xff]  }
 0x281   :  { %v3630_v2 = vld [vmem:[#allocation9 + $0x98] sm:$0xff]  }
 0x283   :  { %2246 = vmatpush1.bf16.msra.mxu0 %v3555_v5  ;;  %2328 = vmatpush1.bf16.msra.mxu1 %v3558_v6  ;;  %v3632_v5 = vld [vmem:[#allocation9 + $0xe0] sm:$0xff]  }
 0x284   :  { %2247 = vmatprep.subr.bf16.mxu0 %v3563_v7  ;;  %2329 = vmatprep.subr.bf16.mxu1 %v3566_v8  ;;  %v3633_v6 = vld [vmem:[#allocation9 + $0x20] sm:$0xff]   ;;  %v3635_v8 = vld [vmem:[#allocation9 + $0x68] sm:$0xff]  }
 0x285   :  { %v3634_v7 = vld [vmem:[#allocation9 + $0xa0] sm:$0xff]  }
 0x287   :  { %2248 = vmatpush1.bf16.msra.mxu0 %v3561_v9  ;;  %2330 = vmatpush1.bf16.msra.mxu1 %v3564_v10  ;;  %v3636_v9 = vld [vmem:[#allocation9 + $0xe8] sm:$0xff]  }
 0x288   :  { %2249 = vmatprep.subr.bf16.mxu0 %v3569_v11  ;;  %2331 = vmatprep.subr.bf16.mxu1 %v3572_v12  ;;  %v3637_v10 = vld [vmem:[#allocation9 + $0x28] sm:$0xff]   ;;  %v3639_v12 = vld [vmem:[#allocation9 + $0x70] sm:$0xff]  }
 0x289   :  { %v3638_v11 = vld [vmem:[#allocation9 + $0xa8] sm:$0xff]  }
 0x28b   :  { %2250 = vmatpush1.bf16.msra.mxu0 %v3567_v13  ;;  %2332 = vmatpush1.bf16.msra.mxu1 %v3570_v14  ;;  %v3640_v13 = vld [vmem:[#allocation9 + $0xf0] sm:$0xff]  }
 0x28c   :  { %2251 = vmatprep.subr.bf16.mxu0 %v3575_v15  ;;  %2333 = vmatprep.subr.bf16.mxu1 %v3578_v16  ;;  %v3641_v14 = vld [vmem:[#allocation9 + $0x30] sm:$0xff]   ;;  %v3643_v16 = vld [vmem:[#allocation9 + $0x78] sm:$0xff]  }
 0x28d   :  { %v3642_v15 = vld [vmem:[#allocation9 + $0xb0] sm:$0xff]  }
 0x28f   :  { %2252 = vmatpush1.bf16.msra.mxu0 %v3573_v18  ;;  %2334 = vmatpush1.bf16.msra.mxu1 %v3576_v3  ;;  %v3644_v18 = vld [vmem:[#allocation9 + $0xf8] sm:$0xff]  }
 0x290   :  { %2253 = vmatprep.subr.bf16.mxu0 %v3581_v19  ;;  %2335 = vmatprep.subr.bf16.mxu1 %v3584_v20  ;;  %v3645_v3 = vld [vmem:[#allocation9 + $0x38] sm:$0xff]  }
 0x291   :  { %v3646_v19 = vld [vmem:[#allocation9 + $0xb8] sm:$0xff]  }
 0x292   :  { %v1530_v20 = vld [vmem:[%s3947_s6] sm:$0xf] }
 0x293   :  { %2254 = vmatpush1.bf16.msra.mxu0 %v3579_v22  ;;  %2336 = vmatpush1.bf16.msra.mxu1 %v3582_v23  ;;  %v1535_v22 = vrot.slane %v1530_v20, %v3889_v39  ;;  %v1543_v23 = vrot.slane %v1530_v20, %v3898_v52 }
 0x294   :  { %2255 = vmatprep.subr.bf16.mxu0 %v3587_v24  ;;  %2337 = vmatprep.subr.bf16.mxu1 %v3590_v25  ;;  %v1539_v24 = vrot.slane %v1530_v20, %v3894_v41  ;;  %v1547_v25 = vrot.slane %v1530_v20, %v3900_v54 }
 0x297   :  { %2256 = vmatpush1.bf16.msra.mxu0 %v3585_v26  ;;  %2338 = vmatpush1.bf16.msra.mxu1 %v3588_v27 }
 0x298   :  { %2257 = vmatprep.subr.bf16.mxu0 %v3593_v28  ;;  %2339 = vmatprep.subr.bf16.mxu1 %v3596_v29 }
 0x29b   :  { %2258 = vmatpush1.bf16.msra.mxu0 %v3591_v30  ;;  %2340 = vmatpush1.bf16.msra.mxu1 %v3594_v31 }
 0x29c   :  { %2259 = vmatprep.subr.bf16.mxu0 %v3599_v33  ;;  %2341 = vmatprep.subr.bf16.mxu1 %v3602_v34 }
 0x29f   :  { %2260 = vmatpush1.bf16.msra.mxu0 %v3597_v35  ;;  %2342 = vmatpush1.bf16.msra.mxu1 %v3600_v36 }
 0x2a0   :  { %2261 = vmatprep.subr.bf16.mxu0 %v3605_v38  ;;  %2343 = vmatprep.subr.bf16.mxu1 %v3608_v40 }
 0x2a3   :  { %2262 = vmatpush1.bf16.msra.mxu0 %v3603_v42  ;;  %2344 = vmatpush1.bf16.msra.mxu1 %v3606_v43 }
 0x2a4   :  { %2263 = vmatprep.subr.bf16.mxu0 %v3611_v17  ;;  %2345 = vmatprep.subr.bf16.mxu1 %v3614_v45 }
 0x2a7   :  { %2264 = vmatpush1.bf16.msra.mxu0 %v3609_v46  ;;  %2346 = vmatpush1.bf16.msra.mxu1 %v3612_v47 }
 0x2a8   :  { %3095 = vmatprep.subr.bf16.mxu0 %v3615_v21  ;;  %3117 = vmatprep.subr.bf16.mxu1 %v3616_v49  ;;  %v2715_v21 = vld [vmem:[#allocation3] sm:$0x1] }
 0x2a9   :  { %2718 = vperm.xlu0 %3182, %v2715_v21  }
 0x2aa   :  { %2266 = vmatmul.mubr.bf16.vlgmr.msra.gmra.mrb[8].mxu0 %v1400_v53  ;;  %2348 = vmatmul.mubr.bf16.vlgmr.msra.gmra.mrb[8].mxu1 %v1400_v53 }
 0x2ab   :  { %3096 = vmatpush3.bf16.msra.mxu0 %v3617_v50  ;;  %3118 = vmatpush3.bf16.msra.mxu1 %v3618_v51  ;;  %v3062_v51 = vld [vmem:[%s3949_s8] ss:$0 sm:$0xff] }
 0x2ac   :  { %3097 = vmatprep.subr.bf16.mxu0 %v3619_v55  ;;  %3119 = vmatprep.subr.bf16.mxu1 %v3620_v56 }
 0x2af   :  { %3098 = vmatpush3.bf16.msra.mxu0 %v3621_v57  ;;  %3120 = vmatpush3.bf16.msra.mxu1 %v3622_v58 }
 0x2b0   :  { %3099 = vmatprep.subr.bf16.mxu0 %v3623_v59  ;;  %3121 = vmatprep.subr.bf16.mxu1 %v3624_v60 }
 0x2b3   :  { %3100 = vmatpush3.bf16.msra.mxu0 %v3625_v61  ;;  %3122 = vmatpush3.bf16.msra.mxu1 %v3626_v62 }
 0x2b4   :  { %3101 = vmatprep.subr.bf16.mxu0 %v3627_v63  ;;  %3123 = vmatprep.subr.bf16.mxu1 %v3628_v0 }
 0x2b7   :  { %3102 = vmatpush3.bf16.msra.mxu0 %v3629_v1  ;;  %3124 = vmatpush3.bf16.msra.mxu1 %v3630_v2 }
 0x2b8   :  { %3103 = vmatprep.subr.bf16.mxu0 %v3631_v4  ;;  %3125 = vmatprep.subr.bf16.mxu1 %v3632_v5  ;;  %v2713_v4 = vld [vmem:[%s3950_s9] sm:$0x1] }
 0x2bb   :  { %3104 = vmatpush3.bf16.msra.mxu0 %v3633_v6  ;;  %3126 = vmatpush3.bf16.msra.mxu1 %v3634_v7 }
 0x2bc   :  { %3105 = vmatprep.subr.bf16.mxu0 %v3635_v8  ;;  %3127 = vmatprep.subr.bf16.mxu1 %v3636_v9 }
 0x2bf   :  { %3106 = vmatpush3.bf16.msra.mxu0 %v3637_v10  ;;  %3128 = vmatpush3.bf16.msra.mxu1 %v3638_v11 }
 0x2c0   :  { %3107 = vmatprep.subr.bf16.mxu0 %v3639_v12  ;;  %3129 = vmatprep.subr.bf16.mxu1 %v3640_v13 }
 0x2c3   :  { %3108 = vmatpush3.bf16.msra.mxu0 %v3641_v14  ;;  %3130 = vmatpush3.bf16.msra.mxu1 %v3642_v15 }
 0x2c4   :  { %3109 = vmatprep.subr.bf16.mxu0 %v3643_v16  ;;  %3131 = vmatprep.subr.bf16.mxu1 %v3644_v18 }
 0x2c7   :  { %3110 = vmatpush3.bf16.msra.mxu0 %v3645_v3  ;;  %3132 = vmatpush3.bf16.msra.mxu1 %v3646_v19 }
 0x2c8   :  { %3141 = vmatprep.subr.bf16.mxu0 %v3750_v48 }
 0x328   :  { %v2719_v5 = vpop.permute.xlu0 %2718 }
 0x329   :  { %v2724_v6 = vrot.slane %v2719_v5, %v3889_v39 }
 0x37d   :  { %v2267_v26 = vpop.f32.mrb[8].mxu0  ;;  %v2349_v27 = vpop.f32.mrb[8].mxu1 }
 0x37e   :  { %v3151_v28 = vadd.f32 %v2267_v26, %v1535_v22  ;;  %v3153_v29 = vadd.f32 %v2349_v27, %v1543_v23  ;;  %v2269_v30 = vpop.f32.mrb[9].mxu0  ;;  %v2351_v31 = vpop.f32.mrb[9].mxu1 }
 0x37f   :  { %v3152_v32 = vadd.f32 %v2269_v30, %v1539_v24  ;;  %v3154_v33 = vadd.f32 %v2351_v31, %v1547_v25  ;;  %v2271_v34 = vpop.f32.mrb[10].mxu0  ;;  %v2353_v35 = vpop.f32.mrb[10].mxu1 }
 0x380   :  { %v2356_v36 = vmul.f32 0.2, %v3151_v28  ;;  %v2358_v37 = vmul.f32 0.2, %v3153_v29  ;;  %v2272_v38 = vpop.f32.mrb[11].mxu0  ;;  %v2354_v40 = vpop.f32.mrb[11].mxu1 }
 0x381   :  { %v2357_v42 = vmul.f32 0.2, %v3152_v32  ;;  %v2359_v52 = vmul.f32 0.2, %v3154_v33 }
 0x382   :  { %v2360_v43 = vmax.f32 %v3151_v28, %v2356_v36  ;;  %v2362_v41 = vmax.f32 %v3153_v29, %v2358_v37 }
 0x383   :  { %v2361_v44 = vmax.f32 %v3152_v32, %v2357_v42  ;;  %v2363_v54 = vmax.f32 %v3154_v33, %v2359_v52 }
 0x384   :  { %v2364_v46 = vpack.c.bf16 %v2360_v43, %v2360_v43  ;;  %v2366_v47 = vpack.c.bf16 %v2362_v41, %v2362_v41 }
 0x385   :  { %v2365_v17 = vpack.c.bf16 %v2361_v44, %v2361_v44  ;;  %v2367_v45 = vpack.c.bf16 %v2363_v54, %v2363_v54 }
 0x387   :  { %2663 = vmatprep.mubr.bf16.mxu0 %v2365_v17  ;;  %2703 = vmatprep.mubr.bf16.mxu1 %v2367_v45 }
 0x388   :  { %2664 = vmatmul.mubr.bf16.vlgmr.msra.gmra.mrb[12].mxu0 %v2364_v46  ;;  %2704 = vmatmul.mubr.bf16.vlgmr.msra.gmra.mrb[12].mxu1 %v2366_v47 }
 0x389   :  { %3143 = vmatprep.mubr.msk.bf16.mxu0 %vm3751_vm0, %v3750_v48 }
 0x45b   :  { %v3111_v49 = vpop.f32.mrb[12].mxu0  ;;  %v3133_v50 = vpop.f32.mrb[12].mxu1 }
 0x45c   :  { %v3112_v53 = vpop.f32.mrb[13].mxu0  ;;  %v3134_v55 = vpop.f32.mrb[13].mxu1 }
 0x45d   :  { %v3113_v56 = vadd.f32 %v3112_v53, %v3111_v49  ;;  %v3135_v57 = vadd.f32 %v3134_v55, %v3133_v50  ;;  %v3114_v58 = vpop.f32.mrb[14].mxu0  ;;  %v3136_v59 = vpop.f32.mrb[14].mxu1 }
 0x45e   :  { %v3115_v60 = vpop.f32.mrb[15].mxu0  ;;  %v3137_v61 = vpop.f32.mrb[15].mxu1 }
 0x45f   :  { %v2666_v62 = vadd.f32 %v3113_v56, %v3062_v51 }
 0x461   :  { %v2706_v63 = vadd.f32 %v3135_v57, %v2666_v62 }
 0x463   :  { %v2711_v0 = vmul.f32 0.2, %v2706_v63 }
 0x465   :  { %v2712_v1 = vmax.f32 %v2706_v63, %v2711_v0 }
 0x467   :  { %v2714_v2 = vpack.c.bf16 %v2712_v1, %v2712_v1 }
 0x469   :  { %3142 = vmatpush3.bf16.xpose.msra.mxu0 %v2714_v2 }
 0x470   :  { %3144 = vmatmul.mubr.bf16.vlgmr.msra.gmra.mrb[16].mxu0 %v2713_v4 }
 0x543   :  { %v2759_v7 = vpop.f32.mrb[16].mxu0 }
 0x544   :  { %v2760_v8 = vadd.f32 %v2759_v7, %v2724_v6  ;;  %v3145_v9 = vpop.f32.mrb[17].mxu0 }
 0x545   :  { %v2762_v10 = vpop.f32.mrb[18].mxu0 }
 0x546   :  { %2766 = vst.msk [vmem:[%s3952_s11] sm:$0x1] %vm2765_vm1, %v2760_v8  ;;  %v3146_v11 = vpop.f32.mrb[19].mxu0 }
 0x547   :  { %2771 = vsyncpa [#allocation5], 1 }
 0x548   :  { %2772 = vsyncpa [#allocation7], 1 }
 0x549   :  { %2773 = vsyncpa [#allocation10], 1 }

// kernel: discriminator_cgan_forward.1
= control target key start
LH: loop header
LB: loop body
LE: loop exit
PB: predicated region body
PF: predicated region fallthrough
CT: control target
= control target key end

     0   :  { %s3941_s0 = inlined_call_operand.vmem [shape: bf16[8,128], index: 0, kind: input, shape index: {}]   ;;  %s3942_s1 = inlined_call_operand.hbm [shape: bf16[128,512], index: 1, kind: input, shape index: {}]   ;;  %s3943_s2 = inlined_call_operand.vmem [shape: f32[1,512], index: 2, kind: input, shape index: {}]   ;;  %s3944_s3 = inlined_call_operand.hbm [shape: bf16[512,512], index: 3, kind: input, shape index: {}]   ;;  %s3945_s4 = inlined_call_operand.vmem [shape: f32[1,512], index: 4, kind: input, shape index: {}]   ;;  %s3946_s5 = inlined_call_operand.hbm [shape: bf16[512,512], index: 5, kind: input, shape index: {}]   ;;  %s3947_s6 = inlined_call_operand.vmem [shape: f32[1,512], index: 6, kind: input, shape index: {}]   ;;  %s3948_s7 = inlined_call_operand.hbm [shape: bf16[512,128], index: 7, kind: input, shape index: {}]   ;;  %s3949_s8 = inlined_call_operand.vmem [shape: f32[1,128], index: 8, kind: input, shape index: {}]   ;;  %s3950_s9 = inlined_call_operand.vmem [shape: bf16[1,128], index: 9, kind: input, shape index: {}]   ;;  %s3951_s10 = inlined_call_operand.<no memory space> [shape: f32[1,1], index: 10, kind: input, shape index: {}]   ;;  %s3952_s11 = inlined_call_operand.vmem [shape: f32[1,8], index: 11, kind: output, shape index: {}]  }
   0x1   :  { %v16_v0 = vstv %s3951_s10 }
   0x2   :  { %17 = vst [vmem:[#allocation3] sm:$0x1] %v16_v0 }
   0x3   :  { %18 = vsyncpa [#allocation5], 0 }
   0x4   :  { %19 = vsyncpa [#allocation7], 0 }
   0x5   :  { %20 = vsyncpa [#allocation10], 0  ;;  %s3741_s19 = smov [#allocation6]   ;;  %s3742_s21 = smov [#allocation4]  }
   0x6   :  { %s42_s20 = sshll.u32 %s3741_s19, 4  ;;  %s28_s22 = sshll.u32 %s3742_s21, 4  ;;  %s43_s20 = int_to_ptr.vmem [resolvable:$true] %s42_s20  ;;  %s3815_s22 = int_to_ptr.vmem [resolvable:$true] %s28_s22 }
   0x7   :  { %s3647_s25 = scalar_lea.hbm %s3944_s3, 16384 }
   0x8   :  { %p3648_p0 = scmp.ne.s32.totalorder %s3944_s3, %s3647_s25  ;;  %p3651_p1 = scmp.lt.u32.totalorder %s3647_s25, %s3944_s3 }
   0xa   :  { %p3653_p2 = pnand %p3651_p1, %p3648_p0 }
   0xc   :  { %3656 = shalt.err (!%p3653_p2)
}
   0xd   :  { %s3657_s29 = scalar_lea.vmem %s43_s20, 16384  ;;  %p3662_p4 = scmp.lt.s32.totalorder %s43_s20, %s43_s20 }
   0xe   :  { %p3658_p3 = scmp.ne.s32.totalorder %s43_s20, %s3657_s29  ;;  %p3663_p5 = scmp.lt.s32.totalorder %s3657_s29, %s3657_s29 }
  0x10   :  { %p3664_p6 = por %p3663_p5, %p3662_p4 }
  0x12   :  { %p3665_p7 = pnand %p3664_p6, %p3658_p3 }
  0x14   :  { %3668 = shalt.err (!%p3665_p7)
}
  0x15   :  { %s3743_s30 = smov 256   ;;  %s3744_s12 = smov 16  }
  0x16   :  { %48 = dma.hbm_to_vmem [thread:$0]  %s3944_s3, 16384, %s43_s20, [#allocation7], %s3743_s30, %s3743_s30, %s3744_s12  }
  0x17   :  { %s3669_s17 = scalar_lea.hbm %s3942_s1, 4096 }
  0x18   :  { %p3670_p8 = scmp.ne.s32.totalorder %s3942_s1, %s3669_s17  ;;  %p3673_p9 = scmp.lt.u32.totalorder %s3669_s17, %s3942_s1 }
  0x1a   :  { %p3675_p10 = pnand %p3673_p9, %p3670_p8 }
  0x1c   :  { %3678 = shalt.err (!%p3675_p10)
}
  0x1d   :  { %s3679_s24 = scalar_lea.vmem %s3815_s22, 4096  ;;  %p3684_p12 = scmp.lt.s32.totalorder %s3815_s22, %s3815_s22 }
  0x1e   :  { %p3680_p11 = scmp.ne.s32.totalorder %s3815_s22, %s3679_s24  ;;  %p3685_p13 = scmp.lt.s32.totalorder %s3679_s24, %s3679_s24 }
  0x20   :  { %p3686_p0 = por %p3685_p13, %p3684_p12 }
  0x22   :  { %p3687_p1 = pnand %p3686_p0, %p3680_p11 }
  0x24   :  { %3690 = shalt.err (!%p3687_p1)
}
  0x25   :  { %34 = dma.hbm_to_vmem [thread:$0]  %s3942_s1, 4096, %s3815_s22, [#allocation5], %s3743_s30, %s3743_s30, %s3744_s12  }
  0x26   :  { %s3745_s25 = smov [#allocation8]   ;;  %s3746_s27 = smov [#allocation9]  }
  0x27   :  { %s56_s26 = sshll.u32 %s3745_s25, 4  ;;  %s70_s10 = sshll.u32 %s3746_s27, 4  ;;  %s57_s26 = int_to_ptr.vmem [resolvable:$true] %s56_s26  ;;  %s3852_s10 = int_to_ptr.vmem [resolvable:$true] %s70_s10 }
  0x28   :  { %s3691_s13 = scalar_lea.hbm %s3946_s5, 16384 }
  0x29   :  { %p3692_p2 = scmp.ne.s32.totalorder %s3946_s5, %s3691_s13  ;;  %p3695_p3 = scmp.lt.u32.totalorder %s3691_s13, %s3946_s5 }
  0x2b   :  { %p3697_p4 = pnand %p3695_p3, %p3692_p2 }
  0x2d   :  { %3700 = shalt.err (!%p3697_p4)
}
  0x2e   :  { %s3701_s1 = scalar_lea.vmem %s57_s26, 16384  ;;  %p3706_p6 = scmp.lt.s32.totalorder %s57_s26, %s57_s26 }
  0x2f   :  { %p3702_p5 = scmp.ne.s32.totalorder %s57_s26, %s3701_s1  ;;  %p3707_p7 = scmp.lt.s32.totalorder %s3701_s1, %s3701_s1 }
  0x31   :  { %p3708_p8 = por %p3707_p7, %p3706_p6 }
  0x33   :  { %p3709_p9 = pnand %p3708_p8, %p3702_p5 }
  0x35   :  { %3712 = shalt.err (!%p3709_p9)
}
  0x36   :  { %62 = dma.hbm_to_vmem [thread:$0]  %s3946_s5, 16384, %s57_s26, [#allocation7], %s3743_s30, %s3743_s30, %s3744_s12  }
  0x37   :  { %s3713_s23 = scalar_lea.hbm %s3948_s7, 4096 }
  0x38   :  { %p3714_p10 = scmp.ne.s32.totalorder %s3948_s7, %s3713_s23  ;;  %p3717_p11 = scmp.lt.u32.totalorder %s3713_s23, %s3948_s7 }
  0x3a   :  { %p3719_p12 = pnand %p3717_p11, %p3714_p10 }
  0x3c   :  { %3722 = shalt.err (!%p3719_p12)
}
  0x3d   :  { %s3723_s27 = scalar_lea.vmem %s3852_s10, 4096  ;;  %p3728_p0 = scmp.lt.s32.totalorder %s3852_s10, %s3852_s10 }
  0x3e   :  { %p3724_p13 = scmp.ne.s32.totalorder %s3852_s10, %s3723_s27  ;;  %p3729_p1 = scmp.lt.s32.totalorder %s3723_s27, %s3723_s27 }
  0x40   :  { %p3730_p2 = por %p3729_p1, %p3728_p0 }
  0x42   :  { %p3731_p3 = pnand %p3730_p2, %p3724_p13 }
  0x44   :  { %3734 = shalt.err (!%p3731_p3)
}
  0x45   :  { %s3747_s5 = smov 64   ;;  %s3748_s30 = smov 4  }
  0x46   :  { %76 = dma.hbm_to_vmem [thread:$0]  %s3948_s7, 4096, %s3852_s10, [#allocation10], %s3747_s5, %s3747_s5, %s3748_s30  }
  0x47   :  { %3735 = dma.done.wait [#allocation5], 4096  }
  0x48   :  { %3736 = vsyncadd [#allocation5], 4294963200 }
  0x49   :  { %3737 = dma.done.wait [#allocation7], 32768  }
  0x4a   :  { %3738 = vsyncadd [#allocation7], 4294934528 }
  0x4b   :  { %3739 = dma.done.wait [#allocation10], 4096  }
  0x4c   :  { %3740 = vsyncadd [#allocation10], 4294963200  ;;  %v3749_v1 = vmov 0   ;;  %v3183_v2 = vld [vmem:[#allocation4 + $0x4] ss:$16 sps:$4 sm:$0xff]   ;;  %vm3751_vm0 = vmmov 0  }
  0x4d   :  { %333 = vmatprep.mubr.bf16.mxu0 %v3749_v1  ;;  %374 = vmatprep.mubr.bf16.mxu1 %v3749_v1  ;;  %v3185_v3 = vld [vmem:[#allocation4] ss:$16 sps:$4 sm:$0xff]   ;;  %v3186_v4 = vld [vmem:[#allocation4 + $0x24] ss:$16 sps:$4 sm:$0xff]   ;;  %v3207_v11 = vld [vmem:[#allocation4 + $0xc] ss:$16 sps:$4 sm:$0xff]  }
  0x4e   :  { %3182 = vset.pattern.permute.xlu0 %v3749_v1  ;;  %301 = vmatprep.subr.bf16.mxu0 %v3183_v2  ;;  %v3188_v5 = vld [vmem:[#allocation4 + $0x20] ss:$16 sps:$4 sm:$0xff]   ;;  %v3189_v6 = vld [vmem:[#allocation4 + $0x44] ss:$16 sps:$4 sm:$0xff]   ;;  %v3209_v12 = vld [vmem:[#allocation4 + $0x8] ss:$16 sps:$4 sm:$0xff]  }
  0x4f   :  { %302 = vmatpush1.bf16.msra.mxu0 %v3185_v3  ;;  %v3191_v7 = vld [vmem:[#allocation4 + $0x40] ss:$16 sps:$4 sm:$0xff]   ;;  %v3192_v8 = vld [vmem:[#allocation4 + $0x64] ss:$16 sps:$4 sm:$0xff]   ;;  %342 = vmatprep.subr.bf16.mxu1 %v3207_v11  ;;  %v3210_v13 = vld [vmem:[#allocation4 + $0x2c] ss:$16 sps:$4 sm:$0xff]  }
  0x50   :  { %303 = vmatprep.subr.bf16.mxu0 %v3186_v4  ;;  %v3194_v9 = vld [vmem:[#allocation4 + $0x60] ss:$16 sps:$4 sm:$0xff]   ;;  %v3195_v10 = vld [vmem:[#allocation4 + $0x84] ss:$16 sps:$4 sm:$0xff]   ;;  %343 = vmatpush1.bf16.msra.mxu1 %v3209_v12  ;;  %v3212_v15 = vld [vmem:[#allocation4 + $0x28] ss:$16 sps:$4 sm:$0xff]  }
  0x51   :  { %v3197_v14 = vld [vmem:[#allocation4 + $0x80] ss:$16 sps:$4 sm:$0xff]   ;;  %344 = vmatprep.subr.bf16.mxu1 %v3210_v13  ;;  %v3213_v16 = vld [vmem:[#allocation4 + $0x4c] ss:$16 sps:$4 sm:$0xff]   ;;  %v3198_v17 = vld [vmem:[#allocation4 + $0xa4] ss:$16 sps:$4 sm:$0xff]  }
  0x52   :  { %v3200_v18 = vld [vmem:[#allocation4 + $0xa0] ss:$16 sps:$4 sm:$0xff]   ;;  %v3215_v19 = vld [vmem:[#allocation4 + $0x48] ss:$16 sps:$4 sm:$0xff]   ;;  %v3216_v20 = vld [vmem:[#allocation4 + $0x6c] ss:$16 sps:$4 sm:$0xff]  }
  0x53   :  { %304 = vmatpush1.bf16.msra.mxu0 %v3188_v5  ;;  %v3201_v21 = vld [vmem:[#allocation4 + $0xc4] ss:$16 sps:$4 sm:$0xff]   ;;  %v3203_v22 = vld [vmem:[#allocation4 + $0xc0] ss:$16 sps:$4 sm:$0xff]   ;;  %v3218_v23 = vld [vmem:[#allocation4 + $0x68] ss:$16 sps:$4 sm:$0xff]  }
  0x54   :  { %305 = vmatprep.subr.bf16.mxu0 %v3189_v6  ;;  %345 = vmatpush1.bf16.msra.mxu1 %v3212_v15  ;;  %v3219_v24 = vld [vmem:[#allocation4 + $0x8c] ss:$16 sps:$4 sm:$0xff]   ;;  %v3204_v25 = vld [vmem:[#allocation4 + $0xe4] ss:$16 sps:$4 sm:$0xff]   ;;  %v3206_v26 = vld [vmem:[#allocation4 + $0xe0] ss:$16 sps:$4 sm:$0xff]  }
  0x55   :  { %346 = vmatprep.subr.bf16.mxu1 %v3213_v16  ;;  %v3221_v27 = vld [vmem:[#allocation4 + $0x88] ss:$16 sps:$4 sm:$0xff]   ;;  %v3222_v28 = vld [vmem:[#allocation4 + $0xac] ss:$16 sps:$4 sm:$0xff]   ;;  %v3233_v29 = vld [vmem:[#allocation6 + $0x4] ss:$16 sps:$4 sm:$0xff]  }
  0x56   :  { %v108_v30 = vld [vmem:[%s3941_s0] sm:$0xf]  ;;  %v3224_v31 = vld [vmem:[#allocation4 + $0xa8] ss:$16 sps:$4 sm:$0xff]   ;;  %v3239_v34 = vld [vmem:[#allocation6 + $0x24] ss:$16 sps:$4 sm:$0xff]  }
  0x57   :  { %306 = vmatpush1.bf16.msra.mxu0 %v3191_v7  ;;  %v3225_v32 = vld [vmem:[#allocation4 + $0xcc] ss:$16 sps:$4 sm:$0xff]   ;;  %v3231_v33 = vld [vmem:[#allocation6] ss:$16 sps:$4 sm:$0xff]   ;;  %v3227_v35 = vld [vmem:[#allocation4 + $0xc8] ss:$16 sps:$4 sm:$0xff]  }
  0x58   :  { %307 = vmatprep.subr.bf16.mxu0 %v3192_v8  ;;  %347 = vmatpush1.bf16.msra.mxu1 %v3215_v19  ;;  %v3228_v36 = vld [vmem:[#allocation4 + $0xec] ss:$16 sps:$4 sm:$0xff]   ;;  %v3237_v37 = vld [vmem:[#allocation6 + $0x20] ss:$16 sps:$4 sm:$0xff]   ;;  %v3245_v38 = vld [vmem:[#allocation6 + $0x44] ss:$16 sps:$4 sm:$0xff]  }
  0x59   :  { %348 = vmatprep.subr.bf16.mxu1 %v3216_v20  ;;  %v3230_v39 = vld [vmem:[#allocation4 + $0xe8] ss:$16 sps:$4 sm:$0xff]   ;;  %v3236_v40 = vld [vmem:[#allocation6 + $0xc] ss:$16 sps:$4 sm:$0xff]   ;;  %v3243_v41 = vld [vmem:[#allocation6 + $0x40] ss:$16 sps:$4 sm:$0xff]  }
  0x5a   :  { %v3251_v42 = vld [vmem:[#allocation6 + $0x64] ss:$16 sps:$4 sm:$0xff]   ;;  %v3234_v43 = vld [vmem:[#allocation6 + $0x8] ss:$16 sps:$4 sm:$0xff]   ;;  %v3242_v44 = vld [vmem:[#allocation6 + $0x2c] ss:$16 sps:$4 sm:$0xff]  }
  0x5b   :  { %308 = vmatpush1.bf16.msra.mxu0 %v3194_v9  ;;  %v3249_v45 = vld [vmem:[#allocation6 + $0x60] ss:$16 sps:$4 sm:$0xff]   ;;  %v3257_v46 = vld [vmem:[#allocation6 + $0x84] ss:$16 sps:$4 sm:$0xff]   ;;  %v3240_v47 = vld [vmem:[#allocation6 + $0x28] ss:$16 sps:$4 sm:$0xff]  }
  0x5c   :  { %309 = vmatprep.subr.bf16.mxu0 %v3195_v10  ;;  %349 = vmatpush1.bf16.msra.mxu1 %v3218_v23  ;;  %v3248_v48 = vld [vmem:[#allocation6 + $0x4c] ss:$16 sps:$4 sm:$0xff]   ;;  %v3255_v49 = vld [vmem:[#allocation6 + $0x80] ss:$16 sps:$4 sm:$0xff]   ;;  %v3263_v50 = vld [vmem:[#allocation6 + $0xa4] ss:$16 sps:$4 sm:$0xff]  }
  0x5d   :  { %350 = vmatprep.subr.bf16.mxu1 %v3219_v24  ;;  %v3246_v51 = vld [vmem:[#allocation6 + $0x48] ss:$16 sps:$4 sm:$0xff]   ;;  %v3254_v52 = vld [vmem:[#allocation6 + $0x6c] ss:$16 sps:$4 sm:$0xff]   ;;  %v3261_v53 = vld [vmem:[#allocation6 + $0xa0] ss:$16 sps:$4 sm:$0xff]  }
  0x5e   :  { %v3269_v54 = vld [vmem:[#allocation6 + $0xc4] ss:$16 sps:$4 sm:$0xff]   ;;  %v3252_v55 = vld [vmem:[#allocation6 + $0x68] ss:$16 sps:$4 sm:$0xff]   ;;  %v3260_v56 = vld [vmem:[#allocation6 + $0x8c] ss:$16 sps:$4 sm:$0xff]  }
  0x5f   :  { %310 = vmatpush1.bf16.msra.mxu0 %v3197_v14  ;;  %v3267_v57 = vld [vmem:[#allocation6 + $0xc0] ss:$16 sps:$4 sm:$0xff]   ;;  %v3275_v58 = vld [vmem:[#allocation6 + $0xe4] ss:$16 sps:$4 sm:$0xff]   ;;  %v3258_v59 = vld [vmem:[#allocation6 + $0x88] ss:$16 sps:$4 sm:$0xff]  }
  0x60   :  { %311 = vmatprep.subr.bf16.mxu0 %v3198_v17  ;;  %351 = vmatpush1.bf16.msra.mxu1 %v3221_v27  ;;  %v3266_v60 = vld [vmem:[#allocation6 + $0xac] ss:$16 sps:$4 sm:$0xff]   ;;  %v3273_v61 = vld [vmem:[#allocation6 + $0xe0] ss:$16 sps:$4 sm:$0xff]   ;;  %v3281_v62 = vld [vmem:[#allocation6 + $0x104] ss:$16 sps:$4 sm:$0xff]  }
  0x61   :  { %352 = vmatprep.subr.bf16.mxu1 %v3222_v28  ;;  %v3264_v63 = vld [vmem:[#allocation6 + $0xa8] ss:$16 sps:$4 sm:$0xff]   ;;  %v3272_v0 = vld [vmem:[#allocation6 + $0xcc] ss:$16 sps:$4 sm:$0xff]   ;;  %v3279_v1 = vld [vmem:[#allocation6 + $0x100] ss:$16 sps:$4 sm:$0xff]  }
  0x62   :  { %v3287_v2 = vld [vmem:[#allocation6 + $0x124] ss:$16 sps:$4 sm:$0xff]   ;;  %v3270_v3 = vld [vmem:[#allocation6 + $0xc8] ss:$16 sps:$4 sm:$0xff]   ;;  %v3278_v4 = vld [vmem:[#allocation6 + $0xec] ss:$16 sps:$4 sm:$0xff]  }
  0x63   :  { %312 = vmatpush1.bf16.msra.mxu0 %v3200_v18  ;;  %v3285_v5 = vld [vmem:[#allocation6 + $0x120] ss:$16 sps:$4 sm:$0xff]   ;;  %v3293_v6 = vld [vmem:[#allocation6 + $0x144] ss:$16 sps:$4 sm:$0xff]   ;;  %v3276_v7 = vld [vmem:[#allocation6 + $0xe8] ss:$16 sps:$4 sm:$0xff]  }
  0x64   :  { %313 = vmatprep.subr.bf16.mxu0 %v3201_v21  ;;  %353 = vmatpush1.bf16.msra.mxu1 %v3224_v31  ;;  %v3284_v8 = vld [vmem:[#allocation6 + $0x10c] ss:$16 sps:$4 sm:$0xff]   ;;  %v3291_v9 = vld [vmem:[#allocation6 + $0x140] ss:$16 sps:$4 sm:$0xff]   ;;  %v3299_v10 = vld [vmem:[#allocation6 + $0x164] ss:$16 sps:$4 sm:$0xff]  }
  0x65   :  { %354 = vmatprep.subr.bf16.mxu1 %v3225_v32  ;;  %v3282_v11 = vld [vmem:[#allocation6 + $0x108] ss:$16 sps:$4 sm:$0xff]   ;;  %v3290_v12 = vld [vmem:[#allocation6 + $0x12c] ss:$16 sps:$4 sm:$0xff]   ;;  %v3297_v13 = vld [vmem:[#allocation6 + $0x160] ss:$16 sps:$4 sm:$0xff]  }
  0x66   :  { %v3305_v14 = vld [vmem:[#allocation6 + $0x184] ss:$16 sps:$4 sm:$0xff]   ;;  %v3288_v15 = vld [vmem:[#allocation6 + $0x128] ss:$16 sps:$4 sm:$0xff]   ;;  %v3296_v16 = vld [vmem:[#allocation6 + $0x14c] ss:$16 sps:$4 sm:$0xff]  }
  0x67   :  { %314 = vmatpush1.bf16.msra.mxu0 %v3203_v22  ;;  %v3303_v17 = vld [vmem:[#allocation6 + $0x180] ss:$16 sps:$4 sm:$0xff]   ;;  %v3311_v18 = vld [vmem:[#allocation6 + $0x1a4] ss:$16 sps:$4 sm:$0xff]   ;;  %v3294_v19 = vld [vmem:[#allocation6 + $0x148] ss:$16 sps:$4 sm:$0xff]  }
  0x68   :  { %315 = vmatprep.subr.bf16.mxu0 %v3204_v25  ;;  %355 = vmatpush1.bf16.msra.mxu1 %v3227_v35  ;;  %v3302_v20 = vld [vmem:[#allocation6 + $0x16c] ss:$16 sps:$4 sm:$0xff]   ;;  %v3309_v21 = vld [vmem:[#allocation6 + $0x1a0] ss:$16 sps:$4 sm:$0xff]   ;;  %v3300_v22 = vld [vmem:[#allocation6 + $0x168] ss:$16 sps:$4 sm:$0xff]  }
  0x69   :  { %356 = vmatprep.subr.bf16.mxu1 %v3228_v36  ;;  %v3308_v23 = vld [vmem:[#allocation6 + $0x18c] ss:$16 sps:$4 sm:$0xff]   ;;  %v3306_v24 = vld [vmem:[#allocation6 + $0x188] ss:$16 sps:$4 sm:$0xff]   ;;  %v3317_v27 = vld [vmem:[#allocation6 + $0x1c4] ss:$16 sps:$4 sm:$0xff]  }
  0x6a   :  { %v3314_v25 = vld [vmem:[#allocation6 + $0x1ac] ss:$16 sps:$4 sm:$0xff]   ;;  %v3323_v31 = vld [vmem:[#allocation6 + $0x1e4] ss:$16 sps:$4 sm:$0xff]   ;;  %vm2765_vm1 = vcmask 57344  }
  0x6b   :  { %316 = vmatpush1.bf16.msra.mxu0 %v3206_v26  ;;  %v3312_v26 = vld [vmem:[#allocation6 + $0x1a8] ss:$16 sps:$4 sm:$0xff]   ;;  %v3320_v28 = vld [vmem:[#allocation6 + $0x1cc] ss:$16 sps:$4 sm:$0xff]   ;;  %v3329_v35 = vld [vmem:[#allocation6 + $0x204] ss:$16 sps:$4 sm:$0xff]  }
  0x6c   :  { %1226 = vmatprep.subr.bf16.mxu0 %v3233_v29  ;;  %357 = vmatpush1.bf16.msra.mxu1 %v3230_v39  ;;  %v3315_v29 = vld [vmem:[#allocation6 + $0x1c0] ss:$16 sps:$4 sm:$0xff]   ;;  %v3326_v32 = vld [vmem:[#allocation6 + $0x1ec] ss:$16 sps:$4 sm:$0xff]  }
  0x6d   :  { %1308 = vmatprep.subr.bf16.mxu1 %v3236_v40  ;;  %v3332_v36 = vld [vmem:[#allocation6 + $0x20c] ss:$16 sps:$4 sm:$0xff]  }
  0x6e   :  { %334 = vmatmul.mubr.bf16.vlgmr.msra.gmra.mrb[0].mxu0 %v108_v30  ;;  %v398_v40 = vld [vmem:[%s3943_s2] sm:$0xf] }
  0x6f   :  { %1227 = vmatpush1.bf16.msra.mxu0 %v3231_v33  ;;  %375 = vmatmul.mubr.bf16.vlgmr.msra.gmra.mrb[0].mxu1 %v108_v30  ;;  %v3318_v30 = vld [vmem:[#allocation6 + $0x1c8] ss:$16 sps:$4 sm:$0xff]   ;;  %v3321_v33 = vld [vmem:[#allocation6 + $0x1e0] ss:$16 sps:$4 sm:$0xff]  }
  0x70   :  { %1228 = vmatprep.subr.bf16.mxu0 %v3239_v34  ;;  %1309 = vmatpush1.bf16.msra.mxu1 %v3234_v43  ;;  %v3324_v34 = vld [vmem:[#allocation6 + $0x1e8] ss:$16 sps:$4 sm:$0xff]  }
  0x71   :  { %1310 = vmatprep.subr.bf16.mxu1 %v3242_v44 }
  0x73   :  { %1229 = vmatpush1.bf16.msra.mxu0 %v3237_v37  ;;  %v400_v37 = vlaneseq }
  0x74   :  { %1230 = vmatprep.subr.bf16.mxu0 %v3245_v38  ;;  %1311 = vmatpush1.bf16.msra.mxu1 %v3240_v47 }
  0x75   :  { %1312 = vmatprep.subr.bf16.mxu1 %v3248_v48  ;;  %v401_v38 = vshrl.u32 %v400_v37, 7  ;;  %v3375_v37 = vld [vmem:[#allocation6 + $0x300] ss:$16 sps:$4 sm:$0xff]  }
  0x77   :  { %1231 = vmatpush1.bf16.msra.mxu0 %v3243_v41  ;;  %v3889_v39 = vsub.s32 0, %v401_v38  ;;  %v3894_v41 = vsub.s32 1, %v401_v38 }
  0x78   :  { %1232 = vmatprep.subr.bf16.mxu0 %v3251_v42  ;;  %1313 = vmatpush1.bf16.msra.mxu1 %v3246_v51 }
  0x79   :  { %1314 = vmatprep.subr.bf16.mxu1 %v3254_v52  ;;  %v403_v42 = vrot.slane %v398_v40, %v3889_v39  ;;  %v407_v43 = vrot.slane %v398_v40, %v3894_v41  ;;  %v3898_v52 = vsub.s32 2, %v401_v38 }
  0x7b   :  { %1233 = vmatpush1.bf16.msra.mxu0 %v3249_v45 }
  0x7c   :  { %1234 = vmatprep.subr.bf16.mxu0 %v3257_v46  ;;  %1315 = vmatpush1.bf16.msra.mxu1 %v3252_v55 }
  0x7d   :  { %1316 = vmatprep.subr.bf16.mxu1 %v3260_v56 }
  0x7f   :  { %1235 = vmatpush1.bf16.msra.mxu0 %v3255_v49 }
  0x80   :  { %1236 = vmatprep.subr.bf16.mxu0 %v3263_v50  ;;  %1317 = vmatpush1.bf16.msra.mxu1 %v3258_v59  ;;  %v411_v59 = vrot.slane %v398_v40, %v3898_v52 }
  0x81   :  { %1318 = vmatprep.subr.bf16.mxu1 %v3266_v60 }
  0x83   :  { %1237 = vmatpush1.bf16.msra.mxu0 %v3261_v53 }
  0x84   :  { %1238 = vmatprep.subr.bf16.mxu0 %v3269_v54  ;;  %1319 = vmatpush1.bf16.msra.mxu1 %v3264_v63  ;;  %v3900_v54 = vsub.s32 3, %v401_v38  ;;  %v3378_v38 = vld [vmem:[#allocation6 + $0x308] ss:$16 sps:$4 sm:$0xff]  }
  0x85   :  { %1320 = vmatprep.subr.bf16.mxu1 %v3272_v0 }
  0x86   :  { %v415_v63 = vrot.slane %v398_v40, %v3900_v54  ;;  %v3383_v40 = vld [vmem:[#allocation6 + $0x324] ss:$16 sps:$4 sm:$0xff]  }
  0x87   :  { %1239 = vmatpush1.bf16.msra.mxu0 %v3267_v57  ;;  %v3327_v57 = vld [vmem:[#allocation6 + $0x200] ss:$16 sps:$4 sm:$0xff]  }
  0x88   :  { %1240 = vmatprep.subr.bf16.mxu0 %v3275_v58  ;;  %1321 = vmatpush1.bf16.msra.mxu1 %v3270_v3  ;;  %v3330_v58 = vld [vmem:[#allocation6 + $0x208] ss:$16 sps:$4 sm:$0xff]  }
  0x89   :  { %1322 = vmatprep.subr.bf16.mxu1 %v3278_v4 }
  0x8b   :  { %1241 = vmatpush1.bf16.msra.mxu0 %v3273_v61  ;;  %v3335_v61 = vld [vmem:[#allocation6 + $0x224] ss:$16 sps:$4 sm:$0xff]  }
  0x8c   :  { %1242 = vmatprep.subr.bf16.mxu0 %v3281_v62  ;;  %1323 = vmatpush1.bf16.msra.mxu1 %v3276_v7  ;;  %v3338_v62 = vld [vmem:[#allocation6 + $0x22c] ss:$16 sps:$4 sm:$0xff]  }
  0x8d   :  { %1324 = vmatprep.subr.bf16.mxu1 %v3284_v8 }
  0x8f   :  { %1243 = vmatpush1.bf16.msra.mxu0 %v3279_v1  ;;  %v3333_v1 = vld [vmem:[#allocation6 + $0x220] ss:$16 sps:$4 sm:$0xff]  }
  0x90   :  { %1244 = vmatprep.subr.bf16.mxu0 %v3287_v2  ;;  %1325 = vmatpush1.bf16.msra.mxu1 %v3282_v11  ;;  %v3336_v2 = vld [vmem:[#allocation6 + $0x228] ss:$16 sps:$4 sm:$0xff]   ;;  %v3339_v11 = vld [vmem:[#allocation6 + $0x240] ss:$16 sps:$4 sm:$0xff]  }
  0x91   :  { %1326 = vmatprep.subr.bf16.mxu1 %v3290_v12  ;;  %v3342_v12 = vld [vmem:[#allocation6 + $0x248] ss:$16 sps:$4 sm:$0xff]  }
  0x93   :  { %1245 = vmatpush1.bf16.msra.mxu0 %v3285_v5  ;;  %v3341_v5 = vld [vmem:[#allocation6 + $0x244] ss:$16 sps:$4 sm:$0xff]  }
  0x94   :  { %1246 = vmatprep.subr.bf16.mxu0 %v3293_v6  ;;  %1327 = vmatpush1.bf16.msra.mxu1 %v3288_v15  ;;  %v3344_v6 = vld [vmem:[#allocation6 + $0x24c] ss:$16 sps:$4 sm:$0xff]  }
  0x95   :  { %1328 = vmatprep.subr.bf16.mxu1 %v3296_v16 }
  0x97   :  { %1247 = vmatpush1.bf16.msra.mxu0 %v3291_v9 }
  0x98   :  { %1248 = vmatprep.subr.bf16.mxu0 %v3299_v10  ;;  %1329 = vmatpush1.bf16.msra.mxu1 %v3294_v19  ;;  %v3353_v19 = vld [vmem:[#allocation6 + $0x284] ss:$16 sps:$4 sm:$0xff]  }
  0x99   :  { %1330 = vmatprep.subr.bf16.mxu1 %v3302_v20  ;;  %v3356_v20 = vld [vmem:[#allocation6 + $0x28c] ss:$16 sps:$4 sm:$0xff]  }
  0x9b   :  { %1249 = vmatpush1.bf16.msra.mxu0 %v3297_v13  ;;  %v3347_v13 = vld [vmem:[#allocation6 + $0x264] ss:$16 sps:$4 sm:$0xff]  }
  0x9c   :  { %1250 = vmatprep.subr.bf16.mxu0 %v3305_v14  ;;  %1331 = vmatpush1.bf16.msra.mxu1 %v3300_v22  ;;  %v3350_v14 = vld [vmem:[#allocation6 + $0x26c] ss:$16 sps:$4 sm:$0xff]   ;;  %v3354_v22 = vld [vmem:[#allocation6 + $0x288] ss:$16 sps:$4 sm:$0xff]  }
  0x9d   :  { %1332 = vmatprep.subr.bf16.mxu1 %v3308_v23  ;;  %v3359_v23 = vld [vmem:[#allocation6 + $0x2a4] ss:$16 sps:$4 sm:$0xff]  }
  0x9f   :  { %1251 = vmatpush1.bf16.msra.mxu0 %v3303_v17  ;;  %v3345_v17 = vld [vmem:[#allocation6 + $0x260] ss:$16 sps:$4 sm:$0xff]  }
  0xa0   :  { %1252 = vmatprep.subr.bf16.mxu0 %v3311_v18  ;;  %1333 = vmatpush1.bf16.msra.mxu1 %v3306_v24  ;;  %v3348_v18 = vld [vmem:[#allocation6 + $0x268] ss:$16 sps:$4 sm:$0xff]   ;;  %v3362_v24 = vld [vmem:[#allocation6 + $0x2ac] ss:$16 sps:$4 sm:$0xff]  }
  0xa1   :  { %1334 = vmatprep.subr.bf16.mxu1 %v3314_v25  ;;  %v3357_v25 = vld [vmem:[#allocation6 + $0x2a0] ss:$16 sps:$4 sm:$0xff]  }
  0xa3   :  { %1253 = vmatpush1.bf16.msra.mxu0 %v3309_v21  ;;  %v3351_v21 = vld [vmem:[#allocation6 + $0x280] ss:$16 sps:$4 sm:$0xff]  }
  0xa4   :  { %1335 = vmatpush1.bf16.msra.mxu1 %v3312_v26  ;;  %1254 = vmatprep.subr.bf16.mxu0 %v3317_v27  ;;  %v3360_v26 = vld [vmem:[#allocation6 + $0x2a8] ss:$16 sps:$4 sm:$0xff]   ;;  %v3365_v27 = vld [vmem:[#allocation6 + $0x2c4] ss:$16 sps:$4 sm:$0xff]  }
  0xa5   :  { %1336 = vmatprep.subr.bf16.mxu1 %v3320_v28  ;;  %v3368_v28 = vld [vmem:[#allocation6 + $0x2cc] ss:$16 sps:$4 sm:$0xff]  }
  0xa7   :  { %1255 = vmatpush1.bf16.msra.mxu0 %v3315_v29  ;;  %v3363_v29 = vld [vmem:[#allocation6 + $0x2c0] ss:$16 sps:$4 sm:$0xff]  }
  0xa8   :  { %1337 = vmatpush1.bf16.msra.mxu1 %v3318_v30  ;;  %1256 = vmatprep.subr.bf16.mxu0 %v3323_v31  ;;  %v3366_v30 = vld [vmem:[#allocation6 + $0x2c8] ss:$16 sps:$4 sm:$0xff]   ;;  %v3371_v31 = vld [vmem:[#allocation6 + $0x2e4] ss:$16 sps:$4 sm:$0xff]  }
  0xa9   :  { %1338 = vmatprep.subr.bf16.mxu1 %v3326_v32  ;;  %v3374_v32 = vld [vmem:[#allocation6 + $0x2ec] ss:$16 sps:$4 sm:$0xff]  }
  0xab   :  { %1257 = vmatpush1.bf16.msra.mxu0 %v3321_v33  ;;  %v3369_v33 = vld [vmem:[#allocation6 + $0x2e0] ss:$16 sps:$4 sm:$0xff]  }
  0xac   :  { %1339 = vmatpush1.bf16.msra.mxu1 %v3324_v34  ;;  %1267 = vmatprep.subr.bf16.mxu0 %v3329_v35  ;;  %v3372_v34 = vld [vmem:[#allocation6 + $0x2e8] ss:$16 sps:$4 sm:$0xff]   ;;  %v3377_v35 = vld [vmem:[#allocation6 + $0x304] ss:$16 sps:$4 sm:$0xff]  }
  0xad   :  { %1349 = vmatprep.subr.bf16.mxu1 %v3332_v36  ;;  %v3380_v36 = vld [vmem:[#allocation6 + $0x30c] ss:$16 sps:$4 sm:$0xff]  }
 0x141   :  { %v335_v44 = vpop.f32.mrb[0].mxu0 }
 0x142   :  { %v420_v45 = vadd.f32 %v403_v42, %v335_v44  ;;  %v337_v46 = vpop.f32.mrb[1].mxu0  ;;  %v376_v0 = vpop.f32.mrb[0].mxu1  ;;  %v3386_v42 = vld [vmem:[#allocation6 + $0x32c] ss:$16 sps:$4 sm:$0xff]   ;;  %v3384_v44 = vld [vmem:[#allocation6 + $0x328] ss:$16 sps:$4 sm:$0xff]  }
 0x143   :  { %v421_v47 = vadd.f32 %v407_v43, %v337_v46  ;;  %v339_v48 = vpop.f32.mrb[2].mxu0  ;;  %v3904_v3 = vadd.f32 %v411_v59, %v376_v0  ;;  %v378_v4 = vpop.f32.mrb[1].mxu1  ;;  %v3381_v43 = vld [vmem:[#allocation6 + $0x320] ss:$16 sps:$4 sm:$0xff]   ;;  %v3392_v46 = vld [vmem:[#allocation6 + $0x34c] ss:$16 sps:$4 sm:$0xff]  }
 0x144   :  { %v424_v49 = vmul.f32 0.2, %v420_v45  ;;  %v340_v50 = vpop.f32.mrb[3].mxu0  ;;  %v423_v7 = vadd.f32 %v415_v63, %v378_v4  ;;  %v380_v8 = vpop.f32.mrb[2].mxu1  ;;  %v3390_v48 = vld [vmem:[#allocation6 + $0x348] ss:$16 sps:$4 sm:$0xff]  }
 0x145   :  { %v425_v51 = vmul.f32 0.2, %v421_v47  ;;  %v381_v9 = vpop.f32.mrb[3].mxu1  ;;  %v3398_v50 = vld [vmem:[#allocation6 + $0x36c] ss:$16 sps:$4 sm:$0xff]  }
 0x146   :  { %v428_v53 = vmax.f32 %v420_v45, %v424_v49  ;;  %v427_v10 = vmul.f32 0.2, %v423_v7  ;;  %v3389_v45 = vld [vmem:[#allocation6 + $0x344] ss:$16 sps:$4 sm:$0xff]   ;;  %v3416_v0 = vld [vmem:[#allocation6 + $0x3cc] ss:$16 sps:$4 sm:$0xff]  }
 0x147   :  { %v429_v55 = vmax.f32 %v421_v47, %v425_v51  ;;  %v3387_v47 = vld [vmem:[#allocation6 + $0x340] ss:$16 sps:$4 sm:$0xff]   ;;  %v3395_v49 = vld [vmem:[#allocation6 + $0x364] ss:$16 sps:$4 sm:$0xff]   ;;  %v426_v4 = vmul.f32 0.2, %v3904_v3 }
 0x148   :  { %v432_v60 = vpack.c.bf16 %v428_v53, %v428_v53  ;;  %v431_v15 = vmax.f32 %v423_v7, %v427_v10  ;;  %v3393_v51 = vld [vmem:[#allocation6 + $0x360] ss:$16 sps:$4 sm:$0xff]   ;;  %v3396_v53 = vld [vmem:[#allocation6 + $0x368] ss:$16 sps:$4 sm:$0xff]   ;;  %v3407_v59 = vld [vmem:[#allocation6 + $0x3a4] ss:$16 sps:$4 sm:$0xff]  }
 0x149   :  { %v433_v56 = vpack.c.bf16 %v429_v55, %v429_v55  ;;  %v3401_v55 = vld [vmem:[#allocation6 + $0x384] ss:$16 sps:$4 sm:$0xff]   ;;  %v3417_v7 = vld [vmem:[#allocation6 + $0x3e0] ss:$16 sps:$4 sm:$0xff]   ;;  %v3420_v8 = vld [vmem:[#allocation6 + $0x3e8] ss:$16 sps:$4 sm:$0xff]   ;;  %v430_v9 = vmax.f32 %v3904_v3, %v426_v4 }
 0x14a   :  { %v435_v16 = vpack.c.bf16 %v431_v15, %v431_v15  ;;  %v3413_v63 = vld [vmem:[#allocation6 + $0x3c4] ss:$16 sps:$4 sm:$0xff]   ;;  %v3506_v4 = vld [vmem:[#allocation8 + $0x1ac] ss:$16 sps:$4 sm:$0xff]  }
 0x14b   :  { %1258 = vmatprep.mubr.bf16.mxu0 %v433_v56  ;;  %1340 = vmatprep.mubr.bf16.mxu1 %v433_v56  ;;  %v3404_v56 = vld [vmem:[#allocation6 + $0x38c] ss:$16 sps:$4 sm:$0xff]   ;;  %v3425_v10 = vld [vmem:[#allocation8 + $0x4] ss:$16 sps:$4 sm:$0xff]  }
 0x14c   :  { %1259 = vmatmul.mubr.bf16.vlgmr.msra.gmra.mrb[4].mxu0 %v432_v60  ;;  %1341 = vmatmul.mubr.bf16.vlgmr.msra.gmra.mrb[4].mxu1 %v432_v60  ;;  %v3410_v60 = vld [vmem:[#allocation6 + $0x3ac] ss:$16 sps:$4 sm:$0xff]   ;;  %v3431_v15 = vld [vmem:[#allocation8 + $0x24] ss:$16 sps:$4 sm:$0xff]  }
 0x14d   :  { %1268 = vmatpush1.bf16.msra.mxu0 %v3327_v57  ;;  %1350 = vmatpush1.bf16.msra.mxu1 %v3330_v58  ;;  %v3399_v57 = vld [vmem:[#allocation6 + $0x380] ss:$16 sps:$4 sm:$0xff]   ;;  %v3402_v58 = vld [vmem:[#allocation6 + $0x388] ss:$16 sps:$4 sm:$0xff]   ;;  %v3437_v3 = vld [vmem:[#allocation8 + $0x44] ss:$16 sps:$4 sm:$0xff]  }
 0x14e   :  { %1269 = vmatprep.subr.bf16.mxu0 %v3335_v61  ;;  %1351 = vmatprep.subr.bf16.mxu1 %v3338_v62  ;;  %v3405_v61 = vld [vmem:[#allocation6 + $0x3a0] ss:$16 sps:$4 sm:$0xff]   ;;  %v3408_v62 = vld [vmem:[#allocation6 + $0x3a8] ss:$16 sps:$4 sm:$0xff]  }
 0x14f   :  { %1299 = vmatprep.mubr.bf16.mxu0 %v435_v16  ;;  %1381 = vmatprep.mubr.bf16.mxu1 %v435_v16  ;;  %v3434_v16 = vld [vmem:[#allocation8 + $0x2c] ss:$16 sps:$4 sm:$0xff]  }
 0x151   :  { %1270 = vmatpush1.bf16.msra.mxu0 %v3333_v1  ;;  %1352 = vmatpush1.bf16.msra.mxu1 %v3336_v2  ;;  %v3411_v1 = vld [vmem:[#allocation6 + $0x3c0] ss:$16 sps:$4 sm:$0xff]   ;;  %v3414_v2 = vld [vmem:[#allocation6 + $0x3c8] ss:$16 sps:$4 sm:$0xff]  }
 0x152   :  { %1271 = vmatprep.subr.bf16.mxu0 %v3341_v5  ;;  %1353 = vmatprep.subr.bf16.mxu1 %v3344_v6  ;;  %v3419_v5 = vld [vmem:[#allocation6 + $0x3e4] ss:$16 sps:$4 sm:$0xff]   ;;  %v3422_v6 = vld [vmem:[#allocation6 + $0x3ec] ss:$16 sps:$4 sm:$0xff]  }
 0x155   :  { %1272 = vmatpush1.bf16.msra.mxu0 %v3339_v11  ;;  %1354 = vmatpush1.bf16.msra.mxu1 %v3342_v12  ;;  %v3428_v11 = vld [vmem:[#allocation8 + $0xc] ss:$16 sps:$4 sm:$0xff]   ;;  %v3423_v12 = vld [vmem:[#allocation8] ss:$16 sps:$4 sm:$0xff]  }
 0x156   :  { %1273 = vmatprep.subr.bf16.mxu0 %v3347_v13  ;;  %1355 = vmatprep.subr.bf16.mxu1 %v3350_v14  ;;  %v3426_v13 = vld [vmem:[#allocation8 + $0x8] ss:$16 sps:$4 sm:$0xff]   ;;  %v434_v14 = vpack.c.bf16 %v430_v9, %v430_v9  ;;  %v3507_v9 = vld [vmem:[#allocation8 + $0x1c0] ss:$16 sps:$4 sm:$0xff]  }
 0x159   :  { %1274 = vmatpush1.bf16.msra.mxu0 %v3345_v17  ;;  %1356 = vmatpush1.bf16.msra.mxu1 %v3348_v18  ;;  %v3429_v17 = vld [vmem:[#allocation8 + $0x20] ss:$16 sps:$4 sm:$0xff]   ;;  %v3432_v18 = vld [vmem:[#allocation8 + $0x28] ss:$16 sps:$4 sm:$0xff]  }
 0x15a   :  { %1275 = vmatprep.subr.bf16.mxu0 %v3353_v19  ;;  %1357 = vmatprep.subr.bf16.mxu1 %v3356_v20  ;;  %v3440_v19 = vld [vmem:[#allocation8 + $0x4c] ss:$16 sps:$4 sm:$0xff]   ;;  %v3435_v20 = vld [vmem:[#allocation8 + $0x40] ss:$16 sps:$4 sm:$0xff]  }
 0x15d   :  { %1276 = vmatpush1.bf16.msra.mxu0 %v3351_v21  ;;  %1358 = vmatpush1.bf16.msra.mxu1 %v3354_v22  ;;  %v3438_v21 = vld [vmem:[#allocation8 + $0x48] ss:$16 sps:$4 sm:$0xff]   ;;  %v3443_v22 = vld [vmem:[#allocation8 + $0x64] ss:$16 sps:$4 sm:$0xff]  }
 0x15e   :  { %1277 = vmatprep.subr.bf16.mxu0 %v3359_v23  ;;  %1359 = vmatprep.subr.bf16.mxu1 %v3362_v24  ;;  %v3446_v23 = vld [vmem:[#allocation8 + $0x6c] ss:$16 sps:$4 sm:$0xff]   ;;  %v3441_v24 = vld [vmem:[#allocation8 + $0x60] ss:$16 sps:$4 sm:$0xff]  }
 0x161   :  { %1278 = vmatpush1.bf16.msra.mxu0 %v3357_v25  ;;  %1360 = vmatpush1.bf16.msra.mxu1 %v3360_v26  ;;  %v3444_v25 = vld [vmem:[#allocation8 + $0x68] ss:$16 sps:$4 sm:$0xff]   ;;  %v3449_v26 = vld [vmem:[#allocation8 + $0x84] ss:$16 sps:$4 sm:$0xff]  }
 0x162   :  { %1279 = vmatprep.subr.bf16.mxu0 %v3365_v27  ;;  %1361 = vmatprep.subr.bf16.mxu1 %v3368_v28  ;;  %v3452_v27 = vld [vmem:[#allocation8 + $0x8c] ss:$16 sps:$4 sm:$0xff]   ;;  %v3447_v28 = vld [vmem:[#allocation8 + $0x80] ss:$16 sps:$4 sm:$0xff]  }
 0x165   :  { %1280 = vmatpush1.bf16.msra.mxu0 %v3363_v29  ;;  %1362 = vmatpush1.bf16.msra.mxu1 %v3366_v30  ;;  %v3450_v29 = vld [vmem:[#allocation8 + $0x88] ss:$16 sps:$4 sm:$0xff]   ;;  %v3455_v30 = vld [vmem:[#allocation8 + $0xa4] ss:$16 sps:$4 sm:$0xff]  }
 0x166   :  { %1281 = vmatprep.subr.bf16.mxu0 %v3371_v31  ;;  %1363 = vmatprep.subr.bf16.mxu1 %v3374_v32  ;;  %v3458_v31 = vld [vmem:[#allocation8 + $0xac] ss:$16 sps:$4 sm:$0xff]   ;;  %v3453_v32 = vld [vmem:[#allocation8 + $0xa0] ss:$16 sps:$4 sm:$0xff]  }
 0x169   :  { %1282 = vmatpush1.bf16.msra.mxu0 %v3369_v33  ;;  %1364 = vmatpush1.bf16.msra.mxu1 %v3372_v34  ;;  %v3456_v33 = vld [vmem:[#allocation8 + $0xa8] ss:$16 sps:$4 sm:$0xff]   ;;  %v3461_v34 = vld [vmem:[#allocation8 + $0xc4] ss:$16 sps:$4 sm:$0xff]  }
 0x16a   :  { %1283 = vmatprep.subr.bf16.mxu0 %v3377_v35  ;;  %1365 = vmatprep.subr.bf16.mxu1 %v3380_v36  ;;  %v3464_v35 = vld [vmem:[#allocation8 + $0xcc] ss:$16 sps:$4 sm:$0xff]   ;;  %v3459_v36 = vld [vmem:[#allocation8 + $0xc0] ss:$16 sps:$4 sm:$0xff]  }
 0x16d   :  { %1284 = vmatpush1.bf16.msra.mxu0 %v3375_v37  ;;  %1366 = vmatpush1.bf16.msra.mxu1 %v3378_v38  ;;  %v3462_v37 = vld [vmem:[#allocation8 + $0xc8] ss:$16 sps:$4 sm:$0xff]   ;;  %v3467_v38 = vld [vmem:[#allocation8 + $0xe4] ss:$16 sps:$4 sm:$0xff]  }
 0x16e   :  { %1285 = vmatprep.subr.bf16.mxu0 %v3383_v40  ;;  %1367 = vmatprep.subr.bf16.mxu1 %v3386_v42  ;;  %v3470_v40 = vld [vmem:[#allocation8 + $0xec] ss:$16 sps:$4 sm:$0xff]   ;;  %v3465_v42 = vld [vmem:[#allocation8 + $0xe0] ss:$16 sps:$4 sm:$0xff]  }
 0x171   :  { %1286 = vmatpush1.bf16.msra.mxu0 %v3381_v43  ;;  %1368 = vmatpush1.bf16.msra.mxu1 %v3384_v44  ;;  %v3468_v43 = vld [vmem:[#allocation8 + $0xe8] ss:$16 sps:$4 sm:$0xff]   ;;  %v3473_v44 = vld [vmem:[#allocation8 + $0x104] ss:$16 sps:$4 sm:$0xff]  }
 0x172   :  { %1287 = vmatprep.subr.bf16.mxu0 %v3389_v45  ;;  %1369 = vmatprep.subr.bf16.mxu1 %v3392_v46  ;;  %v3476_v45 = vld [vmem:[#allocation8 + $0x10c] ss:$16 sps:$4 sm:$0xff]   ;;  %v3471_v46 = vld [vmem:[#allocation8 + $0x100] ss:$16 sps:$4 sm:$0xff]  }
 0x175   :  { %1288 = vmatpush1.bf16.msra.mxu0 %v3387_v47  ;;  %1370 = vmatpush1.bf16.msra.mxu1 %v3390_v48  ;;  %v3474_v47 = vld [vmem:[#allocation8 + $0x108] ss:$16 sps:$4 sm:$0xff]   ;;  %v3479_v48 = vld [vmem:[#allocation8 + $0x124] ss:$16 sps:$4 sm:$0xff]  }
 0x176   :  { %1289 = vmatprep.subr.bf16.mxu0 %v3395_v49  ;;  %1371 = vmatprep.subr.bf16.mxu1 %v3398_v50  ;;  %v3482_v49 = vld [vmem:[#allocation8 + $0x12c] ss:$16 sps:$4 sm:$0xff]   ;;  %v3477_v50 = vld [vmem:[#allocation8 + $0x120] ss:$16 sps:$4 sm:$0xff]  }
 0x179   :  { %1290 = vmatpush1.bf16.msra.mxu0 %v3393_v51  ;;  %1372 = vmatpush1.bf16.msra.mxu1 %v3396_v53  ;;  %v3480_v51 = vld [vmem:[#allocation8 + $0x128] ss:$16 sps:$4 sm:$0xff]   ;;  %v3485_v53 = vld [vmem:[#allocation8 + $0x144] ss:$16 sps:$4 sm:$0xff]  }
 0x17a   :  { %1291 = vmatprep.subr.bf16.mxu0 %v3401_v55  ;;  %1373 = vmatprep.subr.bf16.mxu1 %v3404_v56  ;;  %v3488_v55 = vld [vmem:[#allocation8 + $0x14c] ss:$16 sps:$4 sm:$0xff]   ;;  %v3483_v56 = vld [vmem:[#allocation8 + $0x140] ss:$16 sps:$4 sm:$0xff]  }
 0x17d   :  { %1292 = vmatpush1.bf16.msra.mxu0 %v3399_v57  ;;  %1374 = vmatpush1.bf16.msra.mxu1 %v3402_v58  ;;  %v3486_v57 = vld [vmem:[#allocation8 + $0x148] ss:$16 sps:$4 sm:$0xff]   ;;  %v3491_v58 = vld [vmem:[#allocation8 + $0x164] ss:$16 sps:$4 sm:$0xff]  }
 0x17e   :  { %1293 = vmatprep.subr.bf16.mxu0 %v3407_v59  ;;  %1375 = vmatprep.subr.bf16.mxu1 %v3410_v60  ;;  %v3494_v59 = vld [vmem:[#allocation8 + $0x16c] ss:$16 sps:$4 sm:$0xff]   ;;  %v3489_v60 = vld [vmem:[#allocation8 + $0x160] ss:$16 sps:$4 sm:$0xff]  }
 0x181   :  { %1294 = vmatpush1.bf16.msra.mxu0 %v3405_v61  ;;  %1376 = vmatpush1.bf16.msra.mxu1 %v3408_v62  ;;  %v3492_v61 = vld [vmem:[#allocation8 + $0x168] ss:$16 sps:$4 sm:$0xff]   ;;  %v3497_v62 = vld [vmem:[#allocation8 + $0x184] ss:$16 sps:$4 sm:$0xff]  }
 0x182   :  { %1295 = vmatprep.subr.bf16.mxu0 %v3413_v63  ;;  %1377 = vmatprep.subr.bf16.mxu1 %v3416_v0  ;;  %v3500_v63 = vld [vmem:[#allocation8 + $0x18c] ss:$16 sps:$4 sm:$0xff]   ;;  %v3495_v0 = vld [vmem:[#allocation8 + $0x180] ss:$16 sps:$4 sm:$0xff]  }
 0x185   :  { %1296 = vmatpush1.bf16.msra.mxu0 %v3411_v1  ;;  %1378 = vmatpush1.bf16.msra.mxu1 %v3414_v2  ;;  %v3498_v1 = vld [vmem:[#allocation8 + $0x188] ss:$16 sps:$4 sm:$0xff]   ;;  %v3503_v2 = vld [vmem:[#allocation8 + $0x1a4] ss:$16 sps:$4 sm:$0xff]  }
 0x186   :  { %1297 = vmatprep.subr.bf16.mxu0 %v3419_v5  ;;  %1379 = vmatprep.subr.bf16.mxu1 %v3422_v6  ;;  %v3501_v5 = vld [vmem:[#allocation8 + $0x1a0] ss:$16 sps:$4 sm:$0xff]   ;;  %v3504_v6 = vld [vmem:[#allocation8 + $0x1a8] ss:$16 sps:$4 sm:$0xff]  }
 0x189   :  { %1298 = vmatpush1.bf16.msra.mxu0 %v3417_v7  ;;  %1380 = vmatpush1.bf16.msra.mxu1 %v3420_v8  ;;  %v3509_v7 = vld [vmem:[#allocation8 + $0x1c4] ss:$16 sps:$4 sm:$0xff]   ;;  %v3512_v8 = vld [vmem:[#allocation8 + $0x1cc] ss:$16 sps:$4 sm:$0xff]  }
 0x18a   :  { %2192 = vmatprep.subr.bf16.mxu0 %v3425_v10  ;;  %2274 = vmatprep.subr.bf16.mxu1 %v3428_v11  ;;  %v3510_v10 = vld [vmem:[#allocation8 + $0x1c8] ss:$16 sps:$4 sm:$0xff]   ;;  %v3515_v11 = vld [vmem:[#allocation8 + $0x1e4] ss:$16 sps:$4 sm:$0xff]  }
 0x18c   :  { %1300 = vmatmul.mubr.bf16.vlgmr.msra.gmra.mrb[4].mxu0 %v434_v14  ;;  %1382 = vmatmul.mubr.bf16.vlgmr.msra.gmra.mrb[4].mxu1 %v434_v14  ;;  %v3516_v14 = vld [vmem:[#allocation8 + $0x1e8] ss:$16 sps:$4 sm:$0xff]  }
 0x18d   :  { %2193 = vmatpush1.bf16.msra.mxu0 %v3423_v12  ;;  %2275 = vmatpush1.bf16.msra.mxu1 %v3426_v13  ;;  %v3518_v12 = vld [vmem:[#allocation8 + $0x1ec] ss:$16 sps:$4 sm:$0xff]   ;;  %v3513_v13 = vld [vmem:[#allocation8 + $0x1e0] ss:$16 sps:$4 sm:$0xff]  }
 0x18e   :  { %2194 = vmatprep.subr.bf16.mxu0 %v3431_v15  ;;  %2276 = vmatprep.subr.bf16.mxu1 %v3434_v16  ;;  %v3521_v15 = vld [vmem:[#allocation8 + $0x204] ss:$16 sps:$4 sm:$0xff]   ;;  %v3524_v16 = vld [vmem:[#allocation8 + $0x20c] ss:$16 sps:$4 sm:$0xff]  }
 0x191   :  { %2195 = vmatpush1.bf16.msra.mxu0 %v3429_v17  ;;  %2277 = vmatpush1.bf16.msra.mxu1 %v3432_v18  ;;  %v3911_v17 = vld [vmem:[%s3945_s4] sm:$0xf] }
 0x192   :  { %2196 = vmatprep.subr.bf16.mxu0 %v3437_v3  ;;  %2278 = vmatprep.subr.bf16.mxu1 %v3440_v19  ;;  %v569_v18 = vrot.slane %v3911_v17, %v3889_v39  ;;  %v573_v3 = vrot.slane %v3911_v17, %v3894_v41  ;;  %v581_v19 = vrot.slane %v3911_v17, %v3900_v54 }
 0x195   :  { %2197 = vmatpush1.bf16.msra.mxu0 %v3435_v20  ;;  %2279 = vmatpush1.bf16.msra.mxu1 %v3438_v21 }
 0x196   :  { %2198 = vmatprep.subr.bf16.mxu0 %v3443_v22  ;;  %2280 = vmatprep.subr.bf16.mxu1 %v3446_v23 }
 0x199   :  { %2199 = vmatpush1.bf16.msra.mxu0 %v3441_v24  ;;  %2281 = vmatpush1.bf16.msra.mxu1 %v3444_v25 }
 0x19a   :  { %2200 = vmatprep.subr.bf16.mxu0 %v3449_v26  ;;  %2282 = vmatprep.subr.bf16.mxu1 %v3452_v27 }
 0x19d   :  { %2201 = vmatpush1.bf16.msra.mxu0 %v3447_v28  ;;  %2283 = vmatpush1.bf16.msra.mxu1 %v3450_v29 }
 0x19e   :  { %2202 = vmatprep.subr.bf16.mxu0 %v3455_v30  ;;  %2284 = vmatprep.subr.bf16.mxu1 %v3458_v31 }
 0x1a1   :  { %2203 = vmatpush1.bf16.msra.mxu0 %v3453_v32  ;;  %2285 = vmatpush1.bf16.msra.mxu1 %v3456_v33 }
 0x1a2   :  { %2204 = vmatprep.subr.bf16.mxu0 %v3461_v34  ;;  %2286 = vmatprep.subr.bf16.mxu1 %v3464_v35 }
 0x1a5   :  { %2205 = vmatpush1.bf16.msra.mxu0 %v3459_v36  ;;  %2287 = vmatpush1.bf16.msra.mxu1 %v3462_v37 }
 0x1a6   :  { %2206 = vmatprep.subr.bf16.mxu0 %v3467_v38  ;;  %2288 = vmatprep.subr.bf16.mxu1 %v3470_v40  ;;  %v3519_v38 = vld [vmem:[#allocation8 + $0x200] ss:$16 sps:$4 sm:$0xff]   ;;  %v3522_v40 = vld [vmem:[#allocation8 + $0x208] ss:$16 sps:$4 sm:$0xff]  }
 0x1a9   :  { %2207 = vmatpush1.bf16.msra.mxu0 %v3465_v42  ;;  %2289 = vmatpush1.bf16.msra.mxu1 %v3468_v43  ;;  %v3527_v43 = vld [vmem:[#allocation8 + $0x224] ss:$16 sps:$4 sm:$0xff]  }
 0x1aa   :  { %2208 = vmatprep.subr.bf16.mxu0 %v3473_v44  ;;  %2290 = vmatprep.subr.bf16.mxu1 %v3476_v45  ;;  %v3530_v44 = vld [vmem:[#allocation8 + $0x22c] ss:$16 sps:$4 sm:$0xff]  }
 0x1ad   :  { %2209 = vmatpush1.bf16.msra.mxu0 %v3471_v46  ;;  %2291 = vmatpush1.bf16.msra.mxu1 %v3474_v47  ;;  %v3525_v46 = vld [vmem:[#allocation8 + $0x220] ss:$16 sps:$4 sm:$0xff]   ;;  %v3528_v47 = vld [vmem:[#allocation8 + $0x228] ss:$16 sps:$4 sm:$0xff]  }
 0x1ae   :  { %2210 = vmatprep.subr.bf16.mxu0 %v3479_v48  ;;  %2292 = vmatprep.subr.bf16.mxu1 %v3482_v49  ;;  %v3533_v48 = vld [vmem:[#allocation8 + $0x244] ss:$16 sps:$4 sm:$0xff]   ;;  %v3536_v49 = vld [vmem:[#allocation8 + $0x24c] ss:$16 sps:$4 sm:$0xff]  }
 0x1b1   :  { %2211 = vmatpush1.bf16.msra.mxu0 %v3477_v50  ;;  %2293 = vmatpush1.bf16.msra.mxu1 %v3480_v51  ;;  %v3531_v50 = vld [vmem:[#allocation8 + $0x240] ss:$16 sps:$4 sm:$0xff]   ;;  %v3534_v51 = vld [vmem:[#allocation8 + $0x248] ss:$16 sps:$4 sm:$0xff]  }
 0x1b2   :  { %2212 = vmatprep.subr.bf16.mxu0 %v3485_v53  ;;  %2294 = vmatprep.subr.bf16.mxu1 %v3488_v55  ;;  %v3539_v53 = vld [vmem:[#allocation8 + $0x264] ss:$16 sps:$4 sm:$0xff]   ;;  %v3542_v55 = vld [vmem:[#allocation8 + $0x26c] ss:$16 sps:$4 sm:$0xff]  }
 0x1b5   :  { %2213 = vmatpush1.bf16.msra.mxu0 %v3483_v56  ;;  %2295 = vmatpush1.bf16.msra.mxu1 %v3486_v57  ;;  %v3537_v56 = vld [vmem:[#allocation8 + $0x260] ss:$16 sps:$4 sm:$0xff]   ;;  %v3540_v57 = vld [vmem:[#allocation8 + $0x268] ss:$16 sps:$4 sm:$0xff]  }
 0x1b6   :  { %2214 = vmatprep.subr.bf16.mxu0 %v3491_v58  ;;  %2296 = vmatprep.subr.bf16.mxu1 %v3494_v59  ;;  %v3545_v58 = vld [vmem:[#allocation8 + $0x284] ss:$16 sps:$4 sm:$0xff]   ;;  %v3548_v59 = vld [vmem:[#allocation8 + $0x28c] ss:$16 sps:$4 sm:$0xff]  }
 0x1b9   :  { %2215 = vmatpush1.bf16.msra.mxu0 %v3489_v60  ;;  %2297 = vmatpush1.bf16.msra.mxu1 %v3492_v61  ;;  %v3543_v60 = vld [vmem:[#allocation8 + $0x280] ss:$16 sps:$4 sm:$0xff]   ;;  %v3546_v61 = vld [vmem:[#allocation8 + $0x288] ss:$16 sps:$4 sm:$0xff]  }
 0x1ba   :  { %2216 = vmatprep.subr.bf16.mxu0 %v3497_v62  ;;  %2298 = vmatprep.subr.bf16.mxu1 %v3500_v63  ;;  %v3551_v62 = vld [vmem:[#allocation8 + $0x2a4] ss:$16 sps:$4 sm:$0xff]   ;;  %v3554_v63 = vld [vmem:[#allocation8 + $0x2ac] ss:$16 sps:$4 sm:$0xff]  }
 0x1bd   :  { %2217 = vmatpush1.bf16.msra.mxu0 %v3495_v0  ;;  %2299 = vmatpush1.bf16.msra.mxu1 %v3498_v1  ;;  %v3549_v0 = vld [vmem:[#allocation8 + $0x2a0] ss:$16 sps:$4 sm:$0xff]   ;;  %v3552_v1 = vld [vmem:[#allocation8 + $0x2a8] ss:$16 sps:$4 sm:$0xff]  }
 0x1be   :  { %2218 = vmatprep.subr.bf16.mxu0 %v3503_v2  ;;  %2300 = vmatprep.subr.bf16.mxu1 %v3506_v4  ;;  %v3557_v2 = vld [vmem:[#allocation8 + $0x2c4] ss:$16 sps:$4 sm:$0xff]   ;;  %v3560_v4 = vld [vmem:[#allocation8 + $0x2cc] ss:$16 sps:$4 sm:$0xff]  }
 0x1c1   :  { %2219 = vmatpush1.bf16.msra.mxu0 %v3501_v5  ;;  %2301 = vmatpush1.bf16.msra.mxu1 %v3504_v6  ;;  %v3555_v5 = vld [vmem:[#allocation8 + $0x2c0] ss:$16 sps:$4 sm:$0xff]   ;;  %v3558_v6 = vld [vmem:[#allocation8 + $0x2c8] ss:$16 sps:$4 sm:$0xff]  }
 0x1c2   :  { %2220 = vmatprep.subr.bf16.mxu0 %v3509_v7  ;;  %2302 = vmatprep.subr.bf16.mxu1 %v3512_v8  ;;  %v3563_v7 = vld [vmem:[#allocation8 + $0x2e4] ss:$16 sps:$4 sm:$0xff]   ;;  %v3566_v8 = vld [vmem:[#allocation8 + $0x2ec] ss:$16 sps:$4 sm:$0xff]  }
 0x1c5   :  { %2221 = vmatpush1.bf16.msra.mxu0 %v3507_v9  ;;  %2303 = vmatpush1.bf16.msra.mxu1 %v3510_v10  ;;  %v3561_v9 = vld [vmem:[#allocation8 + $0x2e0] ss:$16 sps:$4 sm:$0xff]   ;;  %v3564_v10 = vld [vmem:[#allocation8 + $0x2e8] ss:$16 sps:$4 sm:$0xff]  }
 0x1c6   :  { %2222 = vmatprep.subr.bf16.mxu0 %v3515_v11  ;;  %2304 = vmatprep.subr.bf16.mxu1 %v3518_v12  ;;  %v3569_v11 = vld [vmem:[#allocation8 + $0x304] ss:$16 sps:$4 sm:$0xff]   ;;  %v3572_v12 = vld [vmem:[#allocation8 + $0x30c] ss:$16 sps:$4 sm:$0xff]  }
 0x1c9   :  { %2223 = vmatpush1.bf16.msra.mxu0 %v3513_v13  ;;  %2305 = vmatpush1.bf16.msra.mxu1 %v3516_v14  ;;  %v3567_v13 = vld [vmem:[#allocation8 + $0x300] ss:$16 sps:$4 sm:$0xff]   ;;  %v3570_v14 = vld [vmem:[#allocation8 + $0x308] ss:$16 sps:$4 sm:$0xff]  }
 0x1ca   :  { %2233 = vmatprep.subr.bf16.mxu0 %v3521_v15  ;;  %2315 = vmatprep.subr.bf16.mxu1 %v3524_v16  ;;  %v3575_v15 = vld [vmem:[#allocation8 + $0x324] ss:$16 sps:$4 sm:$0xff]   ;;  %v3578_v16 = vld [vmem:[#allocation8 + $0x32c] ss:$16 sps:$4 sm:$0xff]  }
 0x25f   :  { %v1301_v20 = vpop.f32.mrb[4].mxu0  ;;  %v3919_v21 = vpop.f32.mrb[4].mxu1 }
 0x260   :  { %v3147_v22 = vadd.f32 %v1301_v20, %v569_v18  ;;  %v1303_v23 = vpop.f32.mrb[5].mxu0  ;;  %v1385_v24 = vpop.f32.mrb[5].mxu1  ;;  %v3573_v18 = vld [vmem:[#allocation8 + $0x320] ss:$16 sps:$4 sm:$0xff]   ;;  %v3584_v20 = vld [vmem:[#allocation8 + $0x34c] ss:$16 sps:$4 sm:$0xff]  }
 0x261   :  { %v3148_v25 = vadd.f32 %v1303_v23, %v573_v3  ;;  %v3150_v26 = vadd.f32 %v1385_v24, %v581_v19  ;;  %v1305_v27 = vpop.f32.mrb[6].mxu0  ;;  %v1387_v28 = vpop.f32.mrb[6].mxu1  ;;  %v3576_v3 = vld [vmem:[#allocation8 + $0x328] ss:$16 sps:$4 sm:$0xff]   ;;  %v3581_v19 = vld [vmem:[#allocation8 + $0x344] ss:$16 sps:$4 sm:$0xff]  }
 0x262   :  { %v1390_v29 = vmul.f32 0.2, %v3147_v22  ;;  %v1306_v30 = vpop.f32.mrb[7].mxu0  ;;  %v1388_v31 = vpop.f32.mrb[7].mxu1  ;;  %v3582_v23 = vld [vmem:[#allocation8 + $0x348] ss:$16 sps:$4 sm:$0xff]  }
 0x263   :  { %v1391_v32 = vmul.f32 0.2, %v3148_v25  ;;  %v1393_v33 = vmul.f32 0.2, %v3150_v26  ;;  %v3587_v24 = vld [vmem:[#allocation8 + $0x364] ss:$16 sps:$4 sm:$0xff]  }
 0x264   :  { %v1394_v34 = vmax.f32 %v3147_v22, %v1390_v29  ;;  %v3579_v22 = vld [vmem:[#allocation8 + $0x340] ss:$16 sps:$4 sm:$0xff]   ;;  %v3588_v27 = vld [vmem:[#allocation8 + $0x368] ss:$16 sps:$4 sm:$0xff]   ;;  %v3593_v28 = vld [vmem:[#allocation8 + $0x384] ss:$16 sps:$4 sm:$0xff]  }
 0x265   :  { %v1395_v35 = vmax.f32 %v3148_v25, %v1391_v32  ;;  %v1397_v36 = vmax.f32 %v3150_v26, %v1393_v33  ;;  %v3590_v25 = vld [vmem:[#allocation8 + $0x36c] ss:$16 sps:$4 sm:$0xff]   ;;  %v3585_v26 = vld [vmem:[#allocation8 + $0x360] ss:$16 sps:$4 sm:$0xff]   ;;  %v3594_v31 = vld [vmem:[#allocation8 + $0x388] ss:$16 sps:$4 sm:$0xff]   ;;  %v577_v32 = vrot.slane %v3911_v17, %v3898_v52 }
 0x266   :  { %v1398_v42 = vpack.c.bf16 %v1394_v34, %v1394_v34  ;;  %v3596_v29 = vld [vmem:[#allocation8 + $0x38c] ss:$16 sps:$4 sm:$0xff]   ;;  %v3591_v30 = vld [vmem:[#allocation8 + $0x380] ss:$16 sps:$4 sm:$0xff]   ;;  %v3599_v33 = vld [vmem:[#allocation8 + $0x3a4] ss:$16 sps:$4 sm:$0xff]  }
 0x267   :  { %v1399_v37 = vpack.c.bf16 %v1395_v35, %v1395_v35  ;;  %v1401_v45 = vpack.c.bf16 %v1397_v36, %v1397_v36  ;;  %v3602_v34 = vld [vmem:[#allocation8 + $0x3ac] ss:$16 sps:$4 sm:$0xff]   ;;  %v3597_v35 = vld [vmem:[#allocation8 + $0x3a0] ss:$16 sps:$4 sm:$0xff]   ;;  %v3600_v36 = vld [vmem:[#allocation8 + $0x3a8] ss:$16 sps:$4 sm:$0xff]  }
 0x268   :  { %v3611_v17 = vld [vmem:[#allocation8 + $0x3e4] ss:$16 sps:$4 sm:$0xff]  }
 0x269   :  { %2224 = vmatprep.mubr.bf16.mxu0 %v1399_v37  ;;  %2306 = vmatprep.mubr.bf16.mxu1 %v1399_v37  ;;  %v3149_v37 = vadd.f32 %v3919_v21, %v577_v32  ;;  %v3615_v21 = vld [vmem:[#allocation9 + $0x40] sm:$0xff]  }
 0x26a   :  { %2225 = vmatmul.mubr.bf16.vlgmr.msra.gmra.mrb[8].mxu0 %v1398_v42  ;;  %2307 = vmatmul.mubr.bf16.vlgmr.msra.gmra.mrb[8].mxu1 %v1398_v42  ;;  %v3603_v42 = vld [vmem:[#allocation8 + $0x3c0] ss:$16 sps:$4 sm:$0xff]  }
 0x26b   :  { %2234 = vmatpush1.bf16.msra.mxu0 %v3519_v38  ;;  %2316 = vmatpush1.bf16.msra.mxu1 %v3522_v40  ;;  %v3605_v38 = vld [vmem:[#allocation8 + $0x3c4] ss:$16 sps:$4 sm:$0xff]   ;;  %v3608_v40 = vld [vmem:[#allocation8 + $0x3cc] ss:$16 sps:$4 sm:$0xff]  }
 0x26c   :  { %2265 = vmatprep.mubr.bf16.mxu0 %v1401_v45  ;;  %2347 = vmatprep.mubr.bf16.mxu1 %v1401_v45  ;;  %v3614_v45 = vld [vmem:[#allocation8 + $0x3ec] ss:$16 sps:$4 sm:$0xff]  }
 0x26d   :  { %2235 = vmatprep.subr.bf16.mxu0 %v3527_v43  ;;  %2317 = vmatprep.subr.bf16.mxu1 %v3530_v44  ;;  %v3606_v43 = vld [vmem:[#allocation8 + $0x3c8] ss:$16 sps:$4 sm:$0xff]   ;;  %v1392_v44 = vmul.f32 0.2, %v3149_v37 }
 0x26f   :  { %2236 = vmatpush1.bf16.msra.mxu0 %v3525_v46  ;;  %2318 = vmatpush1.bf16.msra.mxu1 %v3528_v47  ;;  %v3609_v46 = vld [vmem:[#allocation8 + $0x3e0] ss:$16 sps:$4 sm:$0xff]   ;;  %v3612_v47 = vld [vmem:[#allocation8 + $0x3e8] ss:$16 sps:$4 sm:$0xff]  }
 0x270   :  { %2237 = vmatprep.subr.bf16.mxu0 %v3533_v48  ;;  %2319 = vmatprep.subr.bf16.mxu1 %v3536_v49  ;;  %v1396_v48 = vmax.f32 %v3149_v37, %v1392_v44  ;;  %v3616_v49 = vld [vmem:[#allocation9 + $0xc0] sm:$0xff]  }
 0x273   :  { %2238 = vmatpush1.bf16.msra.mxu0 %v3531_v50  ;;  %2320 = vmatpush1.bf16.msra.mxu1 %v3534_v51  ;;  %v3617_v50 = vld [vmem:[#allocation9] sm:$0xff]  }
 0x274   :  { %2239 = vmatprep.subr.bf16.mxu0 %v3539_v53  ;;  %2321 = vmatprep.subr.bf16.mxu1 %v3542_v55  ;;  %v3618_v51 = vld [vmem:[#allocation9 + $0x80] sm:$0xff]   ;;  %v1400_v53 = vpack.c.bf16 %v1396_v48, %v1396_v48  ;;  %v3619_v55 = vld [vmem:[#allocation9 + $0x48] sm:$0xff]   ;;  %v3750_v48 = vmov 0.0  }
 0x277   :  { %2240 = vmatpush1.bf16.msra.mxu0 %v3537_v56  ;;  %2322 = vmatpush1.bf16.msra.mxu1 %v3540_v57  ;;  %v3620_v56 = vld [vmem:[#allocation9 + $0xc8] sm:$0xff]  }
 0x278   :  { %2241 = vmatprep.subr.bf16.mxu0 %v3545_v58  ;;  %2323 = vmatprep.subr.bf16.mxu1 %v3548_v59  ;;  %v3621_v57 = vld [vmem:[#allocation9 + $0x8] sm:$0xff]   ;;  %v3623_v59 = vld [vmem:[#allocation9 + $0x50] sm:$0xff]  }
 0x279   :  { %v3622_v58 = vld [vmem:[#allocation9 + $0x88] sm:$0xff]  }
 0x27b   :  { %2242 = vmatpush1.bf16.msra.mxu0 %v3543_v60  ;;  %2324 = vmatpush1.bf16.msra.mxu1 %v3546_v61  ;;  %v3624_v60 = vld [vmem:[#allocation9 + $0xd0] sm:$0xff]  }
 0x27c   :  { %2243 = vmatprep.subr.bf16.mxu0 %v3551_v62  ;;  %2325 = vmatprep.subr.bf16.mxu1 %v3554_v63  ;;  %v3625_v61 = vld [vmem:[#allocation9 + $0x10] sm:$0xff]   ;;  %v3627_v63 = vld [vmem:[#allocation9 + $0x58] sm:$0xff]  }
 0x27d   :  { %v3626_v62 = vld [vmem:[#allocation9 + $0x90] sm:$0xff]  }
 0x27f   :  { %2244 = vmatpush1.bf16.msra.mxu0 %v3549_v0  ;;  %2326 = vmatpush1.bf16.msra.mxu1 %v3552_v1  ;;  %v3628_v0 = vld [vmem:[#allocation9 + $0xd8] sm:$0xff]  }
 0x280   :  { %2245 = vmatprep.subr.bf16.mxu0 %v3557_v2  ;;  %2327 = vmatprep.subr.bf16.mxu1 %v3560_v4  ;;  %v3629_v1 = vld [vmem:[#allocation9 + $0x18] sm:$0xff]   ;;  %v3631_v4 = vld [vmem:[#allocation9 + $0x60] sm:$0xff]  }
 0x281   :  { %v3630_v2 = vld [vmem:[#allocation9 + $0x98] sm:$0xff]  }
 0x283   :  { %2246 = vmatpush1.bf16.msra.mxu0 %v3555_v5  ;;  %2328 = vmatpush1.bf16.msra.mxu1 %v3558_v6  ;;  %v3632_v5 = vld [vmem:[#allocation9 + $0xe0] sm:$0xff]  }
 0x284   :  { %2247 = vmatprep.subr.bf16.mxu0 %v3563_v7  ;;  %2329 = vmatprep.subr.bf16.mxu1 %v3566_v8  ;;  %v3633_v6 = vld [vmem:[#allocation9 + $0x20] sm:$0xff]   ;;  %v3635_v8 = vld [vmem:[#allocation9 + $0x68] sm:$0xff]  }
 0x285   :  { %v3634_v7 = vld [vmem:[#allocation9 + $0xa0] sm:$0xff]  }
 0x287   :  { %2248 = vmatpush1.bf16.msra.mxu0 %v3561_v9  ;;  %2330 = vmatpush1.bf16.msra.mxu1 %v3564_v10  ;;  %v3636_v9 = vld [vmem:[#allocation9 + $0xe8] sm:$0xff]  }
 0x288   :  { %2249 = vmatprep.subr.bf16.mxu0 %v3569_v11  ;;  %2331 = vmatprep.subr.bf16.mxu1 %v3572_v12  ;;  %v3637_v10 = vld [vmem:[#allocation9 + $0x28] sm:$0xff]   ;;  %v3639_v12 = vld [vmem:[#allocation9 + $0x70] sm:$0xff]  }
 0x289   :  { %v3638_v11 = vld [vmem:[#allocation9 + $0xa8] sm:$0xff]  }
 0x28b   :  { %2250 = vmatpush1.bf16.msra.mxu0 %v3567_v13  ;;  %2332 = vmatpush1.bf16.msra.mxu1 %v3570_v14  ;;  %v3640_v13 = vld [vmem:[#allocation9 + $0xf0] sm:$0xff]  }
 0x28c   :  { %2251 = vmatprep.subr.bf16.mxu0 %v3575_v15  ;;  %2333 = vmatprep.subr.bf16.mxu1 %v3578_v16  ;;  %v3641_v14 = vld [vmem:[#allocation9 + $0x30] sm:$0xff]   ;;  %v3643_v16 = vld [vmem:[#allocation9 + $0x78] sm:$0xff]  }
 0x28d   :  { %v3642_v15 = vld [vmem:[#allocation9 + $0xb0] sm:$0xff]  }
 0x28f   :  { %2252 = vmatpush1.bf16.msra.mxu0 %v3573_v18  ;;  %2334 = vmatpush1.bf16.msra.mxu1 %v3576_v3  ;;  %v3644_v18 = vld [vmem:[#allocation9 + $0xf8] sm:$0xff]  }
 0x290   :  { %2253 = vmatprep.subr.bf16.mxu0 %v3581_v19  ;;  %2335 = vmatprep.subr.bf16.mxu1 %v3584_v20  ;;  %v3645_v3 = vld [vmem:[#allocation9 + $0x38] sm:$0xff]  }
 0x291   :  { %v3646_v19 = vld [vmem:[#allocation9 + $0xb8] sm:$0xff]  }
 0x292   :  { %v1530_v20 = vld [vmem:[%s3947_s6] sm:$0xf] }
 0x293   :  { %2254 = vmatpush1.bf16.msra.mxu0 %v3579_v22  ;;  %2336 = vmatpush1.bf16.msra.mxu1 %v3582_v23  ;;  %v1535_v22 = vrot.slane %v1530_v20, %v3889_v39  ;;  %v1543_v23 = vrot.slane %v1530_v20, %v3898_v52 }
 0x294   :  { %2255 = vmatprep.subr.bf16.mxu0 %v3587_v24  ;;  %2337 = vmatprep.subr.bf16.mxu1 %v3590_v25  ;;  %v1539_v24 = vrot.slane %v1530_v20, %v3894_v41  ;;  %v1547_v25 = vrot.slane %v1530_v20, %v3900_v54 }
 0x297   :  { %2256 = vmatpush1.bf16.msra.mxu0 %v3585_v26  ;;  %2338 = vmatpush1.bf16.msra.mxu1 %v3588_v27 }
 0x298   :  { %2257 = vmatprep.subr.bf16.mxu0 %v3593_v28  ;;  %2339 = vmatprep.subr.bf16.mxu1 %v3596_v29 }
 0x29b   :  { %2258 = vmatpush1.bf16.msra.mxu0 %v3591_v30  ;;  %2340 = vmatpush1.bf16.msra.mxu1 %v3594_v31 }
 0x29c   :  { %2259 = vmatprep.subr.bf16.mxu0 %v3599_v33  ;;  %2341 = vmatprep.subr.bf16.mxu1 %v3602_v34 }
 0x29f   :  { %2260 = vmatpush1.bf16.msra.mxu0 %v3597_v35  ;;  %2342 = vmatpush1.bf16.msra.mxu1 %v3600_v36 }
 0x2a0   :  { %2261 = vmatprep.subr.bf16.mxu0 %v3605_v38  ;;  %2343 = vmatprep.subr.bf16.mxu1 %v3608_v40 }
 0x2a3   :  { %2262 = vmatpush1.bf16.msra.mxu0 %v3603_v42  ;;  %2344 = vmatpush1.bf16.msra.mxu1 %v3606_v43 }
 0x2a4   :  { %2263 = vmatprep.subr.bf16.mxu0 %v3611_v17  ;;  %2345 = vmatprep.subr.bf16.mxu1 %v3614_v45 }
 0x2a7   :  { %2264 = vmatpush1.bf16.msra.mxu0 %v3609_v46  ;;  %2346 = vmatpush1.bf16.msra.mxu1 %v3612_v47 }
 0x2a8   :  { %3095 = vmatprep.subr.bf16.mxu0 %v3615_v21  ;;  %3117 = vmatprep.subr.bf16.mxu1 %v3616_v49  ;;  %v2715_v21 = vld [vmem:[#allocation3] sm:$0x1] }
 0x2a9   :  { %2718 = vperm.xlu0 %3182, %v2715_v21  }
 0x2aa   :  { %2266 = vmatmul.mubr.bf16.vlgmr.msra.gmra.mrb[8].mxu0 %v1400_v53  ;;  %2348 = vmatmul.mubr.bf16.vlgmr.msra.gmra.mrb[8].mxu1 %v1400_v53 }
 0x2ab   :  { %3096 = vmatpush3.bf16.msra.mxu0 %v3617_v50  ;;  %3118 = vmatpush3.bf16.msra.mxu1 %v3618_v51  ;;  %v3062_v51 = vld [vmem:[%s3949_s8] ss:$0 sm:$0xff] }
 0x2ac   :  { %3097 = vmatprep.subr.bf16.mxu0 %v3619_v55  ;;  %3119 = vmatprep.subr.bf16.mxu1 %v3620_v56 }
 0x2af   :  { %3098 = vmatpush3.bf16.msra.mxu0 %v3621_v57  ;;  %3120 = vmatpush3.bf16.msra.mxu1 %v3622_v58 }
 0x2b0   :  { %3099 = vmatprep.subr.bf16.mxu0 %v3623_v59  ;;  %3121 = vmatprep.subr.bf16.mxu1 %v3624_v60 }
 0x2b3   :  { %3100 = vmatpush3.bf16.msra.mxu0 %v3625_v61  ;;  %3122 = vmatpush3.bf16.msra.mxu1 %v3626_v62 }
 0x2b4   :  { %3101 = vmatprep.subr.bf16.mxu0 %v3627_v63  ;;  %3123 = vmatprep.subr.bf16.mxu1 %v3628_v0 }
 0x2b7   :  { %3102 = vmatpush3.bf16.msra.mxu0 %v3629_v1  ;;  %3124 = vmatpush3.bf16.msra.mxu1 %v3630_v2 }
 0x2b8   :  { %3103 = vmatprep.subr.bf16.mxu0 %v3631_v4  ;;  %3125 = vmatprep.subr.bf16.mxu1 %v3632_v5  ;;  %v2713_v4 = vld [vmem:[%s3950_s9] sm:$0x1] }
 0x2bb   :  { %3104 = vmatpush3.bf16.msra.mxu0 %v3633_v6  ;;  %3126 = vmatpush3.bf16.msra.mxu1 %v3634_v7 }
 0x2bc   :  { %3105 = vmatprep.subr.bf16.mxu0 %v3635_v8  ;;  %3127 = vmatprep.subr.bf16.mxu1 %v3636_v9 }
 0x2bf   :  { %3106 = vmatpush3.bf16.msra.mxu0 %v3637_v10  ;;  %3128 = vmatpush3.bf16.msra.mxu1 %v3638_v11 }
 0x2c0   :  { %3107 = vmatprep.subr.bf16.mxu0 %v3639_v12  ;;  %3129 = vmatprep.subr.bf16.mxu1 %v3640_v13 }
 0x2c3   :  { %3108 = vmatpush3.bf16.msra.mxu0 %v3641_v14  ;;  %3130 = vmatpush3.bf16.msra.mxu1 %v3642_v15 }
 0x2c4   :  { %3109 = vmatprep.subr.bf16.mxu0 %v3643_v16  ;;  %3131 = vmatprep.subr.bf16.mxu1 %v3644_v18 }
 0x2c7   :  { %3110 = vmatpush3.bf16.msra.mxu0 %v3645_v3  ;;  %3132 = vmatpush3.bf16.msra.mxu1 %v3646_v19 }
 0x2c8   :  { %3141 = vmatprep.subr.bf16.mxu0 %v3750_v48 }
 0x328   :  { %v2719_v5 = vpop.permute.xlu0 %2718 }
 0x329   :  { %v2724_v6 = vrot.slane %v2719_v5, %v3889_v39 }
 0x37d   :  { %v2267_v26 = vpop.f32.mrb[8].mxu0  ;;  %v2349_v27 = vpop.f32.mrb[8].mxu1 }
 0x37e   :  { %v3151_v28 = vadd.f32 %v2267_v26, %v1535_v22  ;;  %v3153_v29 = vadd.f32 %v2349_v27, %v1543_v23  ;;  %v2269_v30 = vpop.f32.mrb[9].mxu0  ;;  %v2351_v31 = vpop.f32.mrb[9].mxu1 }
 0x37f   :  { %v3152_v32 = vadd.f32 %v2269_v30, %v1539_v24  ;;  %v3154_v33 = vadd.f32 %v2351_v31, %v1547_v25  ;;  %v2271_v34 = vpop.f32.mrb[10].mxu0  ;;  %v2353_v35 = vpop.f32.mrb[10].mxu1 }
 0x380   :  { %v2356_v36 = vmul.f32 0.2, %v3151_v28  ;;  %v2358_v37 = vmul.f32 0.2, %v3153_v29  ;;  %v2272_v38 = vpop.f32.mrb[11].mxu0  ;;  %v2354_v40 = vpop.f32.mrb[11].mxu1 }
 0x381   :  { %v2357_v42 = vmul.f32 0.2, %v3152_v32  ;;  %v2359_v52 = vmul.f32 0.2, %v3154_v33 }
 0x382   :  { %v2360_v43 = vmax.f32 %v3151_v28, %v2356_v36  ;;  %v2362_v41 = vmax.f32 %v3153_v29, %v2358_v37 }
 0x383   :  { %v2361_v44 = vmax.f32 %v3152_v32, %v2357_v42  ;;  %v2363_v54 = vmax.f32 %v3154_v33, %v2359_v52 }
 0x384   :  { %v2364_v46 = vpack.c.bf16 %v2360_v43, %v2360_v43  ;;  %v2366_v47 = vpack.c.bf16 %v2362_v41, %v2362_v41 }
 0x385   :  { %v2365_v17 = vpack.c.bf16 %v2361_v44, %v2361_v44  ;;  %v2367_v45 = vpack.c.bf16 %v2363_v54, %v2363_v54 }
 0x387   :  { %2663 = vmatprep.mubr.bf16.mxu0 %v2365_v17  ;;  %2703 = vmatprep.mubr.bf16.mxu1 %v2367_v45 }
 0x388   :  { %2664 = vmatmul.mubr.bf16.vlgmr.msra.gmra.mrb[12].mxu0 %v2364_v46  ;;  %2704 = vmatmul.mubr.bf16.vlgmr.msra.gmra.mrb[12].mxu1 %v2366_v47 }
 0x389   :  { %3143 = vmatprep.mubr.msk.bf16.mxu0 %vm3751_vm0, %v3750_v48 }
 0x45b   :  { %v3111_v49 = vpop.f32.mrb[12].mxu0  ;;  %v3133_v50 = vpop.f32.mrb[12].mxu1 }
 0x45c   :  { %v3112_v53 = vpop.f32.mrb[13].mxu0  ;;  %v3134_v55 = vpop.f32.mrb[13].mxu1 }
 0x45d   :  { %v3113_v56 = vadd.f32 %v3112_v53, %v3111_v49  ;;  %v3135_v57 = vadd.f32 %v3134_v55, %v3133_v50  ;;  %v3114_v58 = vpop.f32.mrb[14].mxu0  ;;  %v3136_v59 = vpop.f32.mrb[14].mxu1 }
 0x45e   :  { %v3115_v60 = vpop.f32.mrb[15].mxu0  ;;  %v3137_v61 = vpop.f32.mrb[15].mxu1 }
 0x45f   :  { %v2666_v62 = vadd.f32 %v3113_v56, %v3062_v51 }
 0x461   :  { %v2706_v63 = vadd.f32 %v3135_v57, %v2666_v62 }
 0x463   :  { %v2711_v0 = vmul.f32 0.2, %v2706_v63 }
 0x465   :  { %v2712_v1 = vmax.f32 %v2706_v63, %v2711_v0 }
 0x467   :  { %v2714_v2 = vpack.c.bf16 %v2712_v1, %v2712_v1 }
 0x469   :  { %3142 = vmatpush3.bf16.xpose.msra.mxu0 %v2714_v2 }
 0x470   :  { %3144 = vmatmul.mubr.bf16.vlgmr.msra.gmra.mrb[16].mxu0 %v2713_v4 }
 0x543   :  { %v2759_v7 = vpop.f32.mrb[16].mxu0 }
 0x544   :  { %v2760_v8 = vadd.f32 %v2759_v7, %v2724_v6  ;;  %v3145_v9 = vpop.f32.mrb[17].mxu0 }
 0x545   :  { %v2762_v10 = vpop.f32.mrb[18].mxu0 }
 0x546   :  { %2766 = vst.msk [vmem:[%s3952_s11] sm:$0x1] %vm2765_vm1, %v2760_v8  ;;  %v3146_v11 = vpop.f32.mrb[19].mxu0 }
 0x547   :  { %2771 = vsyncpa [#allocation5], 1 }
 0x548   :  { %2772 = vsyncpa [#allocation7], 1 }
 0x549   :  { %2773 = vsyncpa [#allocation10], 1 }

</bundles_post_ra>
